<compile_context>
chip_gen: v6e
topology: v6e:2x2x1
jax: 0.10.0
libtpu: 0.0.40
codegen_flags: <defaults>
</compile_context>

<pallas_src>
import jax
import jax.numpy as jnp
from jax.experimental import pallas as pl
from jax.experimental.pallas import tpu as pltpu

# ----------------------------- config (small, deterministic) -----------------------------
EMBED_SIZE = 32                    # config.Model.embedding_size
GRAPH_EMBED_SIZE = 64              # config.Model.graph_embedding_size
F_IN = EMBED_SIZE * 3              # gcn1 in_feats  = 96 (model width)
F_IN_PAD = 128                     # zero-padded contraction dim (full lane tile)
F_MID = GRAPH_EMBED_SIZE           # gcn1 out_feats = 64
F_OUT = GRAPH_EMBED_SIZE * 2       # gcn2 out_feats = 128
N_NODES = 16                       # nodes per graph
MAX_DEPTH = 50                     # depth_weight num_embeddings
B_GRAPHS = 64                      # graphs per call (batch)
TB_GRAPHS = 32                     # graphs per grid step -> grid=(2,), shards across v7x cores


# ----------------------------- Pallas kernel (hot path) -----------------------------
def level_encoder_kernel(adj_ref, x_ref, w1_ref, b1_ref, w2_ref, b2_ref, out_ref, bd_ref):
    tb, n, f_in = x_ref.shape

    # GraphConv 1 feature transform: one dense matmul over all TB*N node rows.
    xw = jnp.dot(x_ref[...].reshape(tb * n, f_in), w1_ref[...],
                 preferred_element_type=jnp.float32)                  # [TB*N, F_MID]

    # Assemble the block-diagonal normalized adjacency in VMEM scratch.
    # Zeroed every grid step (scratch is per-core persistent state; re-zeroing keeps the kernel
    # correct regardless of which core runs which step).
    bd_ref[...] = jnp.zeros_like(bd_ref)
    for g in range(tb):                                                # static unroll
        bd_ref[pl.ds(g * n, n), pl.ds(g * n, n)] = adj_ref[g]

    # GraphConv 1 aggregation as ONE dense MXU matmul over the block-diagonal, + bias + relu.
    h1 = jnp.dot(bd_ref[...], xw, preferred_element_type=jnp.float32)  # [TB*N, F_MID]
    h1 = jnp.maximum(h1 + b1_ref[...], 0.0)

    # GraphConv 2 + sum-readout folded algebraically:
    #   sum_m (A @ (H1 W2) + b2)_m = (colsum(A) . H1) @ W2 + N * b2
    adj = adj_ref[...]                                                 # [TB, N, N]
    v = jnp.sum(adj, axis=1)                                           # [TB, N] (A_hat symmetric)
    vh1 = jnp.sum(v[:, :, None] * h1.reshape(tb, n, -1), axis=1)       # [TB, F_MID]
    g_enc = (jnp.dot(vh1, w2_ref[...], preferred_element_type=jnp.float32)
             + jnp.float32(n) * b2_ref[...])                           # [TB, F_OUT]

    # tanh only on the logvar half, but keep one lane-dense 128-wide store.
    half = g_enc.shape[-1] // 2
    lane = jax.lax.broadcasted_iota(jnp.int32, g_enc.shape, dimension=1)
    out_ref[...] = jnp.where(lane >= half, jnp.tanh(g_enc), g_enc)


def level_encoder_call(adj_norm, embed, w1, b1, w2, b2, *, tb=TB_GRAPHS):
    b_graphs, n, f_in = embed.shape
    assert b_graphs % tb == 0, "batch must be a multiple of the graph tile"

    # Zero-pad the contraction dim to a full 128-lane tile (one-time setup, result unchanged).
    pad = F_IN_PAD - f_in
    embed_p = jnp.pad(embed, ((0, 0), (0, 0), (0, pad))) if pad else embed
    w1_p = jnp.pad(w1, ((0, pad), (0, 0))) if pad else w1

    grid = (b_graphs // tb,)

    cost = pl.CostEstimate(
        flops=int(b_graphs * (2 * n * F_IN_PAD * F_MID          # X @ W1
                              + 2 * n * tb * n * F_MID          # block-diag aggregation
                              + 2 * n * F_MID                   # v . H1
                              + 2 * F_MID * F_OUT)),            # (v H1) @ W2
        transcendentals=int(b_graphs * F_OUT // 2),
        bytes_accessed=int(b_graphs * (n * n + n * F_IN_PAD + F_OUT) * 4
                           + (F_IN_PAD * F_MID + F_MID + F_MID * F_OUT + F_OUT) * 4),
    )

    out = pl.pallas_call(
        level_encoder_kernel,
        out_shape=jax.ShapeDtypeStruct((b_graphs, F_OUT), jnp.float32),
        grid=grid,
        in_specs=[
            # Streamed per graph-tile:
            pl.BlockSpec((tb, n, n), lambda b: (b, 0, 0)),            # adjacency
            pl.BlockSpec((tb, n, F_IN_PAD), lambda b: (b, 0, 0)),     # node features (padded)
            # Resident across the whole grid (constant index maps -> DMA'd once):
            pl.BlockSpec((F_IN_PAD, F_MID), lambda b: (0, 0)),        # W1 (padded rows)
            pl.BlockSpec((1, F_MID), lambda b: (0, 0)),               # b1
            pl.BlockSpec((F_MID, F_OUT), lambda b: (0, 0)),           # W2
            pl.BlockSpec((1, F_OUT), lambda b: (0, 0)),               # b2
        ],
        out_specs=pl.BlockSpec((tb, F_OUT), lambda b: (b, 0)),        # lane-dense [TB, 128]
        scratch_shapes=[pltpu.VMEM((tb * n, tb * n), jnp.float32)],   # block-diag A_hat (~1 MiB)
        compiler_params=pltpu.CompilerParams(
            dimension_semantics=("parallel",)),
        cost_estimate=cost,
    )(adj_norm, embed_p, w1_p, b1, w2, b2)

    mu = out[:, :GRAPH_EMBED_SIZE]       # tanh already applied to logvar half inside the kernel
    logvar = out[:, GRAPH_EMBED_SIZE:]
    return mu, logvar


# ----------------------------- JAX glue -----------------------------
def build_normalized_adjacency(src, dst, n):
    """to_bidirected + GraphConv norm='both' normalization (dense)."""
    a = jnp.zeros((n, n), jnp.float32)
    a = a.at[src, dst].set(1.0)
    a = a.at[dst, src].set(1.0)                  # bidirected, duplicates collapse to 1
    deg = jnp.sum(a, axis=1)
    inv_sqrt = jnp.where(deg > 0, 1.0 / jnp.sqrt(jnp.maximum(deg, 1e-12)), 0.0)
    return a * inv_sqrt[:, None] * inv_sqrt[None, :]


def init_params(key):
    k1, k2, k3, k4, k5 = jax.random.split(key, 5)
    # xavier-ish deterministic init (GraphConv weights + non-zero biases to exercise the bias path)
    w1 = jax.random.normal(k1, (F_IN, F_MID), jnp.float32) * (2.0 / (F_IN + F_MID)) ** 0.5
    b1 = 0.1 * jax.random.normal(k4, (1, F_MID), jnp.float32)
    w2 = jax.random.normal(k2, (F_MID, F_OUT), jnp.float32) * (2.0 / (F_MID + F_OUT)) ** 0.5
    b2 = 0.1 * jax.random.normal(k5, (1, F_OUT), jnp.float32)
    depth_embed = jax.random.normal(k3, (MAX_DEPTH, 1), jnp.float32)
    return dict(w1=w1, b1=b1, w2=w2, b2=b2, depth_embed=depth_embed)


def make_graph(key):
    """One random tree-shaped graph: adjacency (normalized, bidirected), features, depths."""
    k_par, k_emb, k_dep = jax.random.split(key, 3)
    parents = jax.random.randint(k_par, (N_NODES - 1,), 0, 1_000_000) % jnp.arange(1, N_NODES)
    src = jnp.arange(1, N_NODES, dtype=jnp.int32)
    dst = parents.astype(jnp.int32)
    adj = build_normalized_adjacency(src, dst, N_NODES)
    # In the original model the features are LevelEmbedding output (3 concatenated
    # embedding lookups of width EMBED_SIZE); here a deterministic dense [N, 3*E] tensor.
    embed = jax.random.normal(k_emb, (N_NODES, F_IN), jnp.float32)
    depth = jax.random.randint(k_dep, (N_NODES,), 0, MAX_DEPTH, dtype=jnp.int32)
    return adj, embed, depth


def level_encoder_forward(adj_norm, embed, node_depth, params):
    # TODO(synk): depth_weight is written into g.ndata but never used by the returned
    # tensors; mirror the side-effect with a plain gather in the wrapper.
    depth_weight = jnp.take(params["depth_embed"], node_depth, axis=0)   # [B, N, 1]
    mu, logvar = level_encoder_call(adj_norm, embed,
                                    params["w1"], params["b1"],
                                    params["w2"], params["b2"])
    return mu, logvar, depth_weight


def reference_forward(adj_norm, embed, params):
    def single(adj, x):
        h1 = jnp.maximum(adj @ (x @ params["w1"]) + params["b1"], 0.0)
        h2 = adj @ (h1 @ params["w2"]) + params["b2"]
        g = jnp.sum(h2, axis=0)
        return g[:GRAPH_EMBED_SIZE], jnp.tanh(g[GRAPH_EMBED_SIZE:])
    return jax.vmap(single)(adj_norm, embed)


# ----------------------------- main -----------------------------
if __name__ == "__main__":
    key = jax.random.PRNGKey(0)
    kp, kg = jax.random.split(key, 2)

    params = init_params(kp)

    graph_keys = jax.random.split(kg, B_GRAPHS)
    adj_norm, embed, node_depth = jax.vmap(make_graph)(graph_keys)   # [B,N,N], [B,N,96], [B,N]

    mu, logvar, depth_weight = level_encoder_forward(adj_norm, embed, node_depth, params)
    jax.block_until_ready((mu, logvar, depth_weight))

    # quiet correctness check against plain-JAX reference
    mu_ref, logvar_ref = reference_forward(adj_norm, embed, params)
    assert mu.shape == (B_GRAPHS, GRAPH_EMBED_SIZE)
    assert logvar.shape == (B_GRAPHS, GRAPH_EMBED_SIZE)
    assert jnp.allclose(mu, mu_ref, atol=5e-4, rtol=1e-4)
    assert jnp.allclose(logvar, logvar_ref, atol=5e-4, rtol=1e-4)

    print("KERNEL_OK")
</pallas_src>

<mosaic_0001>
module attributes {stable_mosaic.version = 11 : i64} {
  func.func @level_encoder_kernel(%arg0: i32, %arg1: memref<32x16x16xf32, #tpu.memory_space<vmem>>, %arg2: memref<32x16x128xf32, #tpu.memory_space<vmem>>, %arg3: memref<128x64xf32, #tpu.memory_space<vmem>>, %arg4: memref<1x64xf32, #tpu.memory_space<vmem>>, %arg5: memref<64x128xf32, #tpu.memory_space<vmem>>, %arg6: memref<1x128xf32, #tpu.memory_space<vmem>>, %arg7: memref<32x128xf32, #tpu.memory_space<vmem>>, %arg8: memref<512x512xf32, #tpu.memory_space<vmem>>) attributes {dimension_semantics = [#tpu.dimension_semantics<parallel>], iteration_bounds = array<i64: 2>, scalar_prefetch = 0 : i64, scratch_operands = 1 : i64, tpu.core_type = #tpu.core_type<tc>, window_params = [{transform_indices = @transform_0, window_bounds = array<i64: 32, 16, 16>}, {transform_indices = @transform_1, window_bounds = array<i64: 32, 16, 128>}, {pipeline_mode = #tpu.pipeline_mode<synchronous>, transform_indices = @transform_2, window_bounds = array<i64: 128, 64>}, {pipeline_mode = #tpu.pipeline_mode<synchronous>, transform_indices = @transform_3, window_bounds = array<i64: 1, 64>}, {pipeline_mode = #tpu.pipeline_mode<synchronous>, transform_indices = @transform_4, window_bounds = array<i64: 64, 128>}, {pipeline_mode = #tpu.pipeline_mode<synchronous>, transform_indices = @transform_5, window_bounds = array<i64: 1, 128>}, {transform_indices = @transform_6, window_bounds = array<i64: 32, 128>}]} {
    %c0 = arith.constant 0 : index
    %c0_0 = arith.constant 0 : index
    %c0_1 = arith.constant 0 : index
    %0 = vector.load %arg2[%c0, %c0_0, %c0_1] : memref<32x16x128xf32, #tpu.memory_space<vmem>>, vector<32x16x128xf32>
    %1 = vector.shape_cast %0 : vector<32x16x128xf32> to vector<512x128xf32>
    %c0_2 = arith.constant 0 : index
    %c0_3 = arith.constant 0 : index
    %2 = vector.load %arg3[%c0_2, %c0_3] : memref<128x64xf32, #tpu.memory_space<vmem>>, vector<128x64xf32>
    %cst = arith.constant dense<0.000000e+00> : vector<512x64xf32>
    %3 = tpu.matmul %1, %2, %cst {dimension_numbers = #tpu.dot_dimension_numbers<[1], [0], [0], [1], [0, 0, 1, 1], [], []>} : vector<512x128xf32>, vector<128x64xf32>, vector<512x64xf32> -> vector<512x64xf32>
    %cst_4 = arith.constant 0.000000e+00 : f32
    %4 = vector.broadcast %cst_4 : f32 to vector<512x512xf32>
    %c0_5 = arith.constant 0 : index
    %c0_6 = arith.constant 0 : index
    %5 = vector.load %arg8[%c0_5, %c0_6] : memref<512x512xf32, #tpu.memory_space<vmem>>, vector<512x512xf32>
    tpu.vector_store %arg8[%c0_5, %c0_6], %4 {strides = array<i32>} : memref<512x512xf32, #tpu.memory_space<vmem>>, vector<512x512xf32>,
    %c0_7 = arith.constant 0 : index
    %c0_8 = arith.constant 0 : index
    %c0_9 = arith.constant 0 : index
    %6 = vector.load %arg1[%c0_7, %c0_8, %c0_9] : memref<32x16x16xf32, #tpu.memory_space<vmem>>, vector<1x16x16xf32>
    %7 = vector.shape_cast %6 : vector<1x16x16xf32> to vector<16x16xf32>
    %c0_10 = arith.constant 0 : index
    %c0_11 = arith.constant 0 : index
    %8 = vector.load %arg8[%c0_10, %c0_11] : memref<512x512xf32, #tpu.memory_space<vmem>>, vector<16x16xf32>
    tpu.vector_store %arg8[%c0_10, %c0_11], %7 {strides = array<i32>} : memref<512x512xf32, #tpu.memory_space<vmem>>, vector<16x16xf32>,
    %c1 = arith.constant 1 : index
    %c0_12 = arith.constant 0 : index
    %c0_13 = arith.constant 0 : index
    %9 = vector.load %arg1[%c1, %c0_12, %c0_13] : memref<32x16x16xf32, #tpu.memory_space<vmem>>, vector<1x16x16xf32>
    %10 = vector.shape_cast %9 : vector<1x16x16xf32> to vector<16x16xf32>
    %c16 = arith.constant 16 : index
    %c16_14 = arith.constant 16 : index
    %11 = vector.load %arg8[%c16, %c16_14] : memref<512x512xf32, #tpu.memory_space<vmem>>, vector<16x16xf32>
    tpu.vector_store %arg8[%c16, %c16_14], %10 {strides = array<i32>} : memref<512x512xf32, #tpu.memory_space<vmem>>, vector<16x16xf32>,
    %c2 = arith.constant 2 : index
    %c0_15 = arith.constant 0 : index
    %c0_16 = arith.constant 0 : index
    %12 = vector.load %arg1[%c2, %c0_15, %c0_16] : memref<32x16x16xf32, #tpu.memory_space<vmem>>, vector<1x16x16xf32>
    %13 = vector.shape_cast %12 : vector<1x16x16xf32> to vector<16x16xf32>
    %c32 = arith.constant 32 : index
    %c32_17 = arith.constant 32 : index
    %14 = vector.load %arg8[%c32, %c32_17] : memref<512x512xf32, #tpu.memory_space<vmem>>, vector<16x16xf32>
    tpu.vector_store %arg8[%c32, %c32_17], %13 {strides = array<i32>} : memref<512x512xf32, #tpu.memory_space<vmem>>, vector<16x16xf32>,
    %c3 = arith.constant 3 : index
    %c0_18 = arith.constant 0 : index
    %c0_19 = arith.constant 0 : index
    %15 = vector.load %arg1[%c3, %c0_18, %c0_19] : memref<32x16x16xf32, #tpu.memory_space<vmem>>, vector<1x16x16xf32>
    %16 = vector.shape_cast %15 : vector<1x16x16xf32> to vector<16x16xf32>
    %c48 = arith.constant 48 : index
    %c48_20 = arith.constant 48 : index
    %17 = vector.load %arg8[%c48, %c48_20] : memref<512x512xf32, #tpu.memory_space<vmem>>, vector<16x16xf32>
    tpu.vector_store %arg8[%c48, %c48_20], %16 {strides = array<i32>} : memref<512x512xf32, #tpu.memory_space<vmem>>, vector<16x16xf32>,
    %c4 = arith.constant 4 : index
    %c0_21 = arith.constant 0 : index
    %c0_22 = arith.constant 0 : index
    %18 = vector.load %arg1[%c4, %c0_21, %c0_22] : memref<32x16x16xf32, #tpu.memory_space<vmem>>, vector<1x16x16xf32>
    %19 = vector.shape_cast %18 : vector<1x16x16xf32> to vector<16x16xf32>
    %c64 = arith.constant 64 : index
    %c64_23 = arith.constant 64 : index
    %20 = vector.load %arg8[%c64, %c64_23] : memref<512x512xf32, #tpu.memory_space<vmem>>, vector<16x16xf32>
    tpu.vector_store %arg8[%c64, %c64_23], %19 {strides = array<i32>} : memref<512x512xf32, #tpu.memory_space<vmem>>, vector<16x16xf32>,
    %c5 = arith.constant 5 : index
    %c0_24 = arith.constant 0 : index
    %c0_25 = arith.constant 0 : index
    %21 = vector.load %arg1[%c5, %c0_24, %c0_25] : memref<32x16x16xf32, #tpu.memory_space<vmem>>, vector<1x16x16xf32>
    %22 = vector.shape_cast %21 : vector<1x16x16xf32> to vector<16x16xf32>
    %c80 = arith.constant 80 : index
    %c80_26 = arith.constant 80 : index
    %23 = vector.load %arg8[%c80, %c80_26] : memref<512x512xf32, #tpu.memory_space<vmem>>, vector<16x16xf32>
    tpu.vector_store %arg8[%c80, %c80_26], %22 {strides = array<i32>} : memref<512x512xf32, #tpu.memory_space<vmem>>, vector<16x16xf32>,
    %c6 = arith.constant 6 : index
    %c0_27 = arith.constant 0 : index
    %c0_28 = arith.constant 0 : index
    %24 = vector.load %arg1[%c6, %c0_27, %c0_28] : memref<32x16x16xf32, #tpu.memory_space<vmem>>, vector<1x16x16xf32>
    %25 = vector.shape_cast %24 : vector<1x16x16xf32> to vector<16x16xf32>
    %c96 = arith.constant 96 : index
    %c96_29 = arith.constant 96 : index
    %26 = vector.load %arg8[%c96, %c96_29] : memref<512x512xf32, #tpu.memory_space<vmem>>, vector<16x16xf32>
    tpu.vector_store %arg8[%c96, %c96_29], %25 {strides = array<i32>} : memref<512x512xf32, #tpu.memory_space<vmem>>, vector<16x16xf32>,
    %c7 = arith.constant 7 : index
    %c0_30 = arith.constant 0 : index
    %c0_31 = arith.constant 0 : index
    %27 = vector.load %arg1[%c7, %c0_30, %c0_31] : memref<32x16x16xf32, #tpu.memory_space<vmem>>, vector<1x16x16xf32>
    %28 = vector.shape_cast %27 : vector<1x16x16xf32> to vector<16x16xf32>
    %c112 = arith.constant 112 : index
    %c112_32 = arith.constant 112 : index
    %29 = vector.load %arg8[%c112, %c112_32] : memref<512x512xf32, #tpu.memory_space<vmem>>, vector<16x16xf32>
    tpu.vector_store %arg8[%c112, %c112_32], %28 {strides = array<i32>} : memref<512x512xf32, #tpu.memory_space<vmem>>, vector<16x16xf32>,
    %c8 = arith.constant 8 : index
    %c0_33 = arith.constant 0 : index
    %c0_34 = arith.constant 0 : index
    %30 = vector.load %arg1[%c8, %c0_33, %c0_34] : memref<32x16x16xf32, #tpu.memory_space<vmem>>, vector<1x16x16xf32>
    %31 = vector.shape_cast %30 : vector<1x16x16xf32> to vector<16x16xf32>
    %c128 = arith.constant 128 : index
    %c128_35 = arith.constant 128 : index
    %32 = vector.load %arg8[%c128, %c128_35] : memref<512x512xf32, #tpu.memory_space<vmem>>, vector<16x16xf32>
    tpu.vector_store %arg8[%c128, %c128_35], %31 {strides = array<i32>} : memref<512x512xf32, #tpu.memory_space<vmem>>, vector<16x16xf32>,
    %c9 = arith.constant 9 : index
    %c0_36 = arith.constant 0 : index
    %c0_37 = arith.constant 0 : index
    %33 = vector.load %arg1[%c9, %c0_36, %c0_37] : memref<32x16x16xf32, #tpu.memory_space<vmem>>, vector<1x16x16xf32>
    %34 = vector.shape_cast %33 : vector<1x16x16xf32> to vector<16x16xf32>
    %c144 = arith.constant 144 : index
    %c144_38 = arith.constant 144 : index
    %35 = vector.load %arg8[%c144, %c144_38] : memref<512x512xf32, #tpu.memory_space<vmem>>, vector<16x16xf32>
    tpu.vector_store %arg8[%c144, %c144_38], %34 {strides = array<i32>} : memref<512x512xf32, #tpu.memory_space<vmem>>, vector<16x16xf32>,
    %c10 = arith.constant 10 : index
    %c0_39 = arith.constant 0 : index
    %c0_40 = arith.constant 0 : index
    %36 = vector.load %arg1[%c10, %c0_39, %c0_40] : memref<32x16x16xf32, #tpu.memory_space<vmem>>, vector<1x16x16xf32>
    %37 = vector.shape_cast %36 : vector<1x16x16xf32> to vector<16x16xf32>
    %c160 = arith.constant 160 : index
    %c160_41 = arith.constant 160 : index
    %38 = vector.load %arg8[%c160, %c160_41] : memref<512x512xf32, #tpu.memory_space<vmem>>, vector<16x16xf32>
    tpu.vector_store %arg8[%c160, %c160_41], %37 {strides = array<i32>} : memref<512x512xf32, #tpu.memory_space<vmem>>, vector<16x16xf32>,
    %c11 = arith.constant 11 : index
    %c0_42 = arith.constant 0 : index
    %c0_43 = arith.constant 0 : index
    %39 = vector.load %arg1[%c11, %c0_42, %c0_43] : memref<32x16x16xf32, #tpu.memory_space<vmem>>, vector<1x16x16xf32>
    %40 = vector.shape_cast %39 : vector<1x16x16xf32> to vector<16x16xf32>
    %c176 = arith.constant 176 : index
    %c176_44 = arith.constant 176 : index
    %41 = vector.load %arg8[%c176, %c176_44] : memref<512x512xf32, #tpu.memory_space<vmem>>, vector<16x16xf32>
    tpu.vector_store %arg8[%c176, %c176_44], %40 {strides = array<i32>} : memref<512x512xf32, #tpu.memory_space<vmem>>, vector<16x16xf32>,
    %c12 = arith.constant 12 : index
    %c0_45 = arith.constant 0 : index
    %c0_46 = arith.constant 0 : index
    %42 = vector.load %arg1[%c12, %c0_45, %c0_46] : memref<32x16x16xf32, #tpu.memory_space<vmem>>, vector<1x16x16xf32>
    %43 = vector.shape_cast %42 : vector<1x16x16xf32> to vector<16x16xf32>
    %c192 = arith.constant 192 : index
    %c192_47 = arith.constant 192 : index
    %44 = vector.load %arg8[%c192, %c192_47] : memref<512x512xf32, #tpu.memory_space<vmem>>, vector<16x16xf32>
    tpu.vector_store %arg8[%c192, %c192_47], %43 {strides = array<i32>} : memref<512x512xf32, #tpu.memory_space<vmem>>, vector<16x16xf32>,
    %c13 = arith.constant 13 : index
    %c0_48 = arith.constant 0 : index
    %c0_49 = arith.constant 0 : index
    %45 = vector.load %arg1[%c13, %c0_48, %c0_49] : memref<32x16x16xf32, #tpu.memory_space<vmem>>, vector<1x16x16xf32>
    %46 = vector.shape_cast %45 : vector<1x16x16xf32> to vector<16x16xf32>
    %c208 = arith.constant 208 : index
    %c208_50 = arith.constant 208 : index
    %47 = vector.load %arg8[%c208, %c208_50] : memref<512x512xf32, #tpu.memory_space<vmem>>, vector<16x16xf32>
    tpu.vector_store %arg8[%c208, %c208_50], %46 {strides = array<i32>} : memref<512x512xf32, #tpu.memory_space<vmem>>, vector<16x16xf32>,
    %c14 = arith.constant 14 : index
    %c0_51 = arith.constant 0 : index
    %c0_52 = arith.constant 0 : index
    %48 = vector.load %arg1[%c14, %c0_51, %c0_52] : memref<32x16x16xf32, #tpu.memory_space<vmem>>, vector<1x16x16xf32>
    %49 = vector.shape_cast %48 : vector<1x16x16xf32> to vector<16x16xf32>
    %c224 = arith.constant 224 : index
    %c224_53 = arith.constant 224 : index
    %50 = vector.load %arg8[%c224, %c224_53] : memref<512x512xf32, #tpu.memory_space<vmem>>, vector<16x16xf32>
    tpu.vector_store %arg8[%c224, %c224_53], %49 {strides = array<i32>} : memref<512x512xf32, #tpu.memory_space<vmem>>, vector<16x16xf32>,
    %c15 = arith.constant 15 : index
    %c0_54 = arith.constant 0 : index
    %c0_55 = arith.constant 0 : index
    %51 = vector.load %arg1[%c15, %c0_54, %c0_55] : memref<32x16x16xf32, #tpu.memory_space<vmem>>, vector<1x16x16xf32>
    %52 = vector.shape_cast %51 : vector<1x16x16xf32> to vector<16x16xf32>
    %c240 = arith.constant 240 : index
    %c240_56 = arith.constant 240 : index
    %53 = vector.load %arg8[%c240, %c240_56] : memref<512x512xf32, #tpu.memory_space<vmem>>, vector<16x16xf32>
    tpu.vector_store %arg8[%c240, %c240_56], %52 {strides = array<i32>} : memref<512x512xf32, #tpu.memory_space<vmem>>, vector<16x16xf32>,
    %c16_57 = arith.constant 16 : index
    %c0_58 = arith.constant 0 : index
    %c0_59 = arith.constant 0 : index
    %54 = vector.load %arg1[%c16_57, %c0_58, %c0_59] : memref<32x16x16xf32, #tpu.memory_space<vmem>>, vector<1x16x16xf32>
    %55 = vector.shape_cast %54 : vector<1x16x16xf32> to vector<16x16xf32>
    %c256 = arith.constant 256 : index
    %c256_60 = arith.constant 256 : index
    %56 = vector.load %arg8[%c256, %c256_60] : memref<512x512xf32, #tpu.memory_space<vmem>>, vector<16x16xf32>
    tpu.vector_store %arg8[%c256, %c256_60], %55 {strides = array<i32>} : memref<512x512xf32, #tpu.memory_space<vmem>>, vector<16x16xf32>,
    %c17 = arith.constant 17 : index
    %c0_61 = arith.constant 0 : index
    %c0_62 = arith.constant 0 : index
    %57 = vector.load %arg1[%c17, %c0_61, %c0_62] : memref<32x16x16xf32, #tpu.memory_space<vmem>>, vector<1x16x16xf32>
    %58 = vector.shape_cast %57 : vector<1x16x16xf32> to vector<16x16xf32>
    %c272 = arith.constant 272 : index
    %c272_63 = arith.constant 272 : index
    %59 = vector.load %arg8[%c272, %c272_63] : memref<512x512xf32, #tpu.memory_space<vmem>>, vector<16x16xf32>
    tpu.vector_store %arg8[%c272, %c272_63], %58 {strides = array<i32>} : memref<512x512xf32, #tpu.memory_space<vmem>>, vector<16x16xf32>,
    %c18 = arith.constant 18 : index
    %c0_64 = arith.constant 0 : index
    %c0_65 = arith.constant 0 : index
    %60 = vector.load %arg1[%c18, %c0_64, %c0_65] : memref<32x16x16xf32, #tpu.memory_space<vmem>>, vector<1x16x16xf32>
    %61 = vector.shape_cast %60 : vector<1x16x16xf32> to vector<16x16xf32>
    %c288 = arith.constant 288 : index
    %c288_66 = arith.constant 288 : index
    %62 = vector.load %arg8[%c288, %c288_66] : memref<512x512xf32, #tpu.memory_space<vmem>>, vector<16x16xf32>
    tpu.vector_store %arg8[%c288, %c288_66], %61 {strides = array<i32>} : memref<512x512xf32, #tpu.memory_space<vmem>>, vector<16x16xf32>,
    %c19 = arith.constant 19 : index
    %c0_67 = arith.constant 0 : index
    %c0_68 = arith.constant 0 : index
    %63 = vector.load %arg1[%c19, %c0_67, %c0_68] : memref<32x16x16xf32, #tpu.memory_space<vmem>>, vector<1x16x16xf32>
    %64 = vector.shape_cast %63 : vector<1x16x16xf32> to vector<16x16xf32>
    %c304 = arith.constant 304 : index
    %c304_69 = arith.constant 304 : index
    %65 = vector.load %arg8[%c304, %c304_69] : memref<512x512xf32, #tpu.memory_space<vmem>>, vector<16x16xf32>
    tpu.vector_store %arg8[%c304, %c304_69], %64 {strides = array<i32>} : memref<512x512xf32, #tpu.memory_space<vmem>>, vector<16x16xf32>,
    %c20 = arith.constant 20 : index
    %c0_70 = arith.constant 0 : index
    %c0_71 = arith.constant 0 : index
    %66 = vector.load %arg1[%c20, %c0_70, %c0_71] : memref<32x16x16xf32, #tpu.memory_space<vmem>>, vector<1x16x16xf32>
    %67 = vector.shape_cast %66 : vector<1x16x16xf32> to vector<16x16xf32>
    %c320 = arith.constant 320 : index
    %c320_72 = arith.constant 320 : index
    %68 = vector.load %arg8[%c320, %c320_72] : memref<512x512xf32, #tpu.memory_space<vmem>>, vector<16x16xf32>
    tpu.vector_store %arg8[%c320, %c320_72], %67 {strides = array<i32>} : memref<512x512xf32, #tpu.memory_space<vmem>>, vector<16x16xf32>,
    %c21 = arith.constant 21 : index
    %c0_73 = arith.constant 0 : index
    %c0_74 = arith.constant 0 : index
    %69 = vector.load %arg1[%c21, %c0_73, %c0_74] : memref<32x16x16xf32, #tpu.memory_space<vmem>>, vector<1x16x16xf32>
    %70 = vector.shape_cast %69 : vector<1x16x16xf32> to vector<16x16xf32>
    %c336 = arith.constant 336 : index
    %c336_75 = arith.constant 336 : index
    %71 = vector.load %arg8[%c336, %c336_75] : memref<512x512xf32, #tpu.memory_space<vmem>>, vector<16x16xf32>
    tpu.vector_store %arg8[%c336, %c336_75], %70 {strides = array<i32>} : memref<512x512xf32, #tpu.memory_space<vmem>>, vector<16x16xf32>,
    %c22 = arith.constant 22 : index
    %c0_76 = arith.constant 0 : index
    %c0_77 = arith.constant 0 : index
    %72 = vector.load %arg1[%c22, %c0_76, %c0_77] : memref<32x16x16xf32, #tpu.memory_space<vmem>>, vector<1x16x16xf32>
    %73 = vector.shape_cast %72 : vector<1x16x16xf32> to vector<16x16xf32>
    %c352 = arith.constant 352 : index
    %c352_78 = arith.constant 352 : index
    %74 = vector.load %arg8[%c352, %c352_78] : memref<512x512xf32, #tpu.memory_space<vmem>>, vector<16x16xf32>
    tpu.vector_store %arg8[%c352, %c352_78], %73 {strides = array<i32>} : memref<512x512xf32, #tpu.memory_space<vmem>>, vector<16x16xf32>,
    %c23 = arith.constant 23 : index
    %c0_79 = arith.constant 0 : index
    %c0_80 = arith.constant 0 : index
    %75 = vector.load %arg1[%c23, %c0_79, %c0_80] : memref<32x16x16xf32, #tpu.memory_space<vmem>>, vector<1x16x16xf32>
    %76 = vector.shape_cast %75 : vector<1x16x16xf32> to vector<16x16xf32>
    %c368 = arith.constant 368 : index
    %c368_81 = arith.constant 368 : index
    %77 = vector.load %arg8[%c368, %c368_81] : memref<512x512xf32, #tpu.memory_space<vmem>>, vector<16x16xf32>
    tpu.vector_store %arg8[%c368, %c368_81], %76 {strides = array<i32>} : memref<512x512xf32, #tpu.memory_space<vmem>>, vector<16x16xf32>,
    %c24 = arith.constant 24 : index
    %c0_82 = arith.constant 0 : index
    %c0_83 = arith.constant 0 : index
    %78 = vector.load %arg1[%c24, %c0_82, %c0_83] : memref<32x16x16xf32, #tpu.memory_space<vmem>>, vector<1x16x16xf32>
    %79 = vector.shape_cast %78 : vector<1x16x16xf32> to vector<16x16xf32>
    %c384 = arith.constant 384 : index
    %c384_84 = arith.constant 384 : index
    %80 = vector.load %arg8[%c384, %c384_84] : memref<512x512xf32, #tpu.memory_space<vmem>>, vector<16x16xf32>
    tpu.vector_store %arg8[%c384, %c384_84], %79 {strides = array<i32>} : memref<512x512xf32, #tpu.memory_space<vmem>>, vector<16x16xf32>,
    %c25 = arith.constant 25 : index
    %c0_85 = arith.constant 0 : index
    %c0_86 = arith.constant 0 : index
    %81 = vector.load %arg1[%c25, %c0_85, %c0_86] : memref<32x16x16xf32, #tpu.memory_space<vmem>>, vector<1x16x16xf32>
    %82 = vector.shape_cast %81 : vector<1x16x16xf32> to vector<16x16xf32>
    %c400 = arith.constant 400 : index
    %c400_87 = arith.constant 400 : index
    %83 = vector.load %arg8[%c400, %c400_87] : memref<512x512xf32, #tpu.memory_space<vmem>>, vector<16x16xf32>
    tpu.vector_store %arg8[%c400, %c400_87], %82 {strides = array<i32>} : memref<512x512xf32, #tpu.memory_space<vmem>>, vector<16x16xf32>,
    %c26 = arith.constant 26 : index
    %c0_88 = arith.constant 0 : index
    %c0_89 = arith.constant 0 : index
    %84 = vector.load %arg1[%c26, %c0_88, %c0_89] : memref<32x16x16xf32, #tpu.memory_space<vmem>>, vector<1x16x16xf32>
    %85 = vector.shape_cast %84 : vector<1x16x16xf32> to vector<16x16xf32>
    %c416 = arith.constant 416 : index
    %c416_90 = arith.constant 416 : index
    %86 = vector.load %arg8[%c416, %c416_90] : memref<512x512xf32, #tpu.memory_space<vmem>>, vector<16x16xf32>
    tpu.vector_store %arg8[%c416, %c416_90], %85 {strides = array<i32>} : memref<512x512xf32, #tpu.memory_space<vmem>>, vector<16x16xf32>,
    %c27 = arith.constant 27 : index
    %c0_91 = arith.constant 0 : index
    %c0_92 = arith.constant 0 : index
    %87 = vector.load %arg1[%c27, %c0_91, %c0_92] : memref<32x16x16xf32, #tpu.memory_space<vmem>>, vector<1x16x16xf32>
    %88 = vector.shape_cast %87 : vector<1x16x16xf32> to vector<16x16xf32>
    %c432 = arith.constant 432 : index
    %c432_93 = arith.constant 432 : index
    %89 = vector.load %arg8[%c432, %c432_93] : memref<512x512xf32, #tpu.memory_space<vmem>>, vector<16x16xf32>
    tpu.vector_store %arg8[%c432, %c432_93], %88 {strides = array<i32>} : memref<512x512xf32, #tpu.memory_space<vmem>>, vector<16x16xf32>,
    %c28 = arith.constant 28 : index
    %c0_94 = arith.constant 0 : index
    %c0_95 = arith.constant 0 : index
    %90 = vector.load %arg1[%c28, %c0_94, %c0_95] : memref<32x16x16xf32, #tpu.memory_space<vmem>>, vector<1x16x16xf32>
    %91 = vector.shape_cast %90 : vector<1x16x16xf32> to vector<16x16xf32>
    %c448 = arith.constant 448 : index
    %c448_96 = arith.constant 448 : index
    %92 = vector.load %arg8[%c448, %c448_96] : memref<512x512xf32, #tpu.memory_space<vmem>>, vector<16x16xf32>
    tpu.vector_store %arg8[%c448, %c448_96], %91 {strides = array<i32>} : memref<512x512xf32, #tpu.memory_space<vmem>>, vector<16x16xf32>,
    %c29 = arith.constant 29 : index
    %c0_97 = arith.constant 0 : index
    %c0_98 = arith.constant 0 : index
    %93 = vector.load %arg1[%c29, %c0_97, %c0_98] : memref<32x16x16xf32, #tpu.memory_space<vmem>>, vector<1x16x16xf32>
    %94 = vector.shape_cast %93 : vector<1x16x16xf32> to vector<16x16xf32>
    %c464 = arith.constant 464 : index
    %c464_99 = arith.constant 464 : index
    %95 = vector.load %arg8[%c464, %c464_99] : memref<512x512xf32, #tpu.memory_space<vmem>>, vector<16x16xf32>
    tpu.vector_store %arg8[%c464, %c464_99], %94 {strides = array<i32>} : memref<512x512xf32, #tpu.memory_space<vmem>>, vector<16x16xf32>,
    %c30 = arith.constant 30 : index
    %c0_100 = arith.constant 0 : index
    %c0_101 = arith.constant 0 : index
    %96 = vector.load %arg1[%c30, %c0_100, %c0_101] : memref<32x16x16xf32, #tpu.memory_space<vmem>>, vector<1x16x16xf32>
    %97 = vector.shape_cast %96 : vector<1x16x16xf32> to vector<16x16xf32>
    %c480 = arith.constant 480 : index
    %c480_102 = arith.constant 480 : index
    %98 = vector.load %arg8[%c480, %c480_102] : memref<512x512xf32, #tpu.memory_space<vmem>>, vector<16x16xf32>
    tpu.vector_store %arg8[%c480, %c480_102], %97 {strides = array<i32>} : memref<512x512xf32, #tpu.memory_space<vmem>>, vector<16x16xf32>,
    %c31 = arith.constant 31 : index
    %c0_103 = arith.constant 0 : index
    %c0_104 = arith.constant 0 : index
    %99 = vector.load %arg1[%c31, %c0_103, %c0_104] : memref<32x16x16xf32, #tpu.memory_space<vmem>>, vector<1x16x16xf32>
    %100 = vector.shape_cast %99 : vector<1x16x16xf32> to vector<16x16xf32>
    %c496 = arith.constant 496 : index
    %c496_105 = arith.constant 496 : index
    %101 = vector.load %arg8[%c496, %c496_105] : memref<512x512xf32, #tpu.memory_space<vmem>>, vector<16x16xf32>
    tpu.vector_store %arg8[%c496, %c496_105], %100 {strides = array<i32>} : memref<512x512xf32, #tpu.memory_space<vmem>>, vector<16x16xf32>,
    %c0_106 = arith.constant 0 : index
    %c0_107 = arith.constant 0 : index
    %102 = vector.load %arg8[%c0_106, %c0_107] : memref<512x512xf32, #tpu.memory_space<vmem>>, vector<512x512xf32>
    %cst_108 = arith.constant dense<0.000000e+00> : vector<512x64xf32>
    %103 = tpu.matmul %102, %3, %cst_108 {dimension_numbers = #tpu.dot_dimension_numbers<[1], [0], [0], [1], [0, 0, 1, 1], [], []>} : vector<512x512xf32>, vector<512x64xf32>, vector<512x64xf32> -> vector<512x64xf32>
    %c0_109 = arith.constant 0 : index
    %c0_110 = arith.constant 0 : index
    %104 = vector.load %arg4[%c0_109, %c0_110] : memref<1x64xf32, #tpu.memory_space<vmem>>, vector<1x64xf32>
    %105 = vector.broadcast %104 : vector<1x64xf32> to vector<512x64xf32>
    %106 = arith.addf %103, %105 : vector<512x64xf32>
    %cst_111 = arith.constant 0.000000e+00 : f32
    %107 = vector.broadcast %cst_111 : f32 to vector<512x64xf32>
    %108 = arith.maximumf %106, %107 : vector<512x64xf32>
    %c0_112 = arith.constant 0 : index
    %c0_113 = arith.constant 0 : index
    %c0_114 = arith.constant 0 : index
    %109 = vector.load %arg1[%c0_112, %c0_113, %c0_114] : memref<32x16x16xf32, #tpu.memory_space<vmem>>, vector<32x16x16xf32>
    %cst_115 = arith.constant dense<0.000000e+00> : vector<32x16xf32>
    %110 = vector.multi_reduction <add>, %109, %cst_115 [1] : vector<32x16x16xf32> to vector<32x16xf32>
    %111 = vector.shape_cast %110 : vector<32x16xf32> to vector<32x16x1xf32>
    %112 = vector.shape_cast %108 : vector<512x64xf32> to vector<32x16x64xf32>
    %113 = vector.broadcast %111 : vector<32x16x1xf32> to vector<32x16x64xf32>
    %114 = arith.mulf %113, %112 : vector<32x16x64xf32>
    %cst_116 = arith.constant dense<0.000000e+00> : vector<32x64xf32>
    %115 = vector.multi_reduction <add>, %114, %cst_116 [1] : vector<32x16x64xf32> to vector<32x64xf32>
    %c0_117 = arith.constant 0 : index
    %c0_118 = arith.constant 0 : index
    %116 = vector.load %arg5[%c0_117, %c0_118] : memref<64x128xf32, #tpu.memory_space<vmem>>, vector<64x128xf32>
    %cst_119 = arith.constant dense<0.000000e+00> : vector<32x128xf32>
    %117 = tpu.matmul %115, %116, %cst_119 {dimension_numbers = #tpu.dot_dimension_numbers<[1], [0], [0], [1], [0, 0, 1, 1], [], []>} : vector<32x64xf32>, vector<64x128xf32>, vector<32x128xf32> -> vector<32x128xf32>
    %c0_120 = arith.constant 0 : index
    %c0_121 = arith.constant 0 : index
    %118 = vector.load %arg6[%c0_120, %c0_121] : memref<1x128xf32, #tpu.memory_space<vmem>>, vector<1x128xf32>
    %cst_122 = arith.constant 1.600000e+01 : f32
    %119 = vector.broadcast %cst_122 : f32 to vector<1x128xf32>
    %120 = arith.mulf %119, %118 : vector<1x128xf32>
    %121 = vector.broadcast %120 : vector<1x128xf32> to vector<32x128xf32>
    %122 = arith.addf %117, %121 : vector<32x128xf32>
    %123 = tpu.iota {dimensions = array<i32: 1>} : vector<32x128xi32>
    %c64_i32 = arith.constant 64 : i32
    %124 = vector.broadcast %c64_i32 : i32 to vector<32x128xi32>
    %125 = arith.cmpi sge, %123, %124 : vector<32x128xi32>
    %126 = math.tanh %122 : vector<32x128xf32>
    %127 = arith.select %125, %126, %122 : vector<32x128xi1>, vector<32x128xf32>
    %c0_123 = arith.constant 0 : index
    %c0_124 = arith.constant 0 : index
    %128 = vector.load %arg7[%c0_123, %c0_124] : memref<32x128xf32, #tpu.memory_space<vmem>>, vector<32x128xf32>
    tpu.vector_store %arg7[%c0_123, %c0_124], %127 {strides = array<i32>} : memref<32x128xf32, #tpu.memory_space<vmem>>, vector<32x128xf32>,
    return
  }
  func.func @transform_0(%arg0: i32) -> (i32, i32, i32) {
    %c0_i32 = arith.constant 0 : i32
    %c0_i32_0 = arith.constant 0 : i32
    %c0_i32_1 = arith.constant 0 : i32
    return %arg0, %c0_i32, %c0_i32_0 : i32, i32, i32
  }
  func.func @transform_1(%arg0: i32) -> (i32, i32, i32) {
    %c0_i32 = arith.constant 0 : i32
    %c0_i32_0 = arith.constant 0 : i32
    %c0_i32_1 = arith.constant 0 : i32
    return %arg0, %c0_i32, %c0_i32_0 : i32, i32, i32
  }
  func.func @transform_2(%arg0: i32) -> (i32, i32) {
    %c0_i32 = arith.constant 0 : i32
    %c0_i32_0 = arith.constant 0 : i32
    %c0_i32_1 = arith.constant 0 : i32
    return %c0_i32, %c0_i32_0 : i32, i32
  }
  func.func @transform_3(%arg0: i32) -> (i32, i32) {
    %c0_i32 = arith.constant 0 : i32
    %c0_i32_0 = arith.constant 0 : i32
    %c0_i32_1 = arith.constant 0 : i32
    return %c0_i32, %c0_i32_0 : i32, i32
  }
  func.func @transform_4(%arg0: i32) -> (i32, i32) {
    %c0_i32 = arith.constant 0 : i32
    %c0_i32_0 = arith.constant 0 : i32
    %c0_i32_1 = arith.constant 0 : i32
    return %c0_i32, %c0_i32_0 : i32, i32
  }
  func.func @transform_5(%arg0: i32) -> (i32, i32) {
    %c0_i32 = arith.constant 0 : i32
    %c0_i32_0 = arith.constant 0 : i32
    %c0_i32_1 = arith.constant 0 : i32
    return %c0_i32, %c0_i32_0 : i32, i32
  }
  func.func @transform_6(%arg0: i32) -> (i32, i32) {
    %c0_i32 = arith.constant 0 : i32
    %c0_i32_0 = arith.constant 0 : i32
    return %arg0, %c0_i32 : i32, i32
  }
}

</mosaic_0001>

<bundles_post_ra>
// kernel: tpu_custom_call.1
= control target key start
LH: loop header
LB: loop body
LE: loop exit
PB: predicated region body
PF: predicated region fallthrough
CT: control target
= control target key end

     0   :  { %11 = vsyncpa [#allocation4], 0  ;;  %s5717_s0 = inlined_call_operand.vmem [shape: f32[64,16,16], index: 0, kind: input, shape index: {}]   ;;  %s5718_s1 = inlined_call_operand.vmem [shape: f32[64,16,128], index: 1, kind: input, shape index: {}]   ;;  %s5719_s2 = inlined_call_operand.vmem [shape: f32[128,64], index: 2, kind: input, shape index: {}]   ;;  %s5720_s3 = inlined_call_operand.vmem [shape: f32[1,64], index: 3, kind: input, shape index: {}]   ;;  %s5721_s4 = inlined_call_operand.vmem [shape: f32[64,128], index: 4, kind: input, shape index: {}]   ;;  %s5722_s5 = inlined_call_operand.vmem [shape: f32[1,128], index: 5, kind: input, shape index: {}]   ;;  %s5723_s6 = inlined_call_operand.hbm [shape: f32[64,128], index: 6, kind: output, shape index: {}]  }
   0x1   :  { %13 = vsyncpa [#allocation4 + $0x1], 0  ;;  %s4243_s21 = smov 0   ;;  %s4245_s22 = smov 0  }
   0x2   :  { %s4247_s23 = smov 0   ;;  %s4249_s24 = smov 0  }
   0x3 LB: > { %s4264_s25 = sadd.s32 4294967295, %s4195_s24   ;;  %s3698_s26 = sadd.s32 4294967294, %s4195_s24   ;;  %s4195_s24 = sphi %s4249_s24, %s5755_s24   ;;  %s4191_s23 = sphi %s4247_s23, %s5754_s23   ;;  %s4187_s22 = sphi %s4245_s22, %s5753_s22   ;;  %s4183_s21 = sphi %s4243_s21, %s5752_s21  }
   0x4   : > { %s4268_s27 = sadd.s32 1, %s4195_s24   ;;  %s162_s28 = sadd.s32 1, %s4191_s23 }
   0x5   : > { %s159_s29 = ssub.s32 %s4195_s24, %s4268_s27  ;;  %p172_p0 = scmp.ne.s32.totalorder %s4191_s23, %s4187_s22 }
   0x6   : > { %p160_p1 = scmp.eq.s32.totalorder %s159_s29, 0  ;;  %p173_p2 = scmp.eq.s32.totalorder %s4264_s25, 1 }
   0x7   : > { %p178_p3 = scmp.ne.s32.totalorder %s4187_s22, %s4183_s21  ;;  %p179_p4 = scmp.eq.s32.totalorder %s3698_s26, 1 }
   0x8   : > { %s4279_s30 = scalar_select %p160_p1, %s4191_s23, %s162_s28  }
   0x9   : > { %p4281_p5 = por %p173_p2, %p172_p0  ;;  %p4285_p6 = por %p179_p4, %p178_p3 }
   0xa   : > { %p3701_p7 = scmp.ge.s32.totalorder %s4195_s24, 1  ;;  %p229_p8 = scmp.lt.s32.totalorder %s4195_s24, 3 }
   0xc   : > { %p230_p9 = pnand %p3701_p7, %p229_p8 }
   0xe   : > { %233 = sbr.rel (%p230_p9) target bundleno = 1032 (0x408), region = 44 }
  0x13   : > { %v360_v0 = vld [vmem:[%s5719_s2 + $0x78] sm:$0xff]  ;;  %v359_v1 = vld [vmem:[%s5719_s2 + $0x70] sm:$0xff]  ;;  %v358_v2 = vld [vmem:[%s5719_s2 + $0x68] sm:$0xff]  ;;  %s3703_s10 = sshll.u32 %s4264_s25, 5  ;;  %s4197_s19 = smov 16   ;;  %vm1004_vm0 = vcmask 130048  }
  0x14   : > { %3876 = vmatprep.subr.mxu0 %v360_v0  ;;  %4026 = vmatprep.subr.mxu1 %v360_v0  ;;  %v357_v3 = vld [vmem:[%s5719_s2 + $0x60] sm:$0xff]  ;;  %v356_v4 = vld [vmem:[%s5719_s2 + $0x58] sm:$0xff]  ;;  %v355_v5 = vld [vmem:[%s5719_s2 + $0x50] sm:$0xff]  ;;  %p267_p10 = scmp.lt.s32.totalorder %s3703_s10, 63  ;;  %s4198_s20 = smov 32   ;;  %vm1018_vm1 = vcmask 261248  }
  0x15   : > { %3877 = vmatpush3.msra.mxu0 %v360_v0  ;;  %4042 = vmatpush3.msra.mxu1 %v360_v0  ;;  %v354_v6 = vld [vmem:[%s5719_s2 + $0x48] sm:$0xff]  ;;  %v353_v7 = vld [vmem:[%s5719_s2 + $0x40] sm:$0xff]  ;;  %v352_v8 = vld [vmem:[%s5719_s2 + $0x38] sm:$0xff]  ;;  %s4199_s26 = smov 48   ;;  %s4200_s28 = smov 64   ;;  %vm1032_vm2 = vcmask 392448  }
  0x16   : > { %3878 = vmatprep.subr.mxu0 %v359_v1  ;;  %4027 = vmatprep.subr.mxu1 %v359_v1  ;;  %v351_v9 = vld [vmem:[%s5719_s2 + $0x30] sm:$0xff]  ;;  %v350_v10 = vld [vmem:[%s5719_s2 + $0x28] sm:$0xff]  ;;  %v349_v11 = vld [vmem:[%s5719_s2 + $0x20] sm:$0xff]  ;;  %s5757_s10 = smov (!%p267_p10, %s3703_s10), 63  ;;  %s4202_s9 = smov 96   ;;  %vm1046_vm3 = vcmask 523648  }
  0x17   : > { %3879 = vmatpush3.msra.mxu0 %v359_v1  ;;  %4043 = vmatpush3.msra.mxu1 %v359_v1  ;;  %v348_v12 = vld [vmem:[%s5719_s2 + $0x18] sm:$0xff]  ;;  %v347_v13 = vld [vmem:[%s5719_s2 + $0x10] sm:$0xff]  ;;  %s3781_s29 = sshll.u32 %s5757_s10, 4  ;;  %v346_v14 = vld [vmem:[%s5719_s2 + $0x8] sm:$0xff]  ;;  %s4203_s11 = smov 112   ;;  %vm1060_vm4 = vcmask 654848  }
  0x18   : > { %3880 = vmatprep.subr.mxu0 %v358_v2  ;;  %4028 = vmatprep.subr.mxu1 %v358_v2  ;;  %s4340_s14 = scalar_lea.vmem %s5718_s1, %s3781_s29  ;;  %v345_v15 = vld [vmem:[%s5719_s2] sm:$0xff]  ;;  %s4348_s18 = scalar_lea.vmem %s5717_s0, %s3781_s29  ;;  %vm1074_vm5 = vcmask 786048   ;;  %vm1088_vm6 = vcmask 917248   ;;  %vm1102_vm7 = vcmask 1048448   ;;  %vm3130_vm8 = vcmask 523264  }
  0x19   : > { %3881 = vmatpush3.msra.mxu0 %v358_v2  ;;  %4044 = vmatpush3.msra.mxu1 %v358_v2  ;;  %v281_v16 = vld [vmem:[%s4340_s14] sm:$0xff]  ;;  %v282_v18 = vld [vmem:[%s4340_s14 + $0x8] sm:$0xff]  ;;  %v283_v20 = vld [vmem:[%s4340_s14 + $0x10] sm:$0xff]  ;;  %s4201_s29 = smov 80   ;;  %vm3467_vm9 = vcmask 1041409   ;;  %vm3469_vm10 = vcmask 1042434  }
  0x1a   : > { %3882 = vmatprep.subr.mxu0 %v357_v3  ;;  %4029 = vmatprep.subr.mxu1 %v357_v3  ;;  %v313_v17 = vld [vmem:[%s4340_s14 + $0x100] sm:$0xff]  ;;  %v314_v19 = vld [vmem:[%s4340_s14 + $0x108] sm:$0xff]  ;;  %v315_v21 = vld [vmem:[%s4340_s14 + $0x110] sm:$0xff]  ;;  %vm3471_vm11 = vcmask 1043459   ;;  %vm3473_vm12 = vcmask 1044484   ;;  %vm3475_vm13 = vcmask 1045509  }
  0x1b   : > { %3883 = vmatpush3.msra.mxu0 %v357_v3  ;;  %4045 = vmatpush3.msra.mxu1 %v357_v3  ;;  %v3709_v22 = vld [vmem:[%s4348_s18 + $0x10] sm:$0xff]  ;;  %v3711_v23 = vld [vmem:[%s4348_s18 + $0x20] sm:$0xff]  ;;  %v284_v24 = vld [vmem:[%s4340_s14 + $0x18] sm:$0xff]  ;;  %vm3477_vm14 = vcmask 1046534   ;;  %vm3479_vm15 = vcmask 1047559   ;;  %s4205_s13 = smov [#allocation3]  }
  0x1c   : > { %3884 = vmatprep.subr.mxu0 %v356_v4  ;;  %4030 = vmatprep.subr.mxu1 %v356_v4  ;;  %v316_v25 = vld [vmem:[%s4340_s14 + $0x118] sm:$0xff]  ;;  %v285_v26 = vld [vmem:[%s4340_s14 + $0x20] sm:$0xff]  ;;  %v3712_v29 = vld [vmem:[%s4348_s18 + $0x28] sm:$0xff] }
  0x1d   : > { %3885 = vmatpush3.msra.mxu0 %v356_v4  ;;  %4046 = vmatpush3.msra.mxu1 %v356_v4  ;;  %v317_v27 = vld [vmem:[%s4340_s14 + $0x120] sm:$0xff]  ;;  %v3710_v28 = vld [vmem:[%s4348_s18 + $0x18] sm:$0xff]  ;;  %v286_v30 = vld [vmem:[%s4340_s14 + $0x28] sm:$0xff] }
  0x1e   : > { %3886 = vmatprep.subr.mxu0 %v355_v5  ;;  %4031 = vmatprep.subr.mxu1 %v355_v5  ;;  %v318_v31 = vld [vmem:[%s4340_s14 + $0x128] sm:$0xff]  ;;  %v287_v32 = vld [vmem:[%s4340_s14 + $0x30] sm:$0xff]  ;;  %v3714_v35 = vld [vmem:[%s4348_s18 + $0x38] sm:$0xff] }
  0x1f   : > { %3887 = vmatpush3.msra.mxu0 %v355_v5  ;;  %4047 = vmatpush3.msra.mxu1 %v355_v5  ;;  %v319_v33 = vld [vmem:[%s4340_s14 + $0x130] sm:$0xff]  ;;  %v288_v36 = vld [vmem:[%s4340_s14 + $0x38] sm:$0xff]  ;;  %v289_v38 = vld [vmem:[%s4340_s14 + $0x40] sm:$0xff] }
  0x20   : > { %3888 = vmatprep.subr.mxu0 %v354_v6  ;;  %4032 = vmatprep.subr.mxu1 %v354_v6  ;;  %v3713_v34 = vld [vmem:[%s4348_s18 + $0x30] sm:$0xff]  ;;  %v320_v37 = vld [vmem:[%s4340_s14 + $0x138] sm:$0xff]  ;;  %v321_v39 = vld [vmem:[%s4340_s14 + $0x140] sm:$0xff] }
  0x21   : > { %3889 = vmatpush3.msra.mxu0 %v354_v6  ;;  %4048 = vmatpush3.msra.mxu1 %v354_v6  ;;  %v290_v40 = vld [vmem:[%s4340_s14 + $0x48] sm:$0xff]  ;;  %v291_v42 = vld [vmem:[%s4340_s14 + $0x50] sm:$0xff]  ;;  %v292_v44 = vld [vmem:[%s4340_s14 + $0x58] sm:$0xff] }
  0x22   : > { %3890 = vmatprep.subr.mxu0 %v353_v7  ;;  %4033 = vmatprep.subr.mxu1 %v353_v7  ;;  %v322_v41 = vld [vmem:[%s4340_s14 + $0x148] sm:$0xff]  ;;  %v323_v43 = vld [vmem:[%s4340_s14 + $0x150] sm:$0xff]  ;;  %v324_v45 = vld [vmem:[%s4340_s14 + $0x158] sm:$0xff] }
  0x23   : > { %3891 = vmatpush3.msra.mxu0 %v353_v7  ;;  %4049 = vmatpush3.msra.mxu1 %v353_v7  ;;  %v293_v46 = vld [vmem:[%s4340_s14 + $0x60] sm:$0xff]  ;;  %v294_v48 = vld [vmem:[%s4340_s14 + $0x68] sm:$0xff]  ;;  %v295_v50 = vld [vmem:[%s4340_s14 + $0x70] sm:$0xff] }
  0x24   : > { %3892 = vmatprep.subr.mxu0 %v352_v8  ;;  %4034 = vmatprep.subr.mxu1 %v352_v8  ;;  %v325_v47 = vld [vmem:[%s4340_s14 + $0x160] sm:$0xff]  ;;  %v326_v49 = vld [vmem:[%s4340_s14 + $0x168] sm:$0xff]  ;;  %v327_v51 = vld [vmem:[%s4340_s14 + $0x170] sm:$0xff] }
  0x25   : > { %3893 = vmatpush3.msra.mxu0 %v352_v8  ;;  %4050 = vmatpush3.msra.mxu1 %v352_v8  ;;  %v296_v52 = vld [vmem:[%s4340_s14 + $0x78] sm:$0xff]  ;;  %v297_v54 = vld [vmem:[%s4340_s14 + $0x80] sm:$0xff]  ;;  %v298_v56 = vld [vmem:[%s4340_s14 + $0x88] sm:$0xff] }
  0x26   : > { %3894 = vmatprep.subr.mxu0 %v351_v9  ;;  %4035 = vmatprep.subr.mxu1 %v351_v9  ;;  %v328_v53 = vld [vmem:[%s4340_s14 + $0x178] sm:$0xff]  ;;  %v329_v55 = vld [vmem:[%s4340_s14 + $0x180] sm:$0xff]  ;;  %v330_v57 = vld [vmem:[%s4340_s14 + $0x188] sm:$0xff] }
  0x27   : > { %3895 = vmatpush3.msra.mxu0 %v351_v9  ;;  %4051 = vmatpush3.msra.mxu1 %v351_v9  ;;  %v299_v58 = vld [vmem:[%s4340_s14 + $0x90] sm:$0xff]  ;;  %v300_v60 = vld [vmem:[%s4340_s14 + $0x98] sm:$0xff]  ;;  %v301_v62 = vld [vmem:[%s4340_s14 + $0xa0] sm:$0xff] }
  0x28   : > { %3896 = vmatprep.subr.mxu0 %v350_v10  ;;  %4036 = vmatprep.subr.mxu1 %v350_v10  ;;  %v331_v59 = vld [vmem:[%s4340_s14 + $0x190] sm:$0xff]  ;;  %v332_v61 = vld [vmem:[%s4340_s14 + $0x198] sm:$0xff]  ;;  %v333_v63 = vld [vmem:[%s4340_s14 + $0x1a0] sm:$0xff] }
  0x29   : > { %3897 = vmatpush3.msra.mxu0 %v350_v10  ;;  %4052 = vmatpush3.msra.mxu1 %v350_v10  ;;  %v302_v0 = vld [vmem:[%s4340_s14 + $0xa8] sm:$0xff]  ;;  %v303_v2 = vld [vmem:[%s4340_s14 + $0xb0] sm:$0xff]  ;;  %v304_v4 = vld [vmem:[%s4340_s14 + $0xb8] sm:$0xff] }
  0x2a   : > { %3898 = vmatprep.subr.mxu0 %v349_v11  ;;  %4037 = vmatprep.subr.mxu1 %v349_v11  ;;  %v334_v1 = vld [vmem:[%s4340_s14 + $0x1a8] sm:$0xff]  ;;  %v335_v3 = vld [vmem:[%s4340_s14 + $0x1b0] sm:$0xff]  ;;  %v336_v5 = vld [vmem:[%s4340_s14 + $0x1b8] sm:$0xff] }
  0x2b   : > { %3899 = vmatpush3.msra.mxu0 %v349_v11  ;;  %4053 = vmatpush3.msra.mxu1 %v349_v11  ;;  %v305_v6 = vld [vmem:[%s4340_s14 + $0xc0] sm:$0xff]  ;;  %v306_v8 = vld [vmem:[%s4340_s14 + $0xc8] sm:$0xff]  ;;  %v307_v10 = vld [vmem:[%s4340_s14 + $0xd0] sm:$0xff] }
  0x2c   : > { %3900 = vmatprep.subr.mxu0 %v348_v12  ;;  %4038 = vmatprep.subr.mxu1 %v348_v12  ;;  %v337_v7 = vld [vmem:[%s4340_s14 + $0x1c0] sm:$0xff]  ;;  %v338_v9 = vld [vmem:[%s4340_s14 + $0x1c8] sm:$0xff]  ;;  %v339_v11 = vld [vmem:[%s4340_s14 + $0x1d0] sm:$0xff] }
  0x2d   : > { %3901 = vmatpush3.msra.mxu0 %v348_v12  ;;  %4054 = vmatpush3.msra.mxu1 %v348_v12  ;;  %v308_v12 = vld [vmem:[%s4340_s14 + $0xd8] sm:$0xff] }
  0x2e   : > { %3902 = vmatprep.subr.mxu0 %v347_v13  ;;  %4039 = vmatprep.subr.mxu1 %v347_v13 }
  0x2f   : > { %3903 = vmatpush3.msra.mxu0 %v347_v13  ;;  %4055 = vmatpush3.msra.mxu1 %v347_v13  ;;  %v340_v13 = vld [vmem:[%s4340_s14 + $0x1d8] sm:$0xff] }
  0x30   : > { %3904 = vmatprep.subr.mxu0 %v346_v14  ;;  %4040 = vmatprep.subr.mxu1 %v346_v14 }
  0x31   : > { %3905 = vmatpush3.msra.mxu0 %v346_v14  ;;  %4056 = vmatpush3.msra.mxu1 %v346_v14  ;;  %v309_v14 = vld [vmem:[%s4340_s14 + $0xe0] sm:$0xff] }
  0x32   : > { %3906 = vmatprep.subr.mxu0 %v345_v15  ;;  %4041 = vmatprep.subr.mxu1 %v345_v15 }
  0x33   : > { %3907 = vmatpush3.msra.mxu0 %v345_v15  ;;  %4057 = vmatpush3.msra.mxu1 %v345_v15  ;;  %v341_v15 = vld [vmem:[%s4340_s14 + $0x1e0] sm:$0xff] }
  0x34   : > { %3908 = vmatprep.mubr.f32.mxu0 %v281_v16  ;;  %3956 = vmatprep.mubr.f32.mxu1 %v313_v17  ;;  %v310_v16 = vld [vmem:[%s4340_s14 + $0xe8] sm:$0xff] }
  0x35   : > { %3909 = vmatmul.mubr.f32.vlgmr.msra.gmra.mxu0 %v282_v18  ;;  %3957 = vmatmul.mubr.f32.vlgmr.msra.gmra.mxu1 %v314_v19  ;;  %v342_v17 = vld [vmem:[%s4340_s14 + $0x1e8] sm:$0xff]  ;;  %v311_v18 = vld [vmem:[%s4340_s14 + $0xf0] sm:$0xff] }
  0x36   : > { %3911 = vmatprep.mubr.f32.mxu0 %v283_v20  ;;  %3959 = vmatprep.mubr.f32.mxu1 %v315_v21  ;;  %v343_v19 = vld [vmem:[%s4340_s14 + $0x1f0] sm:$0xff]  ;;  %v312_v20 = vld [vmem:[%s4340_s14 + $0xf8] sm:$0xff] }
  0x37   : > { %1012 = vrot.lane.b32.xlu0 %v3709_v22, %s4197_s19  ;;  %1026 = vrot.lane.b32.xlu1 %v3711_v23, %s4198_s20  ;;  %v344_v21 = vld [vmem:[%s4340_s14 + $0x1f8] sm:$0xff]  ;;  %v3715_v22 = vld [vmem:[%s4348_s18 + $0x40] sm:$0xff]  ;;  %s4139_s14 = sshll.u32 %s4205_s13, 4  ;;  %s4140_s14 = int_to_ptr.vmem [resolvable:$false] %s4139_s14 }
  0x38   : > { %v3716_v23 = vld [vmem:[%s4348_s18 + $0x48] sm:$0xff]  ;;  %s4141_s10 = scalar_lea.vmem %s4140_s14, 1024 }
  0x39   : > { %3912 = vmatmul.mubr.f32.gmra.mxu0 %v284_v24  ;;  %3960 = vmatmul.mubr.f32.gmra.mxu1 %v316_v25  ;;  %v3717_v24 = vld [vmem:[%s4348_s18 + $0x50] sm:$0xff]  ;;  %v3718_v25 = vld [vmem:[%s4348_s18 + $0x58] sm:$0xff] }
  0x3a   : > { %3914 = vmatprep.mubr.f32.mxu0 %v285_v26  ;;  %3962 = vmatprep.mubr.f32.mxu1 %v317_v27  ;;  %v3719_v26 = vld [vmem:[%s4348_s18 + $0x60] sm:$0xff]  ;;  %v3720_v27 = vld [vmem:[%s4348_s18 + $0x68] sm:$0xff] }
  0x3b   : > { %1014 = vrot.lane.b32.xlu0 %v3710_v28, %s4197_s19  ;;  %1028 = vrot.lane.b32.xlu1 %v3712_v29, %s4198_s20  ;;  %v3721_v28 = vld [vmem:[%s4348_s18 + $0x70] sm:$0xff]  ;;  %v4204_v29 = vmov 0.0  }
  0x3c   : > { %1656 = vmatprep.subr.mxu1 %v4204_v29  ;;  %746 = vst [vmem:[#allocation2] sm:$0xff] %v4204_v29  ;;  %747 = vst [vmem:[#allocation2 + $0x8] sm:$0xff] %v4204_v29  ;;  %2041 = vmatprep.subr.mxu0 %v4204_v29 }
  0x3d   : > { %3915 = vmatmul.mubr.f32.gmra.mxu0 %v286_v30  ;;  %3963 = vmatmul.mubr.f32.gmra.mxu1 %v318_v31  ;;  %750 = vst [vmem:[#allocation2 + $0x20] sm:$0xff] %v4204_v29  ;;  %754 = vst [vmem:[#allocation2 + $0x40] sm:$0xff] %v4204_v29  ;;  %v3722_v30 = vld [vmem:[%s4348_s18 + $0x78] sm:$0xff]  ;;  %v4512_v31 = vld [vmem:[%s4348_s18 + $0x90] sm:$0xff] }
  0x3e   : > { %3917 = vmatprep.mubr.f32.mxu0 %v287_v32  ;;  %3965 = vmatprep.mubr.f32.mxu1 %v319_v33  ;;  %758 = vst [vmem:[#allocation2 + $0x60] sm:$0xff] %v4204_v29  ;;  %762 = vst [vmem:[#allocation2 + $0x80] sm:$0xff] %v4204_v29  ;;  %v4517_v32 = vld [vmem:[%s4348_s18 + $0x98] sm:$0xff]  ;;  %v3727_v33 = vld [vmem:[%s4348_s18 + $0xa0] sm:$0xff] }
  0x3f   : > { %1040 = vrot.lane.b32.xlu0 %v3713_v34, %s4199_s26  ;;  %1042 = vrot.lane.b32.xlu1 %v3714_v35, %s4199_s26  ;;  %766 = vst [vmem:[#allocation2 + $0xa0] sm:$0xff] %v4204_v29  ;;  %770 = vst [vmem:[#allocation2 + $0xc0] sm:$0xff] %v4204_v29  ;;  %v3728_v34 = vld [vmem:[%s4348_s18 + $0xa8] sm:$0xff]  ;;  %v3729_v35 = vld [vmem:[%s4348_s18 + $0xb0] sm:$0xff] }
  0x40   : > { %774 = vst [vmem:[#allocation2 + $0xe0] sm:$0xff] %v4204_v29  ;;  %778 = vst [vmem:[#allocation2 + $0x100] sm:$0xff] %v4204_v29 }
  0x41   : > { %3918 = vmatmul.mubr.f32.gmra.mxu0 %v288_v36  ;;  %3966 = vmatmul.mubr.f32.gmra.mxu1 %v320_v37  ;;  %782 = vst [vmem:[#allocation2 + $0x120] sm:$0xff] %v4204_v29  ;;  %786 = vst [vmem:[#allocation2 + $0x140] sm:$0xff] %v4204_v29  ;;  %v3730_v36 = vld [vmem:[%s4348_s18 + $0xb8] sm:$0xff]  ;;  %v3731_v37 = vld [vmem:[%s4348_s18 + $0xc0] sm:$0xff] }
  0x42   : > { %3920 = vmatprep.mubr.f32.mxu0 %v289_v38  ;;  %3968 = vmatprep.mubr.f32.mxu1 %v321_v39  ;;  %790 = vst [vmem:[#allocation2 + $0x160] sm:$0xff] %v4204_v29  ;;  %794 = vst [vmem:[#allocation2 + $0x180] sm:$0xff] %v4204_v29  ;;  %v3732_v38 = vld [vmem:[%s4348_s18 + $0xc8] sm:$0xff]  ;;  %v3733_v39 = vld [vmem:[%s4348_s18 + $0xd0] sm:$0xff] }
  0x43   : > { %1054 = vrot.lane.b32.xlu0 %v3715_v22, %s4200_s28  ;;  %1056 = vrot.lane.b32.xlu1 %v3716_v23, %s4200_s28  ;;  %798 = vst [vmem:[#allocation2 + $0x1a0] sm:$0xff] %v4204_v29  ;;  %802 = vst [vmem:[#allocation2 + $0x1c0] sm:$0xff] %v4204_v29 }
  0x44   : > { %806 = vst [vmem:[#allocation2 + $0x1e0] sm:$0xff] %v4204_v29  ;;  %811 = vst [vmem:[#allocation2 + $0x208] sm:$0xff] %v4204_v29 }
  0x45   : > { %3921 = vmatmul.mubr.f32.gmra.mxu0 %v290_v40  ;;  %3969 = vmatmul.mubr.f32.gmra.mxu1 %v322_v41  ;;  %815 = vst [vmem:[#allocation2 + $0x228] sm:$0xff] %v4204_v29  ;;  %819 = vst [vmem:[#allocation2 + $0x248] sm:$0xff] %v4204_v29  ;;  %v3734_v40 = vld [vmem:[%s4348_s18 + $0xd8] sm:$0xff]  ;;  %v3735_v41 = vld [vmem:[%s4348_s18 + $0xe0] sm:$0xff] }
  0x46   : > { %3923 = vmatprep.mubr.f32.mxu0 %v291_v42  ;;  %3971 = vmatprep.mubr.f32.mxu1 %v323_v43  ;;  %823 = vst [vmem:[#allocation2 + $0x268] sm:$0xff] %v4204_v29  ;;  %827 = vst [vmem:[#allocation2 + $0x288] sm:$0xff] %v4204_v29  ;;  %v3736_v42 = vld [vmem:[%s4348_s18 + $0xe8] sm:$0xff]  ;;  %v3737_v43 = vld [vmem:[%s4348_s18 + $0xf0] sm:$0xff] }
  0x47   : > { %1068 = vrot.lane.b32.xlu0 %v3717_v24, %s4201_s29  ;;  %1070 = vrot.lane.b32.xlu1 %v3718_v25, %s4201_s29  ;;  %831 = vst [vmem:[#allocation2 + $0x2a8] sm:$0xff] %v4204_v29  ;;  %835 = vst [vmem:[#allocation2 + $0x2c8] sm:$0xff] %v4204_v29  ;;  %v3767_v25 = vld [vmem:[%s4348_s18 + $0x1e0] sm:$0xff] }
  0x48   : > { %839 = vst [vmem:[#allocation2 + $0x2e8] sm:$0xff] %v4204_v29  ;;  %843 = vst [vmem:[#allocation2 + $0x308] sm:$0xff] %v4204_v29 }
  0x49   : > { %3924 = vmatmul.mubr.f32.gmra.mxu0 %v292_v44  ;;  %3972 = vmatmul.mubr.f32.gmra.mxu1 %v324_v45  ;;  %847 = vst [vmem:[#allocation2 + $0x328] sm:$0xff] %v4204_v29  ;;  %851 = vst [vmem:[#allocation2 + $0x348] sm:$0xff] %v4204_v29  ;;  %v3738_v44 = vld [vmem:[%s4348_s18 + $0xf8] sm:$0xff]  ;;  %v4545_v45 = vld [vmem:[%s4348_s18 + $0x110] sm:$0xff] }
  0x4a   : > { %3926 = vmatprep.mubr.f32.mxu0 %v293_v46  ;;  %3974 = vmatprep.mubr.f32.mxu1 %v325_v47  ;;  %855 = vst [vmem:[#allocation2 + $0x368] sm:$0xff] %v4204_v29  ;;  %859 = vst [vmem:[#allocation2 + $0x388] sm:$0xff] %v4204_v29  ;;  %v4551_v46 = vld [vmem:[%s4348_s18 + $0x118] sm:$0xff]  ;;  %v4554_v47 = vld [vmem:[%s4348_s18 + $0x120] sm:$0xff] }
  0x4b   : > { %1082 = vrot.lane.b32.xlu0 %v3719_v26, %s4202_s9  ;;  %1084 = vrot.lane.b32.xlu1 %v3720_v27, %s4202_s9  ;;  %863 = vst [vmem:[#allocation2 + $0x3a8] sm:$0xff] %v4204_v29  ;;  %867 = vst [vmem:[#allocation2 + $0x3c8] sm:$0xff] %v4204_v29 }
  0x4c   : > { %871 = vst [vmem:[#allocation2 + $0x3e8] sm:$0xff] %v4204_v29  ;;  %876 = vst [vmem:[#allocation2 + $0x410] sm:$0xff] %v4204_v29 }
  0x4d   : > { %3927 = vmatmul.mubr.f32.gmra.mxu0 %v294_v48  ;;  %3975 = vmatmul.mubr.f32.gmra.mxu1 %v326_v49  ;;  %880 = vst [vmem:[#allocation2 + $0x430] sm:$0xff] %v4204_v29  ;;  %884 = vst [vmem:[#allocation2 + $0x450] sm:$0xff] %v4204_v29  ;;  %v4561_v48 = vld [vmem:[%s4348_s18 + $0x128] sm:$0xff]  ;;  %v4564_v49 = vld [vmem:[%s4348_s18 + $0x130] sm:$0xff] }
  0x4e   : > { %3929 = vmatprep.mubr.f32.mxu0 %v295_v50  ;;  %3977 = vmatprep.mubr.f32.mxu1 %v327_v51  ;;  %888 = vst [vmem:[#allocation2 + $0x470] sm:$0xff] %v4204_v29  ;;  %892 = vst [vmem:[#allocation2 + $0x490] sm:$0xff] %v4204_v29  ;;  %v4571_v50 = vld [vmem:[%s4348_s18 + $0x138] sm:$0xff]  ;;  %v3747_v51 = vld [vmem:[%s4348_s18 + $0x140] sm:$0xff] }
  0x4f   : > { %1096 = vrot.lane.b32.xlu0 %v3721_v28, %s4203_s11  ;;  %896 = vst [vmem:[#allocation2 + $0x4b0] sm:$0xff] %v4204_v29  ;;  %900 = vst [vmem:[#allocation2 + $0x4d0] sm:$0xff] %v4204_v29  ;;  %1098 = vrot.lane.b32.xlu1 %v3722_v30, %s4203_s11  ;;  %v2522_v28 = vld [vmem:[%s4348_s18 + $0x100] sm:$0xff]  ;;  %v2523_v30 = vld [vmem:[%s4348_s18 + $0x108] sm:$0xff] }
  0x50   : > { %904 = vst [vmem:[#allocation2 + $0x4f0] sm:$0xff] %v4204_v29  ;;  %908 = vst [vmem:[#allocation2 + $0x510] sm:$0xff] %v4204_v29 }
  0x51   : > { %3930 = vmatmul.mubr.f32.gmra.mxu0 %v296_v52  ;;  %3978 = vmatmul.mubr.f32.gmra.mxu1 %v328_v53  ;;  %912 = vst [vmem:[#allocation2 + $0x530] sm:$0xff] %v4204_v29  ;;  %916 = vst [vmem:[#allocation2 + $0x550] sm:$0xff] %v4204_v29  ;;  %v1002_v52 = vld [vmem:[%s4348_s18] sm:$0xff]  ;;  %v3748_v53 = vld [vmem:[%s4348_s18 + $0x148] sm:$0xff] }
  0x52   : > { %3932 = vmatprep.mubr.f32.mxu0 %v297_v54  ;;  %3980 = vmatprep.mubr.f32.mxu1 %v329_v55  ;;  %920 = vst [vmem:[#allocation2 + $0x570] sm:$0xff] %v4204_v29  ;;  %924 = vst [vmem:[#allocation2 + $0x590] sm:$0xff] %v4204_v29  ;;  %v3749_v54 = vld [vmem:[%s4348_s18 + $0x150] sm:$0xff]  ;;  %v1003_v55 = vld [vmem:[%s4348_s18 + $0x8] sm:$0xff] }
  0x53   : > { %928 = vst [vmem:[#allocation2 + $0x5b0] sm:$0xff] %v4204_v29  ;;  %932 = vst [vmem:[#allocation2 + $0x5d0] sm:$0xff] %v4204_v29  ;;  %1115 = vrot.lane.b32.xlu0 %v4512_v31, %s4197_s19  ;;  %1117 = vrot.lane.b32.xlu1 %v4517_v32, %s4197_s19 }
  0x54   : > { %936 = vst [vmem:[#allocation2 + $0x5f0] sm:$0xff] %v4204_v29  ;;  %941 = vst [vmem:[#allocation2 + $0x618] sm:$0xff] %v4204_v29 }
  0x55   : > { %3933 = vmatmul.mubr.f32.gmra.mxu0 %v298_v56  ;;  %3981 = vmatmul.mubr.f32.gmra.mxu1 %v330_v57  ;;  %945 = vst [vmem:[#allocation2 + $0x638] sm:$0xff] %v4204_v29  ;;  %949 = vst [vmem:[#allocation2 + $0x658] sm:$0xff] %v4204_v29  ;;  %v3750_v57 = vld [vmem:[%s4348_s18 + $0x158] sm:$0xff] }
  0x56   : > { %3935 = vmatprep.mubr.f32.mxu0 %v299_v58  ;;  %3983 = vmatprep.mubr.f32.mxu1 %v331_v59  ;;  %953 = vst [vmem:[#allocation2 + $0x678] sm:$0xff] %v4204_v29  ;;  %957 = vst [vmem:[#allocation2 + $0x698] sm:$0xff] %v4204_v29  ;;  %v3751_v58 = vld [vmem:[%s4348_s18 + $0x160] sm:$0xff]  ;;  %v3752_v59 = vld [vmem:[%s4348_s18 + $0x168] sm:$0xff] }
  0x57   : > { %961 = vst [vmem:[#allocation2 + $0x6b8] sm:$0xff] %v4204_v29  ;;  %965 = vst [vmem:[#allocation2 + $0x6d8] sm:$0xff] %v4204_v29  ;;  %1128 = vrot.lane.b32.xlu0 %v3727_v33, %s4198_s20  ;;  %1130 = vrot.lane.b32.xlu1 %v3728_v34, %s4198_s20  ;;  %v3768_v33 = vld [vmem:[%s4348_s18 + $0x1e8] sm:$0xff]  ;;  %v2698_v34 = vsel %vm1004_vm0, %v2522_v28, 0.0 }
  0x58   : > { %969 = vst [vmem:[#allocation2 + $0x6f8] sm:$0xff] %v4204_v29  ;;  %973 = vst [vmem:[#allocation2 + $0x718] sm:$0xff] %v4204_v29 }
  0x59   : > { %3936 = vmatmul.mubr.f32.gmra.mxu0 %v300_v60  ;;  %3984 = vmatmul.mubr.f32.gmra.mxu1 %v332_v61  ;;  %977 = vst [vmem:[#allocation2 + $0x738] sm:$0xff] %v4204_v29  ;;  %981 = vst [vmem:[#allocation2 + $0x758] sm:$0xff] %v4204_v29  ;;  %v3753_v61 = vld [vmem:[%s4348_s18 + $0x170] sm:$0xff] }
  0x5a   : > { %3938 = vmatprep.mubr.f32.mxu0 %v301_v62  ;;  %3986 = vmatprep.mubr.f32.mxu1 %v333_v63  ;;  %985 = vst [vmem:[#allocation2 + $0x778] sm:$0xff] %v4204_v29  ;;  %989 = vst [vmem:[#allocation2 + $0x798] sm:$0xff] %v4204_v29  ;;  %v3754_v63 = vld [vmem:[%s4348_s18 + $0x178] sm:$0xff] }
  0x5b   : > { %993 = vst [vmem:[#allocation2 + $0x7b8] sm:$0xff] %v4204_v29  ;;  %997 = vst [vmem:[#allocation2 + $0x7d8] sm:$0xff] %v4204_v29  ;;  %1141 = vrot.lane.b32.xlu0 %v3729_v35, %s4199_s26  ;;  %1143 = vrot.lane.b32.xlu1 %v3730_v36, %s4199_s26  ;;  %v2699_v35 = vsel %vm1004_vm0, %v2523_v30, 0.0 }
  0x5c   : > { %1001 = vst [vmem:[#allocation2 + $0x7f8] sm:$0xff] %v4204_v29  ;;  %1005 = vst.msk [vmem:[#allocation2] sm:$0xff] %vm1004_vm0, %v1002_v52 }
  0x5d   : > { %3939 = vmatmul.mubr.f32.gmra.mxu0 %v302_v0  ;;  %3987 = vmatmul.mubr.f32.gmra.mxu1 %v334_v1  ;;  %1006 = vst.msk [vmem:[#allocation2 + $0x20] sm:$0xff] %vm1004_vm0, %v1003_v55  ;;  %v4598_v0 = vld [vmem:[%s4348_s18 + $0x190] sm:$0xff]  ;;  %1204 = vst.msk [vmem:[#allocation2 + $0x410] sm:$0xff] %vm1004_vm0, %v2522_v28 }
  0x5e   : > { %3941 = vmatprep.mubr.f32.mxu0 %v303_v2  ;;  %3989 = vmatprep.mubr.f32.mxu1 %v335_v3  ;;  %v4605_v2 = vld [vmem:[%s4348_s18 + $0x198] sm:$0xff]  ;;  %v4608_v3 = vld [vmem:[%s4348_s18 + $0x1a0] sm:$0xff] }
  0x5f   : > { %1154 = vrot.lane.b32.xlu0 %v3731_v37, %s4200_s28  ;;  %1156 = vrot.lane.b32.xlu1 %v3732_v38, %s4200_s28  ;;  %v2700_v38 = vadd.f32 %v2699_v35, %v2698_v34 }
  0x61   : > { %3942 = vmatmul.mubr.f32.gmra.mxu0 %v304_v4  ;;  %3990 = vmatmul.mubr.f32.gmra.mxu1 %v336_v5  ;;  %v4616_v5 = vld [vmem:[%s4348_s18 + $0x1a8] sm:$0xff] }
  0x62   : > { %3944 = vmatprep.mubr.f32.mxu0 %v305_v6  ;;  %3992 = vmatprep.mubr.f32.mxu1 %v337_v7  ;;  %v4619_v6 = vld [vmem:[%s4348_s18 + $0x1b0] sm:$0xff] }
  0x63   : > { %1167 = vrot.lane.b32.xlu0 %v3733_v39, %s4201_s29  ;;  %1169 = vrot.lane.b32.xlu1 %v3734_v40, %s4201_s29  ;;  %v3769_v40 = vld [vmem:[%s4348_s18 + $0x1f0] sm:$0xff] }
  0x65   : > { %3945 = vmatmul.mubr.f32.gmra.mxu0 %v306_v8  ;;  %3993 = vmatmul.mubr.f32.gmra.mxu1 %v338_v9  ;;  %v4627_v8 = vld [vmem:[%s4348_s18 + $0x1b8] sm:$0xff]  ;;  %v3763_v9 = vld [vmem:[%s4348_s18 + $0x1c0] sm:$0xff] }
  0x66   : > { %3947 = vmatprep.mubr.f32.mxu0 %v307_v10  ;;  %3995 = vmatprep.mubr.f32.mxu1 %v339_v11  ;;  %v3764_v10 = vld [vmem:[%s4348_s18 + $0x1c8] sm:$0xff]  ;;  %v2554_v11 = vsel %vm1004_vm0, %v1002_v52, 0.0  ;;  %v2708_v52 = vsel %vm1004_vm0, %v4551_v46, 0.0 }
  0x67   : > { %1180 = vrot.lane.b32.xlu0 %v3735_v41, %s4202_s9  ;;  %1182 = vrot.lane.b32.xlu1 %v3736_v42, %s4202_s9 }
  0x69   : > { %3948 = vmatmul.mubr.f32.gmra.mxu0 %v308_v12  ;;  %3996 = vmatmul.mubr.f32.gmra.mxu1 %v340_v13  ;;  %v2555_v12 = vsel %vm1004_vm0, %v1003_v55, 0.0 }
  0x6a   : > { %3950 = vmatprep.mubr.f32.mxu0 %v309_v14  ;;  %3998 = vmatprep.mubr.f32.mxu1 %v341_v15  ;;  %v2556_v13 = vadd.f32 %v2555_v12, %v2554_v11  ;;  %v3765_v15 = vld [vmem:[%s4348_s18 + $0x1d0] sm:$0xff] }
  0x6b   : > { %1193 = vrot.lane.b32.xlu0 %v3737_v43, %s4203_s11  ;;  %1195 = vrot.lane.b32.xlu1 %v3738_v44, %s4203_s11  ;;  %v2701_v43 = vrot.slane %v2700_v38, 4  ;;  %v3770_v44 = vld [vmem:[%s4348_s18 + $0x1f8] sm:$0xff] }
  0x6d   : > { %3951 = vmatmul.mubr.f32.gmra.mxu0 %v310_v16  ;;  %3999 = vmatmul.mubr.f32.gmra.mxu1 %v342_v17  ;;  %v2557_v16 = vrot.slane %v2556_v13, 4  ;;  %v2492_v17 = vld [vmem:[%s4348_s18 + $0x10] sm:$0xff]  ;;  %v2702_v55 = vadd.f32 %v2701_v43, %v2700_v38  ;;  %v2635_v38 = vsel %vm1004_vm0, %v4512_v31, 0.0 }
  0x6e   : > { %3953 = vmatprep.mubr.f32.mxu0 %v311_v18  ;;  %4001 = vmatprep.mubr.f32.mxu1 %v343_v19  ;;  %v2493_v18 = vld [vmem:[%s4348_s18 + $0x18] sm:$0xff] }
  0x6f   : > { %1211 = vrot.lane.b32.xlu0 %v4545_v45, %s4197_s19  ;;  %1213 = vrot.lane.b32.xlu1 %v4551_v46, %s4197_s19  ;;  %v3766_v19 = vld [vmem:[%s4348_s18 + $0x1d8] sm:$0xff]  ;;  %v2558_v22 = vadd.f32 %v2557_v16, %v2556_v13  ;;  %v2495_v46 = vld [vmem:[%s4348_s18 + $0x28] sm:$0xff] }
  0x70   : > { %v2573_v11 = vsel %vm1004_vm0, %v2495_v46, 0.0 }
  0x71   : > { %3954 = vmatmul.mubr.f32.gmra.mxu0 %v312_v20  ;;  %4002 = vmatmul.mubr.f32.gmra.mxu1 %v344_v21  ;;  %v2563_v20 = vsel %vm1004_vm0, %v2492_v17, 0.0  ;;  %v2564_v21 = vsel %vm1004_vm0, %v2493_v18, 0.0  ;;  %v2559_v26 = vrot.slane %v2558_v22, 2  ;;  %v2506_v18 = vld [vmem:[%s4348_s18 + $0x80] sm:$0xff] }
  0x72   : > { %1720 = vmatprep.mubr.f32.mxu1 %v4204_v29  ;;  %2105 = vmatprep.mubr.f32.mxu0 %v4204_v29  ;;  %v2565_v23 = vadd.f32 %v2564_v21, %v2563_v20  ;;  %v2626_v21 = vsel %vm1004_vm0, %v2506_v18, 0.0  ;;  %1108 = vst.msk [vmem:[#allocation2 + $0x208] sm:$0xff] %vm1004_vm0, %v2506_v18 }
  0x73   : > { %1224 = vrot.lane.b32.xlu0 %v4554_v47, %s4198_s20  ;;  %1226 = vrot.lane.b32.xlu1 %v4561_v48, %s4198_s20  ;;  %v2560_v36 = vadd.f32 %v2559_v26, %v2558_v22 }
  0x74   : > { %v2566_v27 = vrot.slane %v2565_v23, 4 }
  0x75   : > { %v2561_v41 = vrot.slane %v2560_v36, 1 }
  0x76   : > { %v2567_v37 = vadd.f32 %v2566_v27, %v2565_v23 }
  0x77   : > { %1237 = vrot.lane.b32.xlu0 %v4564_v49, %s4199_s26  ;;  %1239 = vrot.lane.b32.xlu1 %v4571_v50, %s4199_s26 }
  0x78   : > { %v2568_v42 = vrot.slane %v2567_v37, 2 }
  0x7b   : > { %1250 = vrot.lane.b32.xlu0 %v3747_v51, %s4200_s28  ;;  %1252 = vrot.lane.b32.xlu1 %v3748_v53, %s4200_s28  ;;  %v2707_v51 = vsel %vm1004_vm0, %v4545_v45, 0.0  ;;  %v2562_v53 = vadd.f32 %v2561_v41, %v2560_v36  ;;  %v2703_v45 = vrot.slane %v2702_v55, 2 }
  0x7f   : > { %1263 = vrot.lane.b32.xlu0 %v3749_v54, %s4201_s29  ;;  %1265 = vrot.lane.b32.xlu1 %v3750_v57, %s4201_s29  ;;  %v2569_v54 = vadd.f32 %v2568_v42, %v2567_v37 }
  0x83   : > { %1276 = vrot.lane.b32.xlu0 %v3751_v58, %s4202_s9  ;;  %1278 = vrot.lane.b32.xlu1 %v3752_v59, %s4202_s9 }
  0x87   : > { %1289 = vrot.lane.b32.xlu0 %v3753_v61, %s4203_s11  ;;  %1291 = vrot.lane.b32.xlu1 %v3754_v63, %s4203_s11 }
  0x8b   : > { %1307 = vrot.lane.b32.xlu0 %v4598_v0, %s4197_s19  ;;  %1309 = vrot.lane.b32.xlu1 %v4605_v2, %s4197_s19 }
  0x8f   : > { %1320 = vrot.lane.b32.xlu0 %v4608_v3, %s4198_s20  ;;  %1322 = vrot.lane.b32.xlu1 %v4616_v5, %s4198_s20 }
  0x93   : > { %1333 = vrot.lane.b32.xlu0 %v4619_v6, %s4199_s26  ;;  %1335 = vrot.lane.b32.xlu1 %v4627_v8, %s4199_s26 }
  0x97   : > { %1346 = vrot.lane.b32.xlu0 %v3763_v9, %s4200_s28  ;;  %1348 = vrot.lane.b32.xlu1 %v3764_v10, %s4200_s28  ;;  %v2704_v9 = vadd.f32 %v2703_v45, %v2702_v55  ;;  %s3783_s28 = sshll.u32 %s4264_s25, 9 }
  0x99   : > { %v2705_v16 = vrot.slane %v2704_v9, 1 }
  0x9b   : > { %1359 = vrot.lane.b32.xlu0 %v3765_v15, %s4201_s29  ;;  %1361 = vrot.lane.b32.xlu1 %v3766_v19, %s4201_s29  ;;  %v2507_v19 = vld [vmem:[%s4348_s18 + $0x88] sm:$0xff] }
  0x9c   : > { %v2627_v22 = vsel %vm1004_vm0, %v2507_v19, 0.0  ;;  %1109 = vst.msk [vmem:[#allocation2 + $0x228] sm:$0xff] %vm1004_vm0, %v2507_v19  ;;  %v2779_v19 = vsel %vm1004_vm0, %v4598_v0, 0.0 }
  0x9d   : > { %v2628_v27 = vadd.f32 %v2627_v22, %v2626_v21 }
  0x9f   : > { %1372 = vrot.lane.b32.xlu0 %v3767_v25, %s4202_s9  ;;  %1374 = vrot.lane.b32.xlu1 %v3768_v33, %s4202_s9  ;;  %v2706_v25 = vadd.f32 %v2705_v16, %v2704_v9  ;;  %v2629_v36 = vrot.slane %v2628_v27, 4 }
  0xa1   : > { %v2630_v43 = vadd.f32 %v2629_v36, %v2628_v27 }
  0xa3   : > { %1385 = vrot.lane.b32.xlu0 %v3769_v40, %s4203_s11  ;;  %1387 = vrot.lane.b32.xlu1 %v3770_v44, %s4203_s11  ;;  %v2631_v31 = vrot.slane %v2630_v43, 2  ;;  %s5674_s11 = scalar_lea.hbm %s5723_s6, %s3783_s28 }
  0xa7   : > { %2843 = vbcast.lane.b32.xlu0 %v2562_v53, 256  ;;  %2847 = vbcast.lane.b32.xlu1 %v2562_v53, 264 }
  0xa9   : > { %v1013_v56 = vpop.permute.xlu0 %1012  ;;  %v1027_v62 = vpop.permute.xlu1 %1026 }
  0xaa   : > { %1019 = vst.msk [vmem:[#allocation2 + $0x40] sm:$0xff] %vm1018_vm1, %v1013_v56  ;;  %v2709_v56 = vadd.f32 %v2708_v52, %v2707_v51 }
  0xab   : > { %1033 = vst.msk [vmem:[#allocation2 + $0x80] sm:$0xff] %vm1032_vm2, %v1027_v62  ;;  %v2494_v62 = vld [vmem:[%s4348_s18 + $0x20] sm:$0xff] }
  0xac   : > { %v2710_v61 = vrot.slane %v2709_v56, 4  ;;  %v2572_v63 = vsel %vm1004_vm0, %v2494_v62, 0.0 }
  0xad   : > { %v1015_v60 = vpop.permute.xlu0 %1014  ;;  %v1029_v1 = vpop.permute.xlu1 %1028  ;;  %v2574_v13 = vadd.f32 %v2573_v11, %v2572_v63 }
  0xae   : > { %1020 = vst.msk [vmem:[#allocation2 + $0x60] sm:$0xff] %vm1018_vm1, %v1015_v60  ;;  %v2570_v60 = vrot.slane %v2569_v54, 1  ;;  %v2711_v10 = vadd.f32 %v2710_v61, %v2709_v56 }
  0xaf   : > { %1034 = vst.msk [vmem:[#allocation2 + $0xa0] sm:$0xff] %vm1032_vm2, %v1029_v1  ;;  %v2575_v20 = vrot.slane %v2574_v13, 4 }
  0xb0   : > { %v2712_v17 = vrot.slane %v2711_v10, 2 }
  0xb1   : > { %v1041_v4 = vpop.permute.xlu0 %1040  ;;  %v1043_v7 = vpop.permute.xlu1 %1042  ;;  %v2576_v30 = vadd.f32 %v2575_v20, %v2574_v13  ;;  %v2780_v20 = vsel %vm1004_vm0, %v4605_v2, 0.0 }
  0xb2   : > { %1047 = vst.msk [vmem:[#allocation2 + $0xc0] sm:$0xff] %vm1046_vm3, %v1041_v4  ;;  %1048 = vst.msk [vmem:[#allocation2 + $0xe0] sm:$0xff] %vm1046_vm3, %v1043_v7  ;;  %v2571_v7 = vadd.f32 %v2570_v60, %v2569_v54  ;;  %v2713_v26 = vadd.f32 %v2712_v17, %v2711_v10  ;;  %v2632_v60 = vadd.f32 %v2631_v31, %v2630_v43 }
  0xb3   : > { %v2577_v37 = vrot.slane %v2576_v30, 2 }
  0xb4   : > { %2850 = vbcast.lane.b32.xlu0 %v2571_v7, 256  ;;  %2854 = vbcast.lane.b32.xlu1 %v2571_v7, 264  ;;  %v2714_v35 = vrot.slane %v2713_v26, 1  ;;  %v2633_v7 = vrot.slane %v2632_v60, 1 }
  0xb5   : > { %v1055_v14 = vpop.permute.xlu0 %1054  ;;  %v1057_v24 = vpop.permute.xlu1 %1056  ;;  %v2578_v52 = vadd.f32 %v2577_v37, %v2576_v30 }
  0xb6   : > { %1061 = vst.msk [vmem:[#allocation2 + $0x100] sm:$0xff] %vm1060_vm4, %v1055_v14  ;;  %1062 = vst.msk [vmem:[#allocation2 + $0x120] sm:$0xff] %vm1060_vm4, %v1057_v24  ;;  %v2715_v42 = vadd.f32 %v2714_v35, %v2713_v26  ;;  %v4728_v26 = vadd.f32 %v2780_v20, %v2779_v19 }
  0xb8   : > { %2955 = vbcast.lane.b32.xlu0 %v2706_v25, 256  ;;  %2959 = vbcast.lane.b32.xlu1 %v2706_v25, 264 }
  0xb9   : > { %v1069_v39 = vpop.permute.xlu0 %1068  ;;  %v1071_v57 = vpop.permute.xlu1 %1070 }
  0xba   : > { %1075 = vst.msk [vmem:[#allocation2 + $0x140] sm:$0xff] %vm1074_vm5, %v1069_v39  ;;  %1076 = vst.msk [vmem:[#allocation2 + $0x160] sm:$0xff] %vm1074_vm5, %v1071_v57  ;;  %v2636_v39 = vsel %vm1004_vm0, %v4517_v32, 0.0  ;;  %v2579_v32 = vrot.slane %v2578_v52, 1 }
  0xbb   : > { %v2637_v44 = vadd.f32 %v2636_v39, %v2635_v38  ;;  %v4732_v39 = vld [vmem:[#allocation2 + $0x8] sm:$0xff] }
  0xbc   : > { %2962 = vbcast.lane.b32.xlu0 %v2715_v42, 256  ;;  %v2580_v62 = vadd.f32 %v2579_v32, %v2578_v52  ;;  %2966 = vbcast.lane.b32.xlu1 %v2715_v42, 264  ;;  %v2788_v32 = vsel %vm1004_vm0, %v4608_v3, 0.0 }
  0xbd   : > { %v1083_v12 = vpop.permute.xlu0 %1082  ;;  %v1085_v28 = vpop.permute.xlu1 %1084  ;;  %v2638_v55 = vrot.slane %v2637_v44, 4 }
  0xbe   : > { %1089 = vst.msk [vmem:[#allocation2 + $0x180] sm:$0xff] %vm1088_vm6, %v1083_v12  ;;  %1090 = vst.msk [vmem:[#allocation2 + $0x1a0] sm:$0xff] %vm1088_vm6, %v1085_v28  ;;  %v2634_v12 = vadd.f32 %v2633_v7, %v2632_v60  ;;  %v2789_v60 = vsel %vm1004_vm0, %v4616_v5, 0.0 }
  0xbf   : > { %v2639_v45 = vadd.f32 %v2638_v55, %v2637_v44 }
  0xc0   : > { %2857 = vbcast.lane.b32.xlu0 %v2580_v62, 256  ;;  %2861 = vbcast.lane.b32.xlu1 %v2580_v62, 264  ;;  %v4765_v62 = vadd.f32 %v2789_v60, %v2788_v32 }
  0xc1   : > { %v1097_v51 = vpop.permute.xlu0 %1096  ;;  %v1099_v61 = vpop.permute.xlu1 %1098  ;;  %v2640_v9 = vrot.slane %v2639_v45, 2 }
  0xc2   : > { %1103 = vst.msk [vmem:[#allocation2 + $0x1c0] sm:$0xff] %vm1102_vm7, %v1097_v51  ;;  %1104 = vst.msk [vmem:[#allocation2 + $0x1e0] sm:$0xff] %vm1102_vm7, %v1099_v61 }
  0xc3   : > { %v2641_v13 = vadd.f32 %v2640_v9, %v2639_v45 }
  0xc4   : > { %2899 = vbcast.lane.b32.xlu0 %v2634_v12, 256  ;;  %2903 = vbcast.lane.b32.xlu1 %v2634_v12, 264 }
  0xc5   : > { %v2642_v18 = vrot.slane %v2641_v13, 1  ;;  %v1116_v36 = vpop.permute.xlu0 %1115  ;;  %v1118_v42 = vpop.permute.xlu1 %1117 }
  0xc6   : > { %1121 = vst.msk [vmem:[#allocation2 + $0x248] sm:$0xff] %vm1018_vm1, %v1116_v36  ;;  %1122 = vst.msk [vmem:[#allocation2 + $0x268] sm:$0xff] %vm1018_vm1, %v1118_v42 }
  0xc7   : > { %v2643_v25 = vadd.f32 %v2642_v18, %v2641_v13 }
  0xc9   : > { %2906 = vbcast.lane.b32.xlu0 %v2643_v25, 256  ;;  %2910 = vbcast.lane.b32.xlu1 %v2643_v25, 264  ;;  %v1129_v52 = vpop.permute.xlu0 %1128  ;;  %v1131_v7 = vpop.permute.xlu1 %1130 }
  0xca   : > { %1134 = vst.msk [vmem:[#allocation2 + $0x288] sm:$0xff] %vm1032_vm2, %v1129_v52  ;;  %1135 = vst.msk [vmem:[#allocation2 + $0x2a8] sm:$0xff] %vm1032_vm2, %v1131_v7  ;;  %v2496_v7 = vld [vmem:[%s4348_s18 + $0x30] sm:$0xff] }
  0xcd   : > { %v1142_v9 = vpop.permute.xlu0 %1141 }
  0xce   : > { %1147 = vst.msk [vmem:[#allocation2 + $0x2c8] sm:$0xff] %vm1046_vm3, %v1142_v9  ;;  %v2497_v9 = vld [vmem:[%s4348_s18 + $0x38] sm:$0xff] }
  0xf5   : > { %v4664_v58 = vpop.f32.mrf.mxu0  ;;  %v4666_v59 = vpop.f32.mrf.mxu1 }
  0xf7   : > { %v4673_v1 = vpop.f32.mrf.mxu0  ;;  %v4675_v4 = vpop.f32.mrf.mxu1 }
  0xf9   : > { %v4678_v14 = vpop.f32.mrf.mxu0  ;;  %v4680_v15 = vpop.f32.mrf.mxu1 }
  0xfb   : > { %v4689_v23 = vpop.f32.mrf.mxu0  ;;  %v4691_v24 = vpop.f32.mrf.mxu1 }
  0xfd   : > { %v4693_v33 = vpop.f32.mrf.mxu0  ;;  %v4695_v34 = vpop.f32.mrf.mxu1 }
  0xff   : > { %v4702_v40 = vpop.f32.mrf.mxu0  ;;  %v4704_v41 = vpop.f32.mrf.mxu1 }
 0x101   : > { %v4706_v53 = vpop.f32.mrf.mxu0  ;;  %v4708_v54 = vpop.f32.mrf.mxu1 }
 0x103   : > { %v4711_v56 = vpop.f32.mrf.mxu0  ;;  %v4713_v57 = vpop.f32.mrf.mxu1 }
 0x105   : > { %v4715_v46 = vpop.f32.mrf.mxu0  ;;  %v4717_v63 = vpop.f32.mrf.mxu1 }
 0x107   : > { %v4720_v10 = vpop.f32.mrf.mxu0  ;;  %v4722_v11 = vpop.f32.mrf.mxu1 }
 0x109   : > { %v3925_v16 = vpop.f32.mrf.mxu0  ;;  %v3973_v17 = vpop.f32.mrf.mxu1 }
 0x10b   : > { %v477_v21 = vpop.f32.mrf.mxu0  ;;  %v637_v22 = vpop.f32.mrf.mxu1 }
 0x10d   : > { %v3928_v27 = vpop.f32.mrf.mxu0  ;;  %v3976_v28 = vpop.f32.mrf.mxu1 }
 0x10f   : > { %v487_v30 = vpop.f32.mrf.mxu0  ;;  %v647_v35 = vpop.f32.mrf.mxu1 }
 0x111   : > { %v3931_v37 = vpop.f32.mrf.mxu0  ;;  %v3979_v38 = vpop.f32.mrf.mxu1 }
 0x112   : > { %1657 = vmatpush1.msra.mxu1 %v3931_v37  ;;  %2042 = vmatpush1.msra.mxu0 %v3979_v38  ;;  %v2538_v38 = vld [vmem:[%s4348_s18 + $0x180] sm:$0xff] }
 0x113   : > { %v497_v0 = vpop.f32.mrf.mxu0  ;;  %v657_v2 = vpop.f32.mrf.mxu1  ;;  %1658 = vmatprep.subr.mxu1 %v4204_v29  ;;  %2043 = vmatprep.subr.mxu0 %v4732_v39 }
 0x114   : > { %1659 = vmatpush1.msra.mxu1 %v497_v0  ;;  %2044 = vmatpush1.msra.mxu0 %v657_v2  ;;  %v2539_v0 = vld [vmem:[%s4348_s18 + $0x188] sm:$0xff] }
 0x115   : > { %v4735_v43 = vpop.f32.mrf.mxu0  ;;  %v4737_v44 = vpop.f32.mrf.mxu1  ;;  %1660 = vmatprep.subr.mxu1 %v4732_v39  ;;  %2045 = vmatprep.subr.mxu0 %v4732_v39  ;;  %v2771_v2 = vsel %vm1004_vm0, %v2539_v0, 0.0 }
 0x116   : > { %1661 = vmatpush1.msra.mxu1 %v3928_v27  ;;  %2046 = vmatpush1.msra.mxu0 %v3976_v28 }
 0x117   : > { %v4742_v29 = vpop.f32.mrf.mxu0  ;;  %v4744_v51 = vpop.f32.mrf.mxu1  ;;  %1662 = vmatprep.subr.mxu1 %v4732_v39  ;;  %2047 = vmatprep.subr.mxu0 %v4732_v39 }
 0x118   : > { %1663 = vmatpush1.msra.mxu1 %v487_v30  ;;  %2048 = vmatpush1.msra.mxu0 %v647_v35 }
 0x119   : > { %v4748_v31 = vpop.f32.mrf.mxu0  ;;  %v4750_v55 = vpop.f32.mrf.mxu1  ;;  %1664 = vmatprep.subr.mxu1 %v4732_v39  ;;  %2049 = vmatprep.subr.mxu0 %v4732_v39 }
 0x11a   : > { %1665 = vmatpush1.msra.mxu1 %v3925_v16  ;;  %2050 = vmatpush1.msra.mxu0 %v3973_v17  ;;  %v1144_v16 = vpop.permute.xlu1 %1143  ;;  %v1155_v17 = vpop.permute.xlu0 %1154 }
 0x11b   : > { %v4759_v45 = vpop.f32.mrf.mxu0  ;;  %v4761_v61 = vpop.f32.mrf.mxu1  ;;  %1666 = vmatprep.subr.mxu1 %v4732_v39  ;;  %2051 = vmatprep.subr.mxu0 %v4732_v39  ;;  %1148 = vst.msk [vmem:[#allocation2 + $0x2e8] sm:$0xff] %vm1046_vm3, %v1144_v16 }
 0x11c   : > { %1667 = vmatpush1.msra.mxu1 %v477_v21  ;;  %2052 = vmatpush1.msra.mxu0 %v637_v22  ;;  %1160 = vst.msk [vmem:[#allocation2 + $0x308] sm:$0xff] %vm1060_vm4, %v1155_v17 }
 0x11d   : > { %v4767_v12 = vpop.f32.mrf.mxu0  ;;  %v4769_v3 = vpop.f32.mrf.mxu1  ;;  %1668 = vmatprep.subr.mxu1 %v4732_v39  ;;  %2053 = vmatprep.subr.mxu0 %v4732_v39 }
 0x11e   : > { %1669 = vmatpush1.msra.mxu1 %v4715_v46  ;;  %2054 = vmatpush1.msra.mxu0 %v4717_v63 }
 0x11f   : > { %v4777_v5 = vpop.f32.mrf.mxu0  ;;  %v4779_v13 = vpop.f32.mrf.mxu1  ;;  %1670 = vmatprep.subr.mxu1 %v4732_v39  ;;  %2055 = vmatprep.subr.mxu0 %v4732_v39 }
 0x120   : > { %1671 = vmatpush1.msra.mxu1 %v4720_v10  ;;  %2056 = vmatpush1.msra.mxu0 %v4722_v11  ;;  %v1157_v10 = vpop.permute.xlu1 %1156  ;;  %v1168_v11 = vpop.permute.xlu0 %1167 }
 0x121   : > { %v4785_v18 = vpop.f32.mrf.mxu0  ;;  %v4787_v19 = vpop.f32.mrf.mxu1  ;;  %1672 = vmatprep.subr.mxu1 %v4732_v39  ;;  %2057 = vmatprep.subr.mxu0 %v4732_v39  ;;  %1161 = vst.msk [vmem:[#allocation2 + $0x328] sm:$0xff] %vm1060_vm4, %v1157_v10 }
 0x122   : > { %1673 = vmatpush1.msra.mxu1 %v4706_v53  ;;  %2058 = vmatpush1.msra.mxu0 %v4708_v54  ;;  %1173 = vst.msk [vmem:[#allocation2 + $0x348] sm:$0xff] %vm1074_vm5, %v1168_v11 }
 0x123   : > { %v4795_v46 = vpop.f32.mrf.mxu0  ;;  %v4797_v63 = vpop.f32.mrf.mxu1  ;;  %1674 = vmatprep.subr.mxu1 %v4732_v39  ;;  %2059 = vmatprep.subr.mxu0 %v4732_v39 }
 0x124   : > { %1675 = vmatpush1.msra.mxu1 %v4711_v56  ;;  %2060 = vmatpush1.msra.mxu0 %v4713_v57  ;;  %v1170_v56 = vpop.permute.xlu1 %1169  ;;  %v1181_v57 = vpop.permute.xlu0 %1180 }
 0x125   : > { %v4803_v20 = vpop.f32.mrf.mxu0  ;;  %v4805_v21 = vpop.f32.mrf.mxu1  ;;  %1676 = vmatprep.subr.mxu1 %v4732_v39  ;;  %2061 = vmatprep.subr.mxu0 %v4732_v39  ;;  %1174 = vst.msk [vmem:[#allocation2 + $0x368] sm:$0xff] %vm1074_vm5, %v1170_v56  ;;  %v2581_v56 = vsel %vm1004_vm0, %v2496_v7, 0.0 }
 0x126   : > { %1677 = vmatpush1.msra.mxu1 %v4693_v33  ;;  %2062 = vmatpush1.msra.mxu0 %v4695_v34  ;;  %1186 = vst.msk [vmem:[#allocation2 + $0x388] sm:$0xff] %vm1088_vm6, %v1181_v57  ;;  %v2582_v57 = vsel %vm1004_vm0, %v2497_v9, 0.0 }
 0x127   : > { %v4813_v53 = vpop.f32.mrf.mxu0  ;;  %v4815_v54 = vpop.f32.mrf.mxu1  ;;  %1678 = vmatprep.subr.mxu1 %v4732_v39  ;;  %2063 = vmatprep.subr.mxu0 %v4732_v39 }
 0x128   : > { %1679 = vmatpush1.msra.mxu1 %v4702_v40  ;;  %2064 = vmatpush1.msra.mxu0 %v4704_v41  ;;  %v1183_v40 = vpop.permute.xlu1 %1182  ;;  %v1194_v41 = vpop.permute.xlu0 %1193 }
 0x129   : > { %v4821_v22 = vpop.f32.mrf.mxu0  ;;  %v4823_v25 = vpop.f32.mrf.mxu1  ;;  %1680 = vmatprep.subr.mxu1 %v4732_v39  ;;  %2065 = vmatprep.subr.mxu0 %v4732_v39  ;;  %1187 = vst.msk [vmem:[#allocation2 + $0x3a8] sm:$0xff] %vm1088_vm6, %v1183_v40 }
 0x12a   : > { %1681 = vmatpush1.msra.mxu1 %v4678_v14  ;;  %2066 = vmatpush1.msra.mxu0 %v4680_v15  ;;  %1199 = vst.msk [vmem:[#allocation2 + $0x3c8] sm:$0xff] %vm1102_vm7, %v1194_v41 }
 0x12b   : > { %v4831_v33 = vpop.f32.mrf.mxu0  ;;  %v4833_v34 = vpop.f32.mrf.mxu1  ;;  %1682 = vmatprep.subr.mxu1 %v4732_v39  ;;  %2067 = vmatprep.subr.mxu0 %v4732_v39 }
 0x12c   : > { %1683 = vmatpush1.msra.mxu1 %v4689_v23  ;;  %2068 = vmatpush1.msra.mxu0 %v4691_v24  ;;  %v1196_v23 = vpop.permute.xlu1 %1195  ;;  %v1212_v24 = vpop.permute.xlu0 %1211 }
 0x12d   : > { %v3952_v27 = vpop.f32.mrf.mxu0  ;;  %v4000_v28 = vpop.f32.mrf.mxu1  ;;  %1684 = vmatprep.subr.mxu1 %v4732_v39  ;;  %2069 = vmatprep.subr.mxu0 %v4732_v39  ;;  %1200 = vst.msk [vmem:[#allocation2 + $0x3e8] sm:$0xff] %vm1102_vm7, %v1196_v23 }
 0x12e   : > { %1685 = vmatpush1.msra.mxu1 %v4664_v58  ;;  %2070 = vmatpush1.msra.mxu0 %v4666_v59  ;;  %1217 = vst.msk [vmem:[#allocation2 + $0x450] sm:$0xff] %vm1018_vm1, %v1212_v24 }
 0x12f   : > { %v567_v14 = vpop.f32.mrf.mxu0  ;;  %v727_v15 = vpop.f32.mrf.mxu1  ;;  %1686 = vmatprep.subr.mxu1 %v4732_v39  ;;  %2071 = vmatprep.subr.mxu0 %v4732_v39 }
 0x130   : > { %1687 = vmatpush1.msra.mxu1 %v4673_v1  ;;  %2072 = vmatpush1.msra.mxu0 %v4675_v4  ;;  %v2716_v1 = vsel %vm1004_vm0, %v4554_v47, 0.0  ;;  %v2717_v4 = vsel %vm1004_vm0, %v4561_v48, 0.0  ;;  %v1214_v36 = vpop.permute.xlu1 %1213  ;;  %v1225_v37 = vpop.permute.xlu0 %1224  ;;  %v2770_v48 = vsel %vm1004_vm0, %v2538_v38, 0.0 }
 0x131   : > { %v3955_v30 = vpop.f32.mrf.mxu0  ;;  %v4003_v35 = vpop.f32.mrf.mxu1  ;;  %1688 = vmatprep.subr.mxu1 %v4732_v39  ;;  %2073 = vmatprep.subr.mxu0 %v4732_v39  ;;  %1218 = vst.msk [vmem:[#allocation2 + $0x470] sm:$0xff] %vm1018_vm1, %v1214_v36  ;;  %v2718_v47 = vadd.f32 %v2717_v4, %v2716_v1  ;;  %v2772_v60 = vadd.f32 %v2771_v2, %v2770_v48  ;;  %v2512_v2 = vld [vmem:[%s4348_s18 + $0xb0] sm:$0xff] }
 0x132   : > { %1689 = vmatpush2.msra.mxu1 %v3955_v30  ;;  %2074 = vmatpush2.msra.mxu0 %v4003_v35  ;;  %1230 = vst.msk [vmem:[#allocation2 + $0x490] sm:$0xff] %vm1032_vm2, %v1225_v37  ;;  %v2498_v30 = vld [vmem:[%s4348_s18 + $0x40] sm:$0xff]  ;;  %v2499_v35 = vld [vmem:[%s4348_s18 + $0x48] sm:$0xff]  ;;  %v2653_v9 = vsel %vm1004_vm0, %v2512_v2, 0.0 }
 0x133   : > { %v577_v58 = vpop.f32.mrf.mxu0  ;;  %v737_v59 = vpop.f32.mrf.mxu1  ;;  %1690 = vmatprep.subr.mxu1 %v4732_v39  ;;  %2075 = vmatprep.subr.mxu0 %v4732_v39  ;;  %v2719_v32 = vrot.slane %v2718_v47, 4  ;;  %v2773_v11 = vrot.slane %v2772_v60, 4  ;;  %v2590_v4 = vsel %vm1004_vm0, %v2498_v30, 0.0  ;;  %v2591_v36 = vsel %vm1004_vm0, %v2499_v35, 0.0 }
 0x134   : > { %1691 = vmatpush2.msra.mxu1 %v577_v58  ;;  %2076 = vmatpush2.msra.mxu0 %v737_v59  ;;  %v1227_v42 = vpop.permute.xlu1 %1226  ;;  %v1238_v52 = vpop.permute.xlu0 %1237  ;;  %v2592_v48 = vadd.f32 %v2591_v36, %v2590_v4 }
 0x135   : > { %1692 = vmatprep.subr.mxu1 %v4732_v39  ;;  %2077 = vmatprep.subr.mxu0 %v4732_v39  ;;  %1231 = vst.msk [vmem:[#allocation2 + $0x4b0] sm:$0xff] %vm1032_vm2, %v1227_v42  ;;  %v2720_v10 = vadd.f32 %v2719_v32, %v2718_v47  ;;  %v2791_v47 = vrot.slane %v4765_v62, 4  ;;  %v2513_v42 = vld [vmem:[%s4348_s18 + $0xb8] sm:$0xff] }
 0x136   : > { %1693 = vmatpush2.msra.mxu1 %v3952_v27  ;;  %2078 = vmatpush2.msra.mxu0 %v4000_v28  ;;  %1243 = vst.msk [vmem:[#allocation2 + $0x4d0] sm:$0xff] %vm1046_vm3, %v1238_v52 }
 0x137   : > { %1694 = vmatprep.subr.mxu1 %v4732_v39  ;;  %2079 = vmatprep.subr.mxu0 %v4732_v39 }
 0x138   : > { %1695 = vmatpush2.msra.mxu1 %v567_v14  ;;  %2080 = vmatpush2.msra.mxu0 %v727_v15  ;;  %v1240_v16 = vpop.permute.xlu1 %1239  ;;  %v1251_v17 = vpop.permute.xlu0 %1250  ;;  %v2725_v15 = vsel %vm1004_vm0, %v4564_v49, 0.0 }
 0x139   : > { %1696 = vmatprep.subr.mxu1 %v4732_v39  ;;  %2081 = vmatprep.subr.mxu0 %v4732_v39  ;;  %1244 = vst.msk [vmem:[#allocation2 + $0x4f0] sm:$0xff] %vm1046_vm3, %v1240_v16  ;;  %v2654_v16 = vsel %vm1004_vm0, %v2513_v42, 0.0  ;;  %v2532_v42 = vld [vmem:[%s4348_s18 + $0x150] sm:$0xff] }
 0x13a   : > { %1697 = vmatpush2.msra.mxu1 %v4821_v22  ;;  %2082 = vmatpush2.msra.mxu0 %v4823_v25  ;;  %1256 = vst.msk [vmem:[#allocation2 + $0x510] sm:$0xff] %vm1060_vm4, %v1251_v17  ;;  %v2530_v17 = vld [vmem:[%s4348_s18 + $0x140] sm:$0xff] }
 0x13b   : > { %1698 = vmatprep.subr.mxu1 %v4732_v39  ;;  %2083 = vmatprep.subr.mxu0 %v4732_v39 }
 0x13c   : > { %1699 = vmatpush2.msra.mxu1 %v4831_v33  ;;  %2084 = vmatpush2.msra.mxu0 %v4833_v34  ;;  %v1253_v22 = vpop.permute.xlu1 %1252  ;;  %v1264_v25 = vpop.permute.xlu0 %1263  ;;  %v2511_v33 = vld [vmem:[%s4348_s18 + $0xa8] sm:$0xff]  ;;  %v2774_v34 = vadd.f32 %v2773_v11, %v2772_v60 }
 0x13d   : > { %1700 = vmatprep.subr.mxu1 %v4732_v39  ;;  %2085 = vmatprep.subr.mxu0 %v4732_v39  ;;  %1257 = vst.msk [vmem:[#allocation2 + $0x530] sm:$0xff] %vm1060_vm4, %v1253_v22  ;;  %v2645_v41 = vsel %vm1004_vm0, %v2511_v33, 0.0  ;;  %v2593_v22 = vrot.slane %v2592_v48, 4 }
 0x13e   : > { %1701 = vmatpush2.msra.mxu1 %v4803_v20  ;;  %2086 = vmatpush2.msra.mxu0 %v4805_v21  ;;  %v2782_v20 = vrot.slane %v4728_v26, 4  ;;  %v2510_v21 = vld [vmem:[%s4348_s18 + $0xa0] sm:$0xff]  ;;  %1269 = vst.msk [vmem:[#allocation2 + $0x550] sm:$0xff] %vm1074_vm5, %v1264_v25 }
 0x13f   : > { %1702 = vmatprep.subr.mxu1 %v4732_v39  ;;  %2087 = vmatprep.subr.mxu0 %v4732_v39  ;;  %v2644_v40 = vsel %vm1004_vm0, %v2510_v21, 0.0  ;;  %v1401_v25 = vld [vmem:[#allocation2 + $0x40] sm:$0xff] }
 0x140   : > { %1703 = vmatpush2.msra.mxu1 %v4813_v53  ;;  %2088 = vmatpush2.msra.mxu0 %v4815_v54  ;;  %v2721_v53 = vrot.slane %v2720_v10, 2  ;;  %v2583_v54 = vadd.f32 %v2582_v57, %v2581_v56  ;;  %v1266_v27 = vpop.permute.xlu1 %1265  ;;  %v1277_v28 = vpop.permute.xlu0 %1276  ;;  %v2646_v14 = vadd.f32 %v2645_v41, %v2644_v40  ;;  %v2792_v57 = vadd.f32 %v2791_v47, %v4765_v62 }
 0x141   : > { %1704 = vmatprep.subr.mxu1 %v4732_v39  ;;  %2089 = vmatprep.subr.mxu0 %v4732_v39  ;;  %1270 = vst.msk [vmem:[#allocation2 + $0x570] sm:$0xff] %vm1074_vm5, %v1266_v27 }
 0x142   : > { %1705 = vmatpush2.msra.mxu1 %v4785_v18  ;;  %2090 = vmatpush2.msra.mxu0 %v4787_v19  ;;  %v2783_v18 = vadd.f32 %v2782_v20, %v4728_v26  ;;  %1282 = vst.msk [vmem:[#allocation2 + $0x590] sm:$0xff] %vm1088_vm6, %v1277_v28  ;;  %v2722_v19 = vadd.f32 %v2721_v53, %v2720_v10  ;;  %v2726_v26 = vsel %vm1004_vm0, %v4571_v50, 0.0  ;;  %v2647_v24 = vrot.slane %v2646_v14, 4  ;;  %v2531_v10 = vld [vmem:[%s4348_s18 + $0x148] sm:$0xff] }
 0x143   : > { %1706 = vmatprep.subr.mxu1 %v4732_v39  ;;  %2091 = vmatprep.subr.mxu0 %v4732_v39  ;;  %v2727_v50 = vadd.f32 %v2726_v26, %v2725_v15  ;;  %v2735_v62 = vsel %vm1004_vm0, %v2531_v10, 0.0  ;;  %v2793_v27 = vrot.slane %v2792_v57, 2  ;;  %v2594_v28 = vadd.f32 %v2593_v22, %v2592_v48  ;;  %v2546_v22 = vld [vmem:[%s4348_s18 + $0x1c0] sm:$0xff] }
 0x144   : > { %1707 = vmatpush2.msra.mxu1 %v4795_v46  ;;  %2092 = vmatpush2.msra.mxu0 %v4797_v63  ;;  %v2584_v46 = vrot.slane %v2583_v54, 4  ;;  %v2775_v63 = vrot.slane %v2774_v34, 2  ;;  %v2784_v23 = vrot.slane %v2783_v18, 2  ;;  %v2648_v0 = vadd.f32 %v2647_v24, %v2646_v14 }
 0x145   : > { %1708 = vmatprep.subr.mxu1 %v4732_v39  ;;  %2093 = vmatprep.subr.mxu0 %v4732_v39  ;;  %v2728_v1 = vrot.slane %v2727_v50, 4  ;;  %v2797_v26 = vsel %vm1004_vm0, %v4619_v6, 0.0  ;;  %v1409_v6 = vld [vmem:[#allocation2 + $0x80] sm:$0xff] }
 0x146   : > { %1709 = vmatpush2.msra.mxu1 %v4767_v12  ;;  %2094 = vmatpush2.msra.mxu0 %v4769_v3  ;;  %v1279_v12 = vpop.permute.xlu1 %1278  ;;  %v1290_v3 = vpop.permute.xlu0 %1289  ;;  %v2585_v49 = vadd.f32 %v2584_v46, %v2583_v54  ;;  %v2649_v7 = vrot.slane %v2648_v0, 2  ;;  %v2655_v54 = vadd.f32 %v2654_v16, %v2653_v9 }
 0x147   : > { %1710 = vmatprep.subr.mxu1 %v4732_v39  ;;  %2095 = vmatprep.subr.mxu0 %v4732_v39  ;;  %1283 = vst.msk [vmem:[#allocation2 + $0x5b0] sm:$0xff] %vm1088_vm6, %v1279_v12  ;;  %v2729_v32 = vadd.f32 %v2728_v1, %v2727_v50  ;;  %v2798_v12 = vsel %vm1004_vm0, %v4627_v8, 0.0 }
 0x148   : > { %1711 = vmatpush2.msra.mxu1 %v4777_v5  ;;  %2096 = vmatpush2.msra.mxu0 %v4779_v13  ;;  %1295 = vst.msk [vmem:[#allocation2 + $0x5d0] sm:$0xff] %vm1102_vm7, %v1290_v3  ;;  %v2723_v5 = vrot.slane %v2722_v19, 1  ;;  %v2776_v13 = vadd.f32 %v2775_v63, %v2774_v34  ;;  %v2650_v53 = vadd.f32 %v2649_v7, %v2648_v0  ;;  %v2734_v34 = vsel %vm1004_vm0, %v2530_v17, 0.0  ;;  %v2500_v3 = vld [vmem:[%s4348_s18 + $0x50] sm:$0xff] }
 0x149   : > { %1712 = vmatprep.subr.mxu1 %v4732_v39  ;;  %2097 = vmatprep.subr.mxu0 %v4732_v39  ;;  %v2730_v33 = vrot.slane %v2729_v32, 2  ;;  %v2736_v63 = vadd.f32 %v2735_v62, %v2734_v34  ;;  %v2656_v15 = vrot.slane %v2655_v54, 4  ;;  %v2799_v30 = vadd.f32 %v2798_v12, %v2797_v26 }
 0x14a   : > { %1713 = vmatpush2.msra.mxu1 %v4748_v31  ;;  %2098 = vmatpush2.msra.mxu0 %v4750_v55  ;;  %v1292_v58 = vpop.permute.xlu1 %1291  ;;  %v1308_v59 = vpop.permute.xlu0 %1307  ;;  %v3740_v31 = vld [vmem:[%s4348_s18 + $0x108] sm:$0xff]  ;;  %v2785_v55 = vadd.f32 %v2784_v23, %v2783_v18  ;;  %v2724_v37 = vadd.f32 %v2723_v5, %v2722_v19  ;;  %v2777_v38 = vrot.slane %v2776_v13, 1  ;;  %v1405_v18 = vld [vmem:[#allocation2 + $0x60] sm:$0xff]  ;;  %v2651_v14 = vrot.slane %v2650_v53, 1  ;;  %v2501_v23 = vld [vmem:[%s4348_s18 + $0x58] sm:$0xff] }
 0x14b   : > { %1714 = vmatprep.subr.mxu1 %v4732_v39  ;;  %2099 = vmatprep.subr.mxu0 %v4732_v39  ;;  %1296 = vst.msk [vmem:[#allocation2 + $0x5f0] sm:$0xff] %vm1102_vm7, %v1292_v58  ;;  %v2731_v46 = vadd.f32 %v2730_v33, %v2729_v32  ;;  %v2794_v5 = vadd.f32 %v2793_v27, %v2792_v57  ;;  %v2737_v24 = vrot.slane %v2736_v63, 4  ;;  %v1421_v33 = vld [vmem:[#allocation2 + $0xe0] sm:$0xff]  ;;  %v2806_v27 = vsel %vm1004_vm0, %v2546_v22, 0.0 }
 0x14c   : > { %1715 = vmatpush2.msra.mxu1 %v4759_v45  ;;  %2100 = vmatpush2.msra.mxu0 %v4761_v61  ;;  %1313 = vst.msk [vmem:[#allocation2 + $0x658] sm:$0xff] %vm1018_vm1, %v1308_v59  ;;  %v1393_v45 = vld [vmem:[#allocation2] sm:$0xff]  ;;  %v2586_v61 = vrot.slane %v2585_v49, 2  ;;  %v2778_v60 = vadd.f32 %v2777_v38, %v2776_v13  ;;  %v2595_v13 = vrot.slane %v2594_v28, 2  ;;  %v2652_v35 = vadd.f32 %v2651_v14, %v2650_v53 }
 0x14d   : > { %1716 = vmatprep.subr.mxu1 %v4732_v39  ;;  %2101 = vmatprep.subr.mxu0 %v4732_v39  ;;  %1205 = vst.msk [vmem:[#allocation2 + $0x430] sm:$0xff] %vm1004_vm0, %v3740_v31  ;;  %v2732_v8 = vrot.slane %v2731_v46, 1  ;;  %v2657_v58 = vadd.f32 %v2656_v15, %v2655_v54  ;;  %v2599_v59 = vsel %vm1004_vm0, %v2500_v3, 0.0  ;;  %v2600_v31 = vsel %vm1004_vm0, %v2501_v23, 0.0 }
 0x14e   : > { %1717 = vmatpush2.msra.mxu1 %v4735_v43  ;;  %2102 = vmatpush2.msra.mxu0 %v4737_v44  ;;  %v1310_v43 = vpop.permute.xlu1 %1309  ;;  %v1321_v44 = vpop.permute.xlu0 %1320  ;;  %v2587_v52 = vadd.f32 %v2586_v61, %v2585_v49  ;;  %v2795_v4 = vrot.slane %v2794_v5, 1  ;;  %v2596_v36 = vadd.f32 %v2595_v13, %v2594_v28  ;;  %v2800_v38 = vrot.slane %v2799_v30, 4  ;;  %v2516_v13 = vld [vmem:[%s4348_s18 + $0xd0] sm:$0xff] }
 0x14f   : > { %1718 = vmatprep.subr.mxu1 %v4732_v39  ;;  %2103 = vmatprep.subr.mxu0 %v4732_v39  ;;  %1314 = vst.msk [vmem:[#allocation2 + $0x678] sm:$0xff] %vm1018_vm1, %v1310_v43  ;;  %v2601_v0 = vadd.f32 %v2600_v31, %v2599_v59  ;;  %v2733_v47 = vadd.f32 %v2732_v8, %v2731_v46  ;;  %v2658_v48 = vrot.slane %v2657_v58, 2  ;;  %v2503_v46 = vld [vmem:[%s4348_s18 + $0x68] sm:$0xff]  ;;  %v1429_v8 = vld [vmem:[#allocation2 + $0x120] sm:$0xff] }
 0x150   : > { %1719 = vmatpush2.msra.mxu1 %v4742_v29  ;;  %2104 = vmatpush2.msra.mxu0 %v4744_v51  ;;  %1326 = vst.msk [vmem:[#allocation2 + $0x698] sm:$0xff] %vm1032_vm2, %v1321_v44  ;;  %v1397_v29 = vld [vmem:[#allocation2 + $0x20] sm:$0xff]  ;;  %v2786_v51 = vrot.slane %v2785_v55, 1  ;;  %v2588_v21 = vrot.slane %v2587_v52, 1  ;;  %v2738_v2 = vadd.f32 %v2737_v24, %v2736_v63  ;;  %v2796_v7 = vadd.f32 %v2795_v4, %v2794_v5 }
 0x151   : > { %1721 = vmatmul.mubr.f32.vlgmr.msra.gmra.mxu1 %v1393_v45  ;;  %2106 = vmatmul.mubr.f32.vlgmr.msra.gmra.mxu0 %v4732_v39  ;;  %v2515_v45 = vld [vmem:[%s4348_s18 + $0xc8] sm:$0xff]  ;;  %v2597_v9 = vrot.slane %v2596_v36, 1  ;;  %v2801_v16 = vadd.f32 %v2800_v38, %v2799_v30  ;;  %v2602_v17 = vrot.slane %v2601_v0, 4  ;;  %v2659_v10 = vadd.f32 %v2658_v48, %v2657_v58  ;;  %v1425_v63 = vld [vmem:[#allocation2 + $0x100] sm:$0xff] }
 0x152   : > { %1725 = vmatprep.mubr.f32.mxu1 %v4732_v39  ;;  %2110 = vmatprep.mubr.f32.mxu0 %v4732_v39  ;;  %v1323_v11 = vpop.permute.xlu1 %1322  ;;  %v1334_v56 = vpop.permute.xlu0 %1333  ;;  %v2787_v20 = vadd.f32 %v2786_v51, %v2785_v55  ;;  %v2589_v19 = vadd.f32 %v2588_v21, %v2587_v52  ;;  %v2514_v55 = vld [vmem:[%s4348_s18 + $0xc0] sm:$0xff]  ;;  %v2663_v44 = vsel %vm1004_vm0, %v2515_v45, 0.0 }
 0x153   : > { %2969 = vbcast.lane.b32.xlu0 %v2724_v37, 256  ;;  %2973 = vbcast.lane.b32.xlu1 %v2724_v37, 264  ;;  %1327 = vst.msk [vmem:[#allocation2 + $0x6b8] sm:$0xff] %vm1032_vm2, %v1323_v11  ;;  %v1413_v37 = vld [vmem:[#allocation2 + $0xa0] sm:$0xff]  ;;  %v2662_v43 = vsel %vm1004_vm0, %v2514_v55, 0.0  ;;  %v2739_v11 = vrot.slane %v2738_v2, 2  ;;  %v2598_v53 = vadd.f32 %v2597_v9, %v2596_v36  ;;  %v2603_v34 = vadd.f32 %v2602_v17, %v2601_v0 }
 0x154   : > { %1339 = vst.msk [vmem:[#allocation2 + $0x6d8] sm:$0xff] %vm1046_vm3, %v1334_v56  ;;  %v2664_v32 = vadd.f32 %v2663_v44, %v2662_v43  ;;  %v2743_v56 = vsel %vm1004_vm0, %v2532_v42, 0.0  ;;  %v2802_v54 = vrot.slane %v2801_v16, 2  ;;  %v2671_v55 = vsel %vm1004_vm0, %v2516_v13, 0.0  ;;  %v1433_v36 = vld [vmem:[#allocation2 + $0x140] sm:$0xff]  ;;  %v2548_v42 = vld [vmem:[%s4348_s18 + $0x1d0] sm:$0xff] }
 0x155   : > { %1726 = vmatmul.mubr.f32.gmra.mxu1 %v1397_v29  ;;  %2111 = vmatmul.mubr.f32.gmra.mxu0 %v4732_v39  ;;  %v2533_v29 = vld [vmem:[%s4348_s18 + $0x158] sm:$0xff]  ;;  %v2604_v15 = vrot.slane %v2603_v34, 2 }
 0x156   : > { %1730 = vmatprep.mubr.f32.mxu1 %v4732_v39  ;;  %2115 = vmatprep.mubr.f32.mxu0 %v4732_v39  ;;  %v1336_v40 = vpop.permute.xlu1 %1335  ;;  %v1347_v41 = vpop.permute.xlu0 %1346  ;;  %v2744_v57 = vsel %vm1004_vm0, %v2533_v29, 0.0  ;;  %v2665_v21 = vrot.slane %v2664_v32, 4  ;;  %v2803_v14 = vadd.f32 %v2802_v54, %v2801_v16  ;;  %v2549_v29 = vld [vmem:[%s4348_s18 + $0x1d8] sm:$0xff] }
 0x157   : > { %3011 = vbcast.lane.b32.xlu0 %v2778_v60, 256  ;;  %3015 = vbcast.lane.b32.xlu1 %v2778_v60, 264  ;;  %1340 = vst.msk [vmem:[#allocation2 + $0x6f8] sm:$0xff] %vm1046_vm3, %v1336_v40  ;;  %v1417_v60 = vld [vmem:[#allocation2 + $0xc0] sm:$0xff]  ;;  %v2745_v62 = vadd.f32 %v2744_v57, %v2743_v56  ;;  %v2660_v40 = vrot.slane %v2659_v10, 1  ;;  %v2605_v30 = vadd.f32 %v2604_v15, %v2603_v34  ;;  %v2504_v56 = vld [vmem:[%s4348_s18 + $0x70] sm:$0xff] }
 0x158   : > { %1352 = vst.msk [vmem:[#allocation2 + $0x718] sm:$0xff] %vm1060_vm4, %v1347_v41  ;;  %v2740_v41 = vadd.f32 %v2739_v11, %v2738_v2  ;;  %v2804_v24 = vrot.slane %v2803_v14, 1  ;;  %v2816_v11 = vsel %vm1004_vm0, %v2549_v29, 0.0  ;;  %v2505_v57 = vld [vmem:[%s4348_s18 + $0x78] sm:$0xff] }
 0x159   : > { %1731 = vmatmul.mubr.f32.gmra.mxu1 %v1401_v25  ;;  %2116 = vmatmul.mubr.f32.gmra.mxu0 %v4732_v39  ;;  %v2547_v25 = vld [vmem:[%s4348_s18 + $0x1c8] sm:$0xff]  ;;  %v2746_v26 = vrot.slane %v2745_v62, 4  ;;  %v2661_v3 = vadd.f32 %v2660_v40, %v2659_v10  ;;  %v2606_v38 = vrot.slane %v2605_v30, 1  ;;  %v2815_v10 = vsel %vm1004_vm0, %v2548_v42, 0.0  ;;  %v2520_v42 = vld [vmem:[%s4348_s18 + $0xf0] sm:$0xff]  ;;  %v2521_v29 = vld [vmem:[%s4348_s18 + $0xf8] sm:$0xff] }
 0x15a   : > { %1735 = vmatprep.mubr.f32.mxu1 %v4732_v39  ;;  %2120 = vmatprep.mubr.f32.mxu0 %v4732_v39  ;;  %v1349_v49 = vpop.permute.xlu1 %1348  ;;  %v1360_v50 = vpop.permute.xlu0 %1359  ;;  %v2807_v28 = vsel %vm1004_vm0, %v2547_v25, 0.0  ;;  %v2741_v23 = vrot.slane %v2740_v41, 1  ;;  %v1441_v25 = vld [vmem:[#allocation2 + $0x180] sm:$0xff]  ;;  %v2618_v40 = vsel %vm1004_vm0, %v2505_v57, 0.0 }
 0x15b   : > { %3018 = vbcast.lane.b32.xlu0 %v2787_v20, 256  ;;  %3022 = vbcast.lane.b32.xlu1 %v2787_v20, 264  ;;  %1353 = vst.msk [vmem:[#allocation2 + $0x738] sm:$0xff] %vm1060_vm4, %v1349_v49  ;;  %v2808_v12 = vadd.f32 %v2807_v28, %v2806_v27  ;;  %v2519_v27 = vld [vmem:[%s4348_s18 + $0xe8] sm:$0xff]  ;;  %v1445_v28 = vld [vmem:[#allocation2 + $0x1a0] sm:$0xff] }
 0x15c   : > { %1365 = vst.msk [vmem:[#allocation2 + $0x758] sm:$0xff] %vm1074_vm5, %v1360_v50  ;;  %v2609_v50 = vsel %vm1004_vm0, %v2503_v46, 0.0  ;;  %v2742_v59 = vadd.f32 %v2741_v23, %v2740_v41  ;;  %v2518_v41 = vld [vmem:[%s4348_s18 + $0xe0] sm:$0xff]  ;;  %v5055_v23 = vld [vmem:[#allocation2 + $0x8] sm:$0xff] }
 0x15d   : > { %1736 = vmatmul.mubr.f32.gmra.mxu1 %v1405_v18  ;;  %2121 = vmatmul.mubr.f32.gmra.mxu0 %v4732_v39  ;;  %v2666_v18 = vadd.f32 %v2665_v21, %v2664_v32  ;;  %v2809_v58 = vrot.slane %v2808_v12, 4  ;;  %v2607_v32 = vadd.f32 %v2606_v38, %v2605_v30 }
 0x15e   : > { %1740 = vmatprep.mubr.f32.mxu1 %v4732_v39  ;;  %2125 = vmatprep.mubr.f32.mxu0 %v4732_v39  ;;  %v1362_v61 = vpop.permute.xlu1 %1361  ;;  %v1373_v1 = vpop.permute.xlu0 %1372 }
 0x15f   : > { %2864 = vbcast.lane.b32.xlu0 %v2589_v19, 256  ;;  %2868 = vbcast.lane.b32.xlu1 %v2589_v19, 264  ;;  %1366 = vst.msk [vmem:[#allocation2 + $0x778] sm:$0xff] %vm1074_vm5, %v1362_v61  ;;  %v2502_v19 = vld [vmem:[%s4348_s18 + $0x60] sm:$0xff]  ;;  %v2667_v5 = vrot.slane %v2666_v18, 2  ;;  %v2810_v43 = vadd.f32 %v2809_v58, %v2808_v12  ;;  %v2680_v12 = vsel %vm1004_vm0, %v2518_v41, 0.0 }
 0x160   : > { %1378 = vst.msk [vmem:[#allocation2 + $0x798] sm:$0xff] %vm1088_vm6, %v1373_v1  ;;  %v2608_v49 = vsel %vm1004_vm0, %v2502_v19, 0.0  ;;  %v2534_v61 = vld [vmem:[%s4348_s18 + $0x160] sm:$0xff]  ;;  %v2535_v1 = vld [vmem:[%s4348_s18 + $0x168] sm:$0xff] }
 0x161   : > { %1741 = vmatmul.mubr.f32.gmra.mxu1 %v1409_v6  ;;  %2126 = vmatmul.mubr.f32.gmra.mxu0 %v4732_v39  ;;  %v2517_v6 = vld [vmem:[%s4348_s18 + $0xd8] sm:$0xff]  ;;  %v2610_v31 = vadd.f32 %v2609_v50, %v2608_v49  ;;  %v2668_v4 = vadd.f32 %v2667_v5, %v2666_v18  ;;  %v2752_v48 = vsel %vm1004_vm0, %v2534_v61, 0.0  ;;  %v2753_v2 = vsel %vm1004_vm0, %v2535_v1, 0.0  ;;  %v1449_v50 = vld [vmem:[#allocation2 + $0x1c0] sm:$0xff] }
 0x162   : > { %1745 = vmatprep.mubr.f32.mxu1 %v4732_v39  ;;  %2130 = vmatprep.mubr.f32.mxu0 %v4732_v39  ;;  %v1375_v51 = vpop.permute.xlu1 %1374  ;;  %v1386_v52 = vpop.permute.xlu0 %1385  ;;  %v2672_v45 = vsel %vm1004_vm0, %v2517_v6, 0.0  ;;  %v2754_v9 = vadd.f32 %v2753_v2, %v2752_v48  ;;  %v2537_v49 = vld [vmem:[%s4348_s18 + $0x178] sm:$0xff]  ;;  %v1453_v61 = vld [vmem:[#allocation2 + $0x1e0] sm:$0xff] }
 0x163   : > { %2913 = vbcast.lane.b32.xlu0 %v2652_v35, 256  ;;  %2917 = vbcast.lane.b32.xlu1 %v2652_v35, 264  ;;  %1379 = vst.msk [vmem:[#allocation2 + $0x7b8] sm:$0xff] %vm1088_vm6, %v1375_v51  ;;  %v2747_v35 = vadd.f32 %v2746_v26, %v2745_v62  ;;  %v2611_v44 = vrot.slane %v2610_v31, 4  ;;  %v2669_v51 = vrot.slane %v2668_v4, 1  ;;  %v2617_v62 = vsel %vm1004_vm0, %v2504_v56, 0.0 }
 0x164   : > { %1391 = vst.msk [vmem:[#allocation2 + $0x7d8] sm:$0xff] %vm1102_vm7, %v1386_v52  ;;  %v1437_v52 = vld [vmem:[#allocation2 + $0x160] sm:$0xff]  ;;  %v2619_v46 = vadd.f32 %v2618_v40, %v2617_v62  ;;  %v1470_v62 = vld [vmem:[#allocation2 + $0x268] sm:$0xff] }
 0x165   : > { %1746 = vmatmul.mubr.f32.gmra.mxu1 %v1413_v37  ;;  %2131 = vmatmul.mubr.f32.gmra.mxu0 %v4732_v39  ;;  %v2805_v37 = vadd.f32 %v2804_v24, %v2803_v14  ;;  %v2748_v0 = vrot.slane %v2747_v35, 2  ;;  %v2612_v16 = vadd.f32 %v2611_v44, %v2610_v31  ;;  %v2670_v22 = vadd.f32 %v2669_v51, %v2668_v4  ;;  %v3756_v44 = vld [vmem:[%s4348_s18 + $0x188] sm:$0xff] }
 0x166   : > { %1750 = vmatprep.mubr.f32.mxu1 %v4732_v39  ;;  %2135 = vmatprep.mubr.f32.mxu0 %v4732_v39  ;;  %v1388_v20 = vpop.permute.xlu1 %1387  ;;  %v2620_v6 = vrot.slane %v2619_v46, 4  ;;  %v2762_v31 = vsel %vm1004_vm0, %v2537_v49, 0.0  ;;  %1301 = vst.msk [vmem:[#allocation2 + $0x638] sm:$0xff] %vm1004_vm0, %v3756_v44  ;;  %v1514_v44 = vld [vmem:[#allocation2 + $0x3c8] sm:$0xff] }
 0x167   : > { %2976 = vbcast.lane.b32.xlu0 %v2733_v47, 256  ;;  %2980 = vbcast.lane.b32.xlu1 %v2733_v47, 264  ;;  %1392 = vst.msk [vmem:[#allocation2 + $0x7f8] sm:$0xff] %vm1102_vm7, %v1388_v20  ;;  %v2673_v47 = vadd.f32 %v2672_v45, %v2671_v55  ;;  %v2613_v54 = vrot.slane %v2612_v16, 2  ;;  %v2550_v55 = vld [vmem:[%s4348_s18 + $0x1e0] sm:$0xff]  ;;  %v2551_v45 = vld [vmem:[%s4348_s18 + $0x1e8] sm:$0xff] }
 0x168   : > { %v2824_v48 = vsel %vm1004_vm0, %v2550_v55, 0.0  ;;  %v2825_v2 = vsel %vm1004_vm0, %v2551_v45, 0.0  ;;  %v1498_v55 = vld [vmem:[#allocation2 + $0x348] sm:$0xff] }
 0x169   : > { %1751 = vmatmul.mubr.f32.gmra.mxu1 %v1417_v60  ;;  %2136 = vmatmul.mubr.f32.gmra.mxu0 %v4732_v39  ;;  %v2749_v60 = vadd.f32 %v2748_v0, %v2747_v35  ;;  %v2674_v17 = vrot.slane %v2673_v47, 4  ;;  %v2614_v15 = vadd.f32 %v2613_v54, %v2612_v16  ;;  %v3755_v35 = vld [vmem:[%s4348_s18 + $0x180] sm:$0xff] }
 0x16a   : > { %1755 = vmatprep.mubr.f32.mxu1 %v4732_v39  ;;  %2140 = vmatprep.mubr.f32.mxu0 %v4732_v39  ;;  %1300 = vst.msk [vmem:[#allocation2 + $0x618] sm:$0xff] %vm1004_vm0, %v3755_v35  ;;  %v1490_v35 = vld [vmem:[#allocation2 + $0x308] sm:$0xff]  ;;  %v5110_v45 = vpop.permute.xlu1 %2847 }
 0x16b   : > { %3025 = vbcast.lane.b32.xlu0 %v2796_v7, 256  ;;  %3029 = vbcast.lane.b32.xlu1 %v2796_v7, 264  ;;  %v2811_v7 = vrot.slane %v2810_v43, 2  ;;  %v2750_v20 = vrot.slane %v2749_v60, 1  ;;  %v2675_v34 = vadd.f32 %v2674_v17, %v2673_v47  ;;  %v2615_v24 = vrot.slane %v2614_v15, 1 }
 0x16c   : > { %v2826_v17 = vadd.f32 %v2825_v2, %v2824_v48  ;;  %v1518_v2 = vld [vmem:[#allocation2 + $0x3e8] sm:$0xff] }
 0x16d   : > { %1756 = vmatmul.mubr.f32.gmra.mxu1 %v1421_v33  ;;  %2141 = vmatmul.mubr.f32.gmra.mxu0 %v4732_v39  ;;  %v2812_v21 = vadd.f32 %v2811_v7, %v2810_v43  ;;  %v2755_v33 = vrot.slane %v2754_v9, 4  ;;  %v2676_v26 = vrot.slane %v2675_v34, 2  ;;  %v2616_v38 = vadd.f32 %v2615_v24, %v2614_v15 }
 0x16e   : > { %1760 = vmatprep.mubr.f32.mxu1 %v4732_v39  ;;  %2145 = vmatprep.mubr.f32.mxu0 %v4732_v39 }
 0x16f   : > { %2871 = vbcast.lane.b32.xlu0 %v2598_v53, 256  ;;  %2875 = vbcast.lane.b32.xlu1 %v2598_v53, 264  ;;  %v2817_v53 = vadd.f32 %v2816_v11, %v2815_v10  ;;  %v2756_v18 = vadd.f32 %v2755_v33, %v2754_v9  ;;  %v2813_v14 = vrot.slane %v2812_v21, 1  ;;  %v2677_v30 = vadd.f32 %v2676_v26, %v2675_v34  ;;  %v1478_v26 = vld [vmem:[#allocation2 + $0x2a8] sm:$0xff] }
 0x170   : > { %v2689_v10 = vsel %vm1004_vm0, %v2520_v42, 0.0  ;;  %v2690_v11 = vsel %vm1004_vm0, %v2521_v29, 0.0  ;;  %v2827_v33 = vrot.slane %v2826_v17, 4 }
 0x171   : > { %1761 = vmatmul.mubr.f32.gmra.mxu1 %v1425_v63  ;;  %2146 = vmatmul.mubr.f32.gmra.mxu0 %v4732_v39  ;;  %v2818_v19 = vrot.slane %v2817_v53, 4  ;;  %v2751_v63 = vadd.f32 %v2750_v20, %v2749_v60  ;;  %v2757_v5 = vrot.slane %v2756_v18, 2  ;;  %v2678_v0 = vrot.slane %v2677_v30, 1  ;;  %v1462_v60 = vld [vmem:[#allocation2 + $0x228] sm:$0xff] }
 0x172   : > { %1765 = vmatprep.mubr.f32.mxu1 %v4732_v39  ;;  %2150 = vmatprep.mubr.f32.mxu0 %v4732_v39 }
 0x173   : > { %2920 = vbcast.lane.b32.xlu0 %v2661_v3, 256  ;;  %2924 = vbcast.lane.b32.xlu1 %v2661_v3, 264  ;;  %v2681_v3 = vsel %vm1004_vm0, %v2519_v27, 0.0  ;;  %v2819_v13 = vadd.f32 %v2818_v19, %v2817_v53  ;;  %v2758_v1 = vadd.f32 %v2757_v5, %v2756_v18  ;;  %v2679_v7 = vadd.f32 %v2678_v0, %v2677_v30  ;;  %v1474_v19 = vld [vmem:[#allocation2 + $0x288] sm:$0xff] }
 0x174   : > { %v2682_v58 = vadd.f32 %v2681_v3, %v2680_v12  ;;  %v2691_v53 = vadd.f32 %v2690_v11, %v2689_v10  ;;  %v2828_v27 = vadd.f32 %v2827_v33, %v2826_v17  ;;  %v1510_v0 = vld [vmem:[#allocation2 + $0x3a8] sm:$0xff]  ;;  %v3425_v17 = vld [vmem:[%s5721_s4 + $0x30] sm:$0xff] }
 0x175   : > { %1766 = vmatmul.mubr.f32.gmra.mxu1 %v1429_v8  ;;  %2151 = vmatmul.mubr.f32.gmra.mxu0 %v4732_v39  ;;  %v2814_v8 = vadd.f32 %v2813_v14, %v2812_v21  ;;  %v2820_v4 = vrot.slane %v2819_v13, 2  ;;  %v2759_v51 = vrot.slane %v2758_v1, 1  ;;  %v1535_v10 = vld [vmem:[#allocation2 + $0x470] sm:$0xff] }
 0x176   : > { %1770 = vmatprep.mubr.f32.mxu1 %v4732_v39  ;;  %2155 = vmatprep.mubr.f32.mxu0 %v4732_v39  ;;  %v2683_v43 = vrot.slane %v2682_v58, 4  ;;  %v2829_v14 = vrot.slane %v2828_v27, 2 }
 0x177   : > { %2983 = vbcast.lane.b32.xlu0 %v2742_v59, 256  ;;  %2987 = vbcast.lane.b32.xlu1 %v2742_v59, 264  ;;  %v2760_v56 = vadd.f32 %v2759_v51, %v2758_v1  ;;  %v1523_v51 = vld [vmem:[#allocation2 + $0x410] sm:$0xff] }
 0x178   : > { %v2684_v9 = vadd.f32 %v2683_v43, %v2682_v58 }
 0x179   : > { %1771 = vmatmul.mubr.f32.gmra.mxu1 %v1433_v36  ;;  %2156 = vmatmul.mubr.f32.gmra.mxu0 %v4732_v39  ;;  %v2621_v36 = vadd.f32 %v2620_v6, %v2619_v46 }
 0x17a   : > { %1775 = vmatprep.mubr.f32.mxu1 %v4732_v39  ;;  %2160 = vmatprep.mubr.f32.mxu0 %v4732_v39  ;;  %v2685_v20 = vrot.slane %v2684_v9, 2 }
 0x17b   : > { %3032 = vbcast.lane.b32.xlu0 %v2805_v37, 256  ;;  %3036 = vbcast.lane.b32.xlu1 %v2805_v37, 264  ;;  %v1458_v37 = vld [vmem:[#allocation2 + $0x208] sm:$0xff] }
 0x17c   : > { %v2686_v40 = vadd.f32 %v2685_v20, %v2684_v9 }
 0x17d   : > { %1776 = vmatmul.mubr.f32.gmra.mxu1 %v1437_v52  ;;  %2161 = vmatmul.mubr.f32.gmra.mxu0 %v4732_v39  ;;  %v2821_v52 = vadd.f32 %v2820_v4, %v2819_v13  ;;  %v5120_v4 = vpop.permute.xlu1 %2854 }
 0x17e   : > { %1780 = vmatprep.mubr.f32.mxu1 %v4732_v39  ;;  %2165 = vmatprep.mubr.f32.mxu0 %v4732_v39  ;;  %v2687_v46 = vrot.slane %v2686_v40, 1 }
 0x17f   : > { %2878 = vbcast.lane.b32.xlu0 %v2607_v32, 256  ;;  %2882 = vbcast.lane.b32.xlu1 %v2607_v32, 264  ;;  %v2622_v32 = vrot.slane %v2621_v36, 2  ;;  %v2822_v57 = vrot.slane %v2821_v52, 1 }
 0x180   : > { %v2688_v12 = vadd.f32 %v2687_v46, %v2686_v40 }
 0x181   : > { %1781 = vmatmul.mubr.f32.gmra.mxu1 %v1441_v25  ;;  %2166 = vmatmul.mubr.f32.gmra.mxu0 %v4732_v39  ;;  %v1466_v25 = vld [vmem:[#allocation2 + $0x248] sm:$0xff]  ;;  %v2823_v54 = vadd.f32 %v2822_v57, %v2821_v52  ;;  %v5130_v43 = vpop.permute.xlu1 %2959 }
 0x182   : > { %1785 = vmatprep.mubr.f32.mxu1 %v4732_v39  ;;  %2170 = vmatprep.mubr.f32.mxu0 %v4732_v39  ;;  %v2536_v39 = vld [vmem:[%s4348_s18 + $0x170] sm:$0xff] }
 0x183   : > { %2927 = vbcast.lane.b32.xlu0 %v2670_v22, 256  ;;  %2931 = vbcast.lane.b32.xlu1 %v2670_v22, 264  ;;  %v2761_v59 = vsel %vm1004_vm0, %v2536_v39, 0.0  ;;  %v2623_v22 = vadd.f32 %v2622_v32, %v2621_v36  ;;  %v2830_v39 = vadd.f32 %v2829_v14, %v2828_v27  ;;  %v1506_v36 = vld [vmem:[#allocation2 + $0x388] sm:$0xff]  ;;  %v1527_v32 = vld [vmem:[#allocation2 + $0x430] sm:$0xff] }
 0x184   : > { %v2763_v47 = vadd.f32 %v2762_v31, %v2761_v59  ;;  %v1494_v59 = vld [vmem:[#allocation2 + $0x328] sm:$0xff]  ;;  %v5108_v31 = vpop.permute.xlu0 %2843 }
 0x185   : > { %1786 = vmatmul.mubr.f32.gmra.mxu1 %v1445_v28  ;;  %2171 = vmatmul.mubr.f32.gmra.mxu0 %v5055_v23  ;;  %v2624_v34 = vrot.slane %v2623_v22, 1  ;;  %v2692_v28 = vrot.slane %v2691_v53, 4  ;;  %v2831_v13 = vrot.slane %v2830_v39, 1  ;;  %v5140_v48 = vpop.permute.xlu1 %2966  ;;  %v3424_v14 = vld [vmem:[%s5721_s4 + $0x28] sm:$0xff] }
 0x186   : > { %1790 = vmatprep.mubr.f32.mxu1 %v5055_v23  ;;  %2175 = vmatprep.mubr.f32.mxu0 %v5055_v23  ;;  %v2764_v16 = vrot.slane %v2763_v47, 4 }
 0x187   : > { %2990 = vbcast.lane.b32.xlu0 %v2751_v63, 256  ;;  %2994 = vbcast.lane.b32.xlu1 %v2751_v63, 264  ;;  %v2625_v18 = vadd.f32 %v2624_v34, %v2623_v22  ;;  %v2693_v15 = vadd.f32 %v2692_v28, %v2691_v53  ;;  %v2832_v24 = vadd.f32 %v2831_v13, %v2830_v39  ;;  %v1543_v22 = vld [vmem:[#allocation2 + $0x4b0] sm:$0xff]  ;;  %v1588_v13 = vld [vmem:[#allocation2 + $0x618] sm:$0xff] }
 0x188   : > { %v2765_v21 = vadd.f32 %v2764_v16, %v2763_v47  ;;  %v5115_v1 = vpop.permute.xlu0 %2850  ;;  %v1551_v53 = vld [vmem:[#allocation2 + $0x4f0] sm:$0xff] }
 0x189   : > { %1791 = vmatmul.mubr.f32.gmra.mxu1 %v1449_v50  ;;  %2176 = vmatmul.mubr.f32.gmra.mxu0 %v5055_v23  ;;  %v2694_v49 = vrot.slane %v2693_v15, 2  ;;  %v1482_v50 = vld [vmem:[#allocation2 + $0x2c8] sm:$0xff]  ;;  %v5147_v29 = vpop.permute.xlu1 %2861  ;;  %v1555_v34 = vld [vmem:[#allocation2 + $0x510] sm:$0xff] }
 0x18a   : > { %1795 = vmatprep.mubr.f32.mxu1 %v5055_v23  ;;  %2180 = vmatprep.mubr.f32.mxu0 %v5055_v23  ;;  %v2766_v41 = vrot.slane %v2765_v21, 2  ;;  %v1563_v28 = vld [vmem:[#allocation2 + $0x550] sm:$0xff] }
 0x18b   : > { %3039 = vbcast.lane.b32.xlu0 %v2814_v8, 256  ;;  %3043 = vbcast.lane.b32.xlu1 %v2814_v8, 264  ;;  %v2695_v6 = vadd.f32 %v2694_v49, %v2693_v15  ;;  %v1486_v8 = vld [vmem:[#allocation2 + $0x2e8] sm:$0xff]  ;;  %v1571_v15 = vld [vmem:[#allocation2 + $0x590] sm:$0xff] }
 0x18c   : > { %v2767_v63 = vadd.f32 %v2766_v41, %v2765_v21  ;;  %v1547_v21 = vld [vmem:[#allocation2 + $0x4d0] sm:$0xff] }
 0x18d   : > { %1796 = vmatmul.mubr.f32.gmra.mxu1 %v1453_v61  ;;  %2181 = vmatmul.mubr.f32.gmra.mxu0 %v5055_v23  ;;  %v2696_v30 = vrot.slane %v2695_v6, 1  ;;  %v1502_v61 = vld [vmem:[#allocation2 + $0x368] sm:$0xff]  ;;  %v1559_v41 = vld [vmem:[#allocation2 + $0x530] sm:$0xff] }
 0x18e   : > { %1800 = vmatprep.mubr.f32.mxu1 %v1458_v37  ;;  %2185 = vmatprep.mubr.f32.mxu0 %v5055_v23  ;;  %v2768_v3 = vrot.slane %v2767_v63, 1  ;;  %v3426_v37 = vld [vmem:[%s5721_s4 + $0x38] sm:$0xff]  ;;  %v1579_v39 = vld [vmem:[#allocation2 + $0x5d0] sm:$0xff] }
 0x18f   : > { %2885 = vbcast.lane.b32.xlu0 %v2616_v38, 256  ;;  %2889 = vbcast.lane.b32.xlu1 %v2616_v38, 264  ;;  %v2697_v58 = vadd.f32 %v2696_v30, %v2695_v6  ;;  %v5128_v38 = vpop.permute.xlu0 %2955 }
 0x190   : > { %v2769_v5 = vadd.f32 %v2768_v3, %v2767_v63  ;;  %4004 = vmatprep.subr.mxu0 %v3426_v37  ;;  %4058 = vmatprep.subr.mxu1 %v3426_v37 }
 0x191   : > { %1801 = vmatmul.mubr.f32.gmra.mxu1 %v5055_v23  ;;  %2186 = vmatmul.mubr.f32.gmra.mxu0 %v5055_v23 }
 0x192   : > { %1805 = vmatprep.mubr.f32.mxu1 %v1462_v60  ;;  %2190 = vmatprep.mubr.f32.mxu0 %v5055_v23  ;;  %v5158_v60 = vpop.permute.xlu1 %2903 }
 0x193   : > { %2934 = vbcast.lane.b32.xlu0 %v2679_v7, 256  ;;  %2938 = vbcast.lane.b32.xlu1 %v2679_v7, 264  ;;  %v5135_v47 = vpop.permute.xlu0 %2962  ;;  %v1531_v7 = vld [vmem:[#allocation2 + $0x450] sm:$0xff] }
 0x194   : > { %4005 = vmatpush3.msra.mxu0 %v3426_v37  ;;  %4066 = vmatpush3.msra.mxu1 %v3426_v37 }
 0x195   : > { %1806 = vmatmul.mubr.f32.gmra.mxu1 %v5055_v23  ;;  %2191 = vmatmul.mubr.f32.gmra.mxu0 %v5055_v23 }
 0x196   : > { %1810 = vmatprep.mubr.f32.mxu1 %v1466_v25  ;;  %2195 = vmatprep.mubr.f32.mxu0 %v5055_v23  ;;  %v5165_v16 = vpop.permute.xlu1 %2910 }
 0x197   : > { %2997 = vbcast.lane.b32.xlu0 %v2760_v56, 256  ;;  %3001 = vbcast.lane.b32.xlu1 %v2760_v56, 264  ;;  %v5145_v42 = vpop.permute.xlu0 %2857  ;;  %v1539_v56 = vld [vmem:[#allocation2 + $0x490] sm:$0xff] }
 0x198   : > { %4006 = vmatprep.subr.mxu0 %v3425_v17  ;;  %4059 = vmatprep.subr.mxu1 %v3425_v17 }
 0x199   : > { %1811 = vmatmul.mubr.f32.gmra.mxu1 %v5055_v23  ;;  %2196 = vmatmul.mubr.f32.gmra.mxu0 %v5055_v23 }
 0x19a   : > { %1815 = vmatprep.mubr.f32.mxu1 %v1470_v62  ;;  %2200 = vmatprep.mubr.f32.mxu0 %v5055_v23 }
 0x19b   : > { %3046 = vbcast.lane.b32.xlu0 %v2823_v54, 256  ;;  %3050 = vbcast.lane.b32.xlu1 %v2823_v54, 264  ;;  %v5153_v52 = vpop.permute.xlu0 %2899 }
 0x19c   : > { %4007 = vmatpush3.msra.mxu0 %v3425_v17  ;;  %4067 = vmatpush3.msra.mxu1 %v3425_v17 }
 0x19d   : > { %1816 = vmatmul.mubr.f32.gmra.mxu1 %v5055_v23  ;;  %2201 = vmatmul.mubr.f32.gmra.mxu0 %v5055_v23 }
 0x19e   : > { %1820 = vmatprep.mubr.f32.mxu1 %v1474_v19  ;;  %2205 = vmatprep.mubr.f32.mxu0 %v5055_v23  ;;  %v1567_v19 = vld [vmem:[#allocation2 + $0x570] sm:$0xff] }
 0x19f   : > { %2892 = vbcast.lane.b32.xlu0 %v2625_v18, 256  ;;  %2896 = vbcast.lane.b32.xlu1 %v2625_v18, 264  ;;  %v5163_v9 = vpop.permute.xlu0 %2906 }
 0x1a0   : > { %4008 = vmatprep.subr.mxu0 %v3424_v14  ;;  %4060 = vmatprep.subr.mxu1 %v3424_v14 }
 0x1a1   : > { %1821 = vmatmul.mubr.f32.gmra.mxu1 %v5055_v23  ;;  %2206 = vmatmul.mubr.f32.gmra.mxu0 %v5055_v23 }
 0x1a2   : > { %1825 = vmatprep.mubr.f32.mxu1 %v1478_v26  ;;  %2210 = vmatprep.mubr.f32.mxu0 %v5055_v23 }
 0x1a3   : > { %2941 = vbcast.lane.b32.xlu0 %v2688_v12, 256  ;;  %2945 = vbcast.lane.b32.xlu1 %v2688_v12, 264  ;;  %v1575_v12 = vld [vmem:[#allocation2 + $0x5b0] sm:$0xff] }
 0x1a4   : > { %4009 = vmatpush3.msra.mxu0 %v3424_v14  ;;  %4068 = vmatpush3.msra.mxu1 %v3424_v14 }
 0x1a5   : > { %1826 = vmatmul.mubr.f32.gmra.mxu1 %v5055_v23  ;;  %2211 = vmatmul.mubr.f32.gmra.mxu0 %v5055_v23 }
 0x1a6   : > { %1830 = vmatprep.mubr.f32.mxu1 %v1482_v50  ;;  %2215 = vmatprep.mubr.f32.mxu0 %v5055_v23 }
 0x1a7   : > { %3004 = vbcast.lane.b32.xlu0 %v2769_v5, 256  ;;  %3008 = vbcast.lane.b32.xlu1 %v2769_v5, 264  ;;  %v1583_v5 = vld [vmem:[#allocation2 + $0x5f0] sm:$0xff] }
 0x1a9   : > { %1831 = vmatmul.mubr.f32.gmra.mxu1 %v5055_v23  ;;  %2216 = vmatmul.mubr.f32.gmra.mxu0 %v5055_v23 }
 0x1aa   : > { %1835 = vmatprep.mubr.f32.mxu1 %v1486_v8  ;;  %2220 = vmatprep.mubr.f32.mxu0 %v5055_v23  ;;  %v2552_v8 = vld [vmem:[%s4348_s18 + $0x1f0] sm:$0xff] }
 0x1ab   : > { %3053 = vbcast.lane.b32.xlu0 %v2832_v24, 256  ;;  %3057 = vbcast.lane.b32.xlu1 %v2832_v24, 264  ;;  %v2553_v24 = vld [vmem:[%s4348_s18 + $0x1f8] sm:$0xff]  ;;  %s263_s18 = sand.u32 1, %s4187_s22  }
 0x1ac   : > { %s3702_s19 = sshll.u32 %s263_s18, 5  ;;  %s5677_s12 = scalar_lea.sflag [#allocation4], %s263_s18 }
 0x1ad   : > { %1836 = vmatmul.mubr.f32.gmra.mxu1 %v5055_v23  ;;  %2221 = vmatmul.mubr.f32.gmra.mxu0 %v5055_v23  ;;  %s265_s20 = scalar_lea.vmem [#allocation3], %s3702_s19 }
 0x1ae   : > { %1840 = vmatprep.mubr.f32.mxu1 %v1490_v35  ;;  %2225 = vmatprep.mubr.f32.mxu0 %v5055_v23  ;;  %v2833_v35 = vsel %vm1004_vm0, %v2552_v8, 0.0  ;;  %s3624_s26 = sshll.u32 %s265_s20, 4  ;;  %s5668_s26 = int_to_ptr.vmem [resolvable:$true] %s3624_s26 }
 0x1af   : > { %2948 = vbcast.lane.b32.xlu0 %v2697_v58, 256  ;;  %2952 = vbcast.lane.b32.xlu1 %v2697_v58, 264  ;;  %v2834_v58 = vsel %vm1004_vm0, %v2553_v24, 0.0  ;;  %s4135_s25 = scalar_lea.vmem %s5668_s26, 512  ;;  %p4142_p0 = scmp.lt.s32.totalorder %s5668_s26, %s4140_s14 }
 0x1b0   : > { %p4136_p11 = scmp.ne.s32.totalorder %s5668_s26, %s4135_s25  ;;  %p4143_p1 = scmp.lt.s32.totalorder %s4141_s10, %s4135_s25 }
 0x1b1   : > { %1841 = vmatmul.mubr.f32.gmra.mxu1 %v5055_v23  ;;  %2226 = vmatmul.mubr.f32.gmra.mxu0 %v5055_v23 }
 0x1b2   : > { %1845 = vmatprep.mubr.f32.mxu1 %v1494_v59  ;;  %2230 = vmatprep.mubr.f32.mxu0 %v5055_v23  ;;  %v1592_v59 = vld [vmem:[#allocation2 + $0x638] sm:$0xff]  ;;  %p4137_p12 = pnand %p4136_p11, %p4281_p5  ;;  %p4144_p2 = por %p4143_p1, %p4142_p0 }
 0x1b4   : > { %p4138_p13 = pneg %p4137_p12 }
 0x1b5   : > { %1846 = vmatmul.mubr.f32.gmra.mxu1 %v5055_v23  ;;  %2231 = vmatmul.mubr.f32.gmra.mxu0 %v5055_v23 }
 0x1b6   : > { %1850 = vmatprep.mubr.f32.mxu1 %v1498_v55  ;;  %2235 = vmatprep.mubr.f32.mxu0 %v5055_v23  ;;  %v2835_v55 = vadd.f32 %v2834_v58, %v2833_v35  ;;  %v3422_v58 = vld [vmem:[%s5721_s4 + $0x18] sm:$0xff]  ;;  %p4145_p3 = pnand %p4144_p2, %p4138_p13 }
 0x1b8   : > { %v2836_v37 = vrot.slane %v2835_v55, 4 }
 0x1b9   : > { %1851 = vmatmul.mubr.f32.gmra.mxu1 %v5055_v23  ;;  %2236 = vmatmul.mubr.f32.gmra.mxu0 %v5055_v23 }
 0x1ba   : > { %1855 = vmatprep.mubr.f32.mxu1 %v1502_v61  ;;  %2240 = vmatprep.mubr.f32.mxu0 %v5055_v23 }
 0x1bd   : > { %1856 = vmatmul.mubr.f32.gmra.mxu1 %v5055_v23  ;;  %2241 = vmatmul.mubr.f32.gmra.mxu0 %v5055_v23 }
 0x1be   : > { %1860 = vmatprep.mubr.f32.mxu1 %v1506_v36  ;;  %2245 = vmatprep.mubr.f32.mxu0 %v5055_v23 }
 0x1c1   : > { %1861 = vmatmul.mubr.f32.gmra.mxu1 %v5055_v23  ;;  %2246 = vmatmul.mubr.f32.gmra.mxu0 %v5055_v23 }
 0x1c2   : > { %1865 = vmatprep.mubr.f32.mxu1 %v1510_v0  ;;  %2250 = vmatprep.mubr.f32.mxu0 %v5055_v23 }
 0x1c5   : > { %1866 = vmatmul.mubr.f32.gmra.mxu1 %v5055_v23  ;;  %2251 = vmatmul.mubr.f32.gmra.mxu0 %v5055_v23  ;;  %v5173_v11 = vpop.permute.xlu0 %2969  ;;  %v5178_v57 = vpop.permute.xlu1 %2973 }
 0x1c6   : > { %1870 = vmatprep.mubr.f32.mxu1 %v1514_v44  ;;  %2255 = vmatprep.mubr.f32.mxu0 %v5055_v23 }
 0x1c9   : > { %1871 = vmatmul.mubr.f32.gmra.mxu1 %v5055_v23  ;;  %2256 = vmatmul.mubr.f32.gmra.mxu0 %v5055_v23  ;;  %v5183_v25 = vpop.permute.xlu0 %3011  ;;  %v5185_v20 = vpop.permute.xlu1 %3015 }
 0x1ca   : > { %1875 = vmatprep.mubr.f32.mxu1 %v1518_v2  ;;  %2260 = vmatprep.mubr.f32.mxu0 %v5055_v23  ;;  %5726 = vst [vmem:[#allocation6_spill] sm:$0xff] %v5183_v25  ;;  %5727 = vst [vmem:[#allocation7_spill] sm:$0xff] %v5185_v20 }
 0x1cd   : > { %1876 = vmatmul.mubr.f32.gmra.mxu1 %v5055_v23  ;;  %2261 = vmatmul.mubr.f32.gmra.mxu0 %v5055_v23  ;;  %v5190_v33 = vpop.permute.xlu0 %3018  ;;  %v5195_v54 = vpop.permute.xlu1 %3022 }
 0x1ce   : > { %1880 = vmatprep.mubr.f32.mxu1 %v5055_v23  ;;  %2265 = vmatprep.mubr.f32.mxu0 %v5055_v23  ;;  %5728 = vst [vmem:[#allocation8_spill] sm:$0xff] %v5190_v33  ;;  %5729 = vst [vmem:[#allocation9_spill] sm:$0xff] %v5195_v54 }
 0x1d1   : > { %1881 = vmatmul.mubr.f32.gmra.mxu1 %v5055_v23  ;;  %2266 = vmatmul.mubr.f32.gmra.mxu0 %v1523_v51  ;;  %v5200_v62 = vpop.permute.xlu0 %2864  ;;  %v5202_v40 = vpop.permute.xlu1 %2868  ;;  %v1596_v51 = vld [vmem:[#allocation2 + $0x658] sm:$0xff] }
 0x1d2   : > { %1885 = vmatprep.mubr.f32.mxu1 %v5055_v23  ;;  %2270 = vmatprep.mubr.f32.mxu0 %v5055_v23 }
 0x1d5   : > { %1886 = vmatmul.mubr.f32.gmra.mxu1 %v5055_v23  ;;  %2271 = vmatmul.mubr.f32.gmra.mxu0 %v1527_v32  ;;  %v5207_v27 = vpop.permute.xlu0 %2913  ;;  %v5212_v18 = vpop.permute.xlu1 %2917  ;;  %v3423_v32 = vld [vmem:[%s5721_s4 + $0x20] sm:$0xff] }
 0x1d6   : > { %1890 = vmatprep.mubr.f32.mxu1 %v5055_v23  ;;  %2275 = vmatprep.mubr.f32.mxu0 %v5055_v23 }
 0x1d7   : > { %4010 = vmatprep.subr.mxu0 %v3423_v32  ;;  %4061 = vmatprep.subr.mxu1 %v3423_v32 }
 0x1d8   : > { %4011 = vmatpush3.msra.mxu0 %v3423_v32  ;;  %4069 = vmatpush3.msra.mxu1 %v3423_v32 }
 0x1d9   : > { %1891 = vmatmul.mubr.f32.gmra.mxu1 %v5055_v23  ;;  %2276 = vmatmul.mubr.f32.gmra.mxu0 %v1531_v7  ;;  %v5217_v46 = vpop.permute.xlu0 %2976  ;;  %v5219_v63 = vpop.permute.xlu1 %2980  ;;  %v2837_v7 = vadd.f32 %v2836_v37, %v2835_v55 }
 0x1da   : > { %1895 = vmatprep.mubr.f32.mxu1 %v5055_v23  ;;  %2280 = vmatprep.mubr.f32.mxu0 %v5055_v23 }
 0x1db   : > { %4012 = vmatprep.subr.mxu0 %v3422_v58  ;;  %4062 = vmatprep.subr.mxu1 %v3422_v58 }
 0x1dc   : > { %4013 = vmatpush3.msra.mxu0 %v3422_v58  ;;  %4070 = vmatpush3.msra.mxu1 %v3422_v58  ;;  %v3419_v58 = vld [vmem:[%s5721_s4] sm:$0xff] }
 0x1dd   : > { %1896 = vmatmul.mubr.f32.gmra.mxu1 %v5055_v23  ;;  %2281 = vmatmul.mubr.f32.gmra.mxu0 %v1535_v10  ;;  %v5227_v26 = vpop.permute.xlu0 %3025  ;;  %v5232_v3 = vpop.permute.xlu1 %3029 }
 0x1de   : > { %1900 = vmatprep.mubr.f32.mxu1 %v5055_v23  ;;  %2285 = vmatprep.mubr.f32.mxu0 %v5055_v23  ;;  %5730 = vst [vmem:[#allocation10_spill] sm:$0xff] %v5227_v26  ;;  %5731 = vst [vmem:[#allocation11_spill] sm:$0xff] %v5232_v3 }
 0x1e1   : > { %1901 = vmatmul.mubr.f32.gmra.mxu1 %v5055_v23  ;;  %2286 = vmatmul.mubr.f32.gmra.mxu0 %v1539_v56  ;;  %v5237_v49 = vpop.permute.xlu0 %2871  ;;  %v5239_v50 = vpop.permute.xlu1 %2875 }
 0x1e2   : > { %1905 = vmatprep.mubr.f32.mxu1 %v5055_v23  ;;  %2290 = vmatprep.mubr.f32.mxu0 %v5055_v23 }
 0x1e5   : > { %1906 = vmatmul.mubr.f32.gmra.mxu1 %v5055_v23  ;;  %2291 = vmatmul.mubr.f32.gmra.mxu0 %v1543_v22  ;;  %v5244_v6 = vpop.permute.xlu0 %2920  ;;  %v5250_v30 = vpop.permute.xlu1 %2924  ;;  %v2838_v22 = vrot.slane %v2837_v7, 2 }
 0x1e6   : > { %1910 = vmatprep.mubr.f32.mxu1 %v5055_v23  ;;  %2295 = vmatprep.mubr.f32.mxu0 %v5055_v23 }
 0x1e9   : > { %1911 = vmatmul.mubr.f32.gmra.mxu1 %v5055_v23  ;;  %2296 = vmatmul.mubr.f32.gmra.mxu0 %v1547_v21  ;;  %v5261_v0 = vpop.permute.xlu0 %2983  ;;  %v5266_v17 = vpop.permute.xlu1 %2987 }
 0x1ea   : > { %1915 = vmatprep.mubr.f32.mxu1 %v5055_v23  ;;  %2300 = vmatprep.mubr.f32.mxu0 %v5055_v23  ;;  %5732 = vst [vmem:[#allocation12_spill] sm:$0xff] %v5261_v0 }
 0x1ed   : > { %1916 = vmatmul.mubr.f32.gmra.mxu1 %v5055_v23  ;;  %2301 = vmatmul.mubr.f32.gmra.mxu0 %v1551_v53 }
 0x1ee   : > { %1920 = vmatprep.mubr.f32.mxu1 %v5055_v23  ;;  %2305 = vmatprep.mubr.f32.mxu0 %v5055_v23 }
 0x1f1   : > { %1921 = vmatmul.mubr.f32.gmra.mxu1 %v5055_v23  ;;  %2306 = vmatmul.mubr.f32.gmra.mxu0 %v1555_v34  ;;  %v1600_v34 = vld [vmem:[#allocation2 + $0x678] sm:$0xff] }
 0x1f2   : > { %1925 = vmatprep.mubr.f32.mxu1 %v5055_v23  ;;  %2310 = vmatprep.mubr.f32.mxu0 %v5055_v23 }
 0x1f5   : > { %1926 = vmatmul.mubr.f32.gmra.mxu1 %v5055_v23  ;;  %2311 = vmatmul.mubr.f32.gmra.mxu0 %v1559_v41  ;;  %v2839_v41 = vadd.f32 %v2838_v22, %v2837_v7 }
 0x1f6   : > { %1930 = vmatprep.mubr.f32.mxu1 %v5055_v23  ;;  %2315 = vmatprep.mubr.f32.mxu0 %v5055_v23 }
 0x1f9   : > { %1931 = vmatmul.mubr.f32.gmra.mxu1 %v5055_v23  ;;  %2316 = vmatmul.mubr.f32.gmra.mxu0 %v1563_v28  ;;  %v5275_v28 = vpop.permute.xlu0 %3032 }
 0x1fa   : > { %1935 = vmatprep.mubr.f32.mxu1 %v5055_v23  ;;  %2320 = vmatprep.mubr.f32.mxu0 %v5055_v23  ;;  %5733 = vst [vmem:[#allocation13_spill] sm:$0xff] %v5275_v28 }
 0x1fd   : > { %1936 = vmatmul.mubr.f32.gmra.mxu1 %v5055_v23  ;;  %2321 = vmatmul.mubr.f32.gmra.mxu0 %v1567_v19 }
 0x1fe   : > { %1940 = vmatprep.mubr.f32.mxu1 %v5055_v23  ;;  %2325 = vmatprep.mubr.f32.mxu0 %v5055_v23 }
 0x201   : > { %1941 = vmatmul.mubr.f32.gmra.mxu1 %v5055_v23  ;;  %2326 = vmatmul.mubr.f32.gmra.mxu0 %v1571_v15  ;;  %v2840_v15 = vrot.slane %v2839_v41, 1 }
 0x202   : > { %1945 = vmatprep.mubr.f32.mxu1 %v5055_v23  ;;  %2330 = vmatprep.mubr.f32.mxu0 %v5055_v23 }
 0x203   : > { %v2841_v8 = vadd.f32 %v2840_v15, %v2839_v41  ;;  %v3420_v41 = vld [vmem:[%s5721_s4 + $0x8] sm:$0xff] }
 0x205   : > { %1946 = vmatmul.mubr.f32.gmra.mxu1 %v5055_v23  ;;  %2331 = vmatmul.mubr.f32.gmra.mxu0 %v1575_v12  ;;  %v5284_v12 = vpop.permute.xlu1 %3036 }
 0x206   : > { %1950 = vmatprep.mubr.f32.mxu1 %v5055_v23  ;;  %2335 = vmatprep.mubr.f32.mxu0 %v5055_v23  ;;  %5734 = vst [vmem:[#allocation14_spill] sm:$0xff] %v5284_v12  ;;  %v1624_v12 = vld [vmem:[#allocation2 + $0x738] sm:$0xff] }
 0x207   : > { %3060 = vbcast.lane.b32.xlu0 %v2841_v8, 256  ;;  %3064 = vbcast.lane.b32.xlu1 %v2841_v8, 264 }
 0x209   : > { %1951 = vmatmul.mubr.f32.gmra.mxu1 %v5055_v23  ;;  %2336 = vmatmul.mubr.f32.gmra.mxu0 %v1579_v39 }
 0x20a   : > { %1955 = vmatprep.mubr.f32.mxu1 %v5055_v23  ;;  %2340 = vmatprep.mubr.f32.mxu0 %v5055_v23 }
 0x20d   : > { %1956 = vmatmul.mubr.f32.gmra.mxu1 %v5055_v23  ;;  %2341 = vmatmul.mubr.f32.gmra.mxu0 %v1583_v5 }
 0x20e   : > { %1960 = vmatprep.mubr.f32.mxu1 %v5055_v23  ;;  %2345 = vmatprep.mubr.f32.mxu0 %v1588_v13  ;;  %v1604_v13 = vld [vmem:[#allocation2 + $0x698] sm:$0xff] }
 0x211   : > { %v5254_v61 = vpop.f32.mrf.mxu1  ;;  %1961 = vmatmul.mubr.f32.gmra.mxu1 %v5055_v23  ;;  %v5257_v36 = vpop.f32.mrf.mxu0  ;;  %2346 = vmatmul.mubr.f32.gmra.mxu0 %v5055_v23 }
 0x212   : > { %1965 = vmatprep.mubr.f32.mxu1 %v5055_v23  ;;  %2350 = vmatprep.mubr.f32.mxu0 %v1592_v59  ;;  %v5296_v59 = vpop.permute.xlu0 %2878 }
 0x213   : > { %v1724_v44 = vpop.f32.mrf.mxu1  ;;  %v2109_v2 = vpop.f32.mrf.mxu0 }
 0x214   : > { %v1608_v44 = vld [vmem:[#allocation2 + $0x6b8] sm:$0xff]  ;;  %v5298_v2 = vpop.permute.xlu1 %2882 }
 0x215   : > { %v5268_v10 = vpop.f32.mrf.mxu1  ;;  %1966 = vmatmul.mubr.f32.gmra.mxu1 %v5055_v23  ;;  %v5271_v56 = vpop.f32.mrf.mxu0  ;;  %2351 = vmatmul.mubr.f32.gmra.mxu0 %v5055_v23 }
 0x216   : > { %1970 = vmatprep.mubr.f32.mxu1 %v5055_v23  ;;  %2355 = vmatprep.mubr.f32.mxu0 %v1596_v51  ;;  %v3421_v51 = vld [vmem:[%s5721_s4 + $0x10] sm:$0xff] }
 0x217   : > { %v1729_v21 = vpop.f32.mrf.mxu1  ;;  %v2114_v53 = vpop.f32.mrf.mxu0  ;;  %4014 = vmatprep.subr.mxu0 %v3421_v51  ;;  %4063 = vmatprep.subr.mxu1 %v3421_v51 }
 0x218   : > { %v1612_v53 = vld [vmem:[#allocation2 + $0x6d8] sm:$0xff]  ;;  %4015 = vmatpush3.msra.mxu0 %v3421_v51  ;;  %4071 = vmatpush3.msra.mxu1 %v3421_v51 }
 0x219   : > { %v5277_v19 = vpop.f32.mrf.mxu1  ;;  %1971 = vmatmul.mubr.f32.gmra.mxu1 %v5055_v23  ;;  %v5280_v14 = vpop.f32.mrf.mxu0  ;;  %2356 = vmatmul.mubr.f32.gmra.mxu0 %v5055_v23 }
 0x21a   : > { %1975 = vmatprep.mubr.f32.mxu1 %v5055_v23  ;;  %2360 = vmatprep.mubr.f32.mxu0 %v1600_v34  ;;  %v5308_v34 = vpop.permute.xlu0 %2927 }
 0x21b   : > { %v1734_v39 = vpop.f32.mrf.mxu1  ;;  %v2119_v5 = vpop.f32.mrf.mxu0  ;;  %4016 = vmatprep.subr.mxu0 %v3420_v41  ;;  %4064 = vmatprep.subr.mxu1 %v3420_v41 }
 0x21c   : > { %v5316_v5 = vpop.permute.xlu1 %2931  ;;  %4017 = vmatpush3.msra.mxu0 %v3420_v41  ;;  %4072 = vmatpush3.msra.mxu1 %v3420_v41 }
 0x21d   : > { %v5286_v24 = vpop.f32.mrf.mxu1  ;;  %1976 = vmatmul.mubr.f32.gmra.mxu1 %v5055_v23  ;;  %v5289_v35 = vpop.f32.mrf.mxu0  ;;  %2361 = vmatmul.mubr.f32.gmra.mxu0 %v5055_v23 }
 0x21e   : > { %1980 = vmatprep.mubr.f32.mxu1 %v5055_v23  ;;  %2365 = vmatprep.mubr.f32.mxu0 %v1604_v13 }
 0x21f   : > { %v1739_v55 = vpop.f32.mrf.mxu1  ;;  %v2124_v37 = vpop.f32.mrf.mxu0  ;;  %4018 = vmatprep.subr.mxu0 %v3419_v58  ;;  %4065 = vmatprep.subr.mxu1 %v3419_v58 }
 0x220   : > { %v1616_v55 = vld [vmem:[#allocation2 + $0x6f8] sm:$0xff]  ;;  %4019 = vmatpush3.msra.mxu0 %v3419_v58  ;;  %4073 = vmatpush3.msra.mxu1 %v3419_v58 }
 0x221   : > { %v1742_v32 = vpop.f32.mrf.mxu1  ;;  %1981 = vmatmul.mubr.f32.gmra.mxu1 %v5055_v23  ;;  %v5304_v7 = vpop.f32.mrf.mxu0  ;;  %2366 = vmatmul.mubr.f32.gmra.mxu0 %v5055_v23 }
 0x222   : > { %1985 = vmatprep.mubr.f32.mxu1 %v5055_v23  ;;  %2370 = vmatprep.mubr.f32.mxu0 %v1608_v44 }
 0x223   : > { %v1744_v22 = vpop.f32.mrf.mxu1  ;;  %v2129_v21 = vpop.f32.mrf.mxu0 }
 0x224   : > { %v5326_v22 = vpop.permute.xlu0 %2990 }
 0x225   : > { %v1747_v15 = vpop.f32.mrf.mxu1  ;;  %1986 = vmatmul.mubr.f32.gmra.mxu1 %v5055_v23  ;;  %v2132_v39 = vpop.f32.mrf.mxu0  ;;  %2371 = vmatmul.mubr.f32.gmra.mxu0 %v5055_v23  ;;  %5735 = vst [vmem:[#allocation15_spill] sm:$0xff] %v5326_v22 }
 0x226   : > { %1990 = vmatprep.mubr.f32.mxu1 %v5055_v23  ;;  %2375 = vmatprep.mubr.f32.mxu0 %v1612_v53 }
 0x227   : > { %v1749_v13 = vpop.f32.mrf.mxu1  ;;  %v2134_v8 = vpop.f32.mrf.mxu0 }
 0x228   : > { %v1620_v13 = vld [vmem:[#allocation2 + $0x718] sm:$0xff]  ;;  %v5328_v8 = vpop.permute.xlu1 %2994  ;;  %v5343_v33 = vpop.permute.xlu0 %3039 }
 0x229   : > { %v1752_v37 = vpop.f32.mrf.mxu1  ;;  %1991 = vmatmul.mubr.f32.gmra.mxu1 %v5055_v23  ;;  %v5322_v44 = vpop.f32.mrf.mxu0  ;;  %2376 = vmatmul.mubr.f32.gmra.mxu0 %v5055_v23  ;;  %5736 = vst [vmem:[#allocation16_spill] sm:$0xff] %v5328_v8  ;;  %5737 = vst [vmem:[#allocation17_spill] sm:$0xff] %v5343_v33 }
 0x22a   : > { %1995 = vmatprep.mubr.f32.mxu1 %v5055_v23  ;;  %2380 = vmatprep.mubr.f32.mxu0 %v1616_v55  ;;  %v5335_v55 = vld [vmem:[%s5720_s3] ss:$0 sm:$0xff] }
 0x22b   : > { %v1754_v21 = vpop.f32.mrf.mxu1  ;;  %v2139_v53 = vpop.f32.mrf.mxu0  ;;  %v1738_v41 = vadd.f32 %v5335_v55, %v5286_v24  ;;  %v1748_v26 = vadd.f32 %v5335_v55, %v1747_v15  ;;  %v1733_v20 = vadd.f32 %v5335_v55, %v5277_v19  ;;  %v1723_v15 = vadd.f32 %v5335_v55, %v5254_v61 }
 0x22c   : > { %v1728_v21 = vadd.f32 %v5335_v55, %v5268_v10  ;;  %v1753_v54 = vadd.f32 %v5335_v55, %v1752_v37 }
 0x22d   : > { %v1757_v51 = vpop.f32.mrf.mxu1  ;;  %1996 = vmatmul.mubr.f32.gmra.mxu1 %v5055_v23  ;;  %v2142_v28 = vpop.f32.mrf.mxu0  ;;  %2381 = vmatmul.mubr.f32.gmra.mxu0 %v5055_v23  ;;  %v2133_v33 = vadd.f32 %v2132_v39, %v1748_v26  ;;  %v2118_v22 = vadd.f32 %v5280_v14, %v1733_v20 }
 0x22e   : > { %2000 = vmatprep.mubr.f32.mxu1 %v5055_v23  ;;  %2385 = vmatprep.mubr.f32.mxu0 %v1620_v13  ;;  %v1743_v13 = vadd.f32 %v5335_v55, %v1742_v32  ;;  %v1758_v3 = vadd.f32 %v5335_v55, %v1757_v51  ;;  %v2113_v19 = vadd.f32 %v5271_v56, %v1728_v21  ;;  %v5366_v26 = vpop.permute.xlu0 %2885 }
 0x22f   : > { %v1759_v53 = vpop.f32.mrf.mxu1  ;;  %v2144_v25 = vpop.f32.mrf.mxu0  ;;  %v2123_v32 = vadd.f32 %v5289_v35, %v1738_v41  ;;  %v2108_v35 = vadd.f32 %v5257_v36, %v1723_v15  ;;  %v2138_v37 = vadd.f32 %v5322_v44, %v1753_v54 }
 0x230   : > { %v5352_v25 = vpop.permute.xlu1 %3043  ;;  %v1628_v53 = vld [vmem:[#allocation2 + $0x758] sm:$0xff]  ;;  %v2427_v39 = vmax.f32 %v2113_v19, 0.0 }
 0x231   : > { %v1762_v10 = vpop.f32.mrf.mxu1  ;;  %2001 = vmatmul.mubr.f32.gmra.mxu1 %v5055_v23  ;;  %v2147_v24 = vpop.f32.mrf.mxu0  ;;  %2386 = vmatmul.mubr.f32.gmra.mxu0 %v5055_v23  ;;  %5738 = vst [vmem:[#allocation18_spill] sm:$0xff] %v5352_v25  ;;  %v2143_v25 = vadd.f32 %v2142_v28, %v1758_v3  ;;  %v2429_v20 = vmax.f32 %v2123_v32, 0.0  ;;  %v1632_v3 = vld [vmem:[#allocation2 + $0x778] sm:$0xff]  ;;  %v2431_v28 = vmax.f32 %v2133_v33, 0.0  ;;  %v2426_v33 = vmax.f32 %v2108_v35, 0.0 }
 0x232   : > { %2005 = vmatprep.mubr.f32.mxu1 %v5055_v23  ;;  %2390 = vmatprep.mubr.f32.mxu0 %v1624_v12  ;;  %v1763_v8 = vadd.f32 %v5335_v55, %v1762_v10  ;;  %v2128_v12 = vadd.f32 %v5304_v7, %v1743_v13  ;;  %v3067_v54 = vmul.f32 %v5110_v45, %v2427_v39  ;;  %v2432_v19 = vmax.f32 %v2138_v37, 0.0 }
 0x233   : > { %v1764_v58 = vpop.f32.mrf.mxu1  ;;  %v2149_v51 = vpop.f32.mrf.mxu0  ;;  %v3069_v44 = vmul.f32 %v5120_v4, %v2429_v20 }
 0x234   : > { %v2148_v21 = vadd.f32 %v2147_v24, %v1763_v8  ;;  %v5370_v13 = vpop.permute.xlu1 %2889  ;;  %v2430_v10 = vmax.f32 %v2128_v12, 0.0  ;;  %v2433_v58 = vmax.f32 %v2143_v25, 0.0  ;;  %v1636_v24 = vld [vmem:[#allocation2 + $0x798] sm:$0xff]  ;;  %v3071_v25 = vmul.f32 %v5147_v29, %v2431_v28 }
 0x235   : > { %v1767_v0 = vpop.f32.mrf.mxu1  ;;  %2006 = vmatmul.mubr.f32.gmra.mxu1 %v5055_v23  ;;  %v2152_v61 = vpop.f32.mrf.mxu0  ;;  %2391 = vmatmul.mubr.f32.gmra.mxu0 %v5055_v23  ;;  %v1640_v28 = vld [vmem:[#allocation2 + $0x7b8] sm:$0xff] }
 0x236   : > { %v1768_v56 = vadd.f32 %v5335_v55, %v1767_v0  ;;  %2010 = vmatprep.mubr.f32.mxu1 %v5055_v23  ;;  %2395 = vmatprep.mubr.f32.mxu0 %v1628_v53  ;;  %v2428_v0 = vmax.f32 %v2118_v22, 0.0  ;;  %v2434_v32 = vmax.f32 %v2148_v21, 0.0  ;;  %v3073_v35 = vmul.f32 %v5202_v40, %v2433_v58 }
 0x237   : > { %v1769_v14 = vpop.f32.mrf.mxu1  ;;  %v2154_v7 = vpop.f32.mrf.mxu0  ;;  %v3141_v40 = vsel %vm3130_vm8, %v3069_v44, 0.0  ;;  %v3150_v37 = vsel %vm3130_vm8, %v3071_v25, 0.0  ;;  %v3072_v21 = vmul.f32 %v5200_v62, %v2432_v19  ;;  %v1644_v25 = vld [vmem:[#allocation2 + $0x7d8] sm:$0xff] }
 0x238   : > { %v2153_v41 = vadd.f32 %v2152_v61, %v1768_v56  ;;  %v5379_v61 = vpop.permute.xlu0 %2934  ;;  %v3068_v56 = vmul.f32 %v5115_v1, %v2428_v0  ;;  %v3070_v14 = vmul.f32 %v5145_v42, %v2430_v10  ;;  %v5389_v1 = vpop.permute.xlu1 %2938  ;;  %v3066_v42 = vmul.f32 %v5108_v31, %v2426_v33 }
 0x239   : > { %v1772_v51 = vpop.f32.mrf.mxu1  ;;  %2011 = vmatmul.mubr.f32.gmra.mxu1 %v5055_v23  ;;  %v2157_v53 = vpop.f32.mrf.mxu0  ;;  %2396 = vmatmul.mubr.f32.gmra.mxu0 %v5055_v23  ;;  %v3132_v0 = vsel %vm3130_vm8, %v3067_v54, 0.0  ;;  %v3159_v31 = vsel %vm3130_vm8, %v3073_v35, 0.0  ;;  %v3158_v19 = vsel %vm3130_vm8, %v3072_v21, 0.0 }
 0x23a   : > { %v2435_v36 = vmax.f32 %v2153_v41, 0.0  ;;  %v1773_v15 = vadd.f32 %v5335_v55, %v1772_v51  ;;  %2015 = vmatprep.mubr.f32.mxu1 %v5055_v23  ;;  %2400 = vmatprep.mubr.f32.mxu0 %v1632_v3  ;;  %v3149_v10 = vsel %vm3130_vm8, %v3070_v14, 0.0  ;;  %v5400_v51 = vld [vmem:[#allocation2 + $0x8] sm:$0xff]  ;;  %v3131_v54 = vsel %vm3130_vm8, %v3066_v42, 0.0 }
 0x23b   : > { %v1774_v22 = vpop.f32.mrf.mxu1  ;;  %v2159_v8 = vpop.f32.mrf.mxu0  ;;  %v3133_v14 = vadd.f32 %v3132_v0, %v3131_v54  ;;  %v3160_v35 = vadd.f32 %v3159_v31, %v3158_v19 }
 0x23c   : > { %v2158_v12 = vadd.f32 %v2157_v53, %v1773_v15  ;;  %v3075_v4 = vmul.f32 %v5239_v50, %v2435_v36  ;;  %v3074_v50 = vmul.f32 %v5237_v49, %v2434_v32  ;;  %v5408_v33 = vpop.permute.xlu0 %2997  ;;  %v3151_v22 = vadd.f32 %v3150_v37, %v3149_v10  ;;  %v1648_v37 = vld [vmem:[#allocation2 + $0x7f8] sm:$0xff] }
 0x23d   : > { %v1777_v7 = vpop.f32.mrf.mxu1  ;;  %2016 = vmatmul.mubr.f32.gmra.mxu1 %v5055_v23  ;;  %v2162_v45 = vpop.f32.mrf.mxu0  ;;  %2401 = vmatmul.mubr.f32.gmra.mxu0 %v5055_v23  ;;  %v3134_v0 = vrot.slane %v3133_v14, 4 }
 0x23e   : > { %v2436_v29 = vmax.f32 %v2158_v12, 0.0  ;;  %v1778_v39 = vadd.f32 %v5335_v55, %v1777_v7  ;;  %2020 = vmatprep.mubr.f32.mxu1 %v5055_v23  ;;  %2405 = vmatprep.mubr.f32.mxu0 %v1636_v24  ;;  %v3140_v23 = vsel %vm3130_vm8, %v3068_v56, 0.0  ;;  %v3168_v62 = vsel %vm3130_vm8, %v3075_v4, 0.0  ;;  %v5414_v56 = vpop.permute.xlu1 %3001 }
 0x23f   : > { %v1779_v20 = vpop.f32.mrf.mxu1  ;;  %v2164_v3 = vpop.f32.mrf.mxu0  ;;  %v3142_v44 = vadd.f32 %v3141_v40, %v3140_v23  ;;  %v3167_v32 = vsel %vm3130_vm8, %v3074_v50, 0.0  ;;  %v3152_v21 = vrot.slane %v3151_v22, 4  ;;  %v3161_v23 = vrot.slane %v3160_v35, 4 }
 0x240   : > { %v2163_v41 = vadd.f32 %v2162_v45, %v1778_v39  ;;  %v3076_v49 = vmul.f32 %v5296_v59, %v2436_v29  ;;  %v3169_v7 = vadd.f32 %v3168_v62, %v3167_v32 }
 0x241   : > { %v1782_v58 = vpop.f32.mrf.mxu1  ;;  %2021 = vmatmul.mubr.f32.gmra.mxu1 %v5400_v51  ;;  %v2167_v53 = vpop.f32.mrf.mxu0  ;;  %2406 = vmatmul.mubr.f32.gmra.mxu0 %v5400_v51 }
 0x242   : > { %v2437_v36 = vmax.f32 %v2163_v41, 0.0  ;;  %v1783_v15 = vadd.f32 %v5335_v55, %v1782_v58  ;;  %2025 = vmatprep.mubr.f32.mxu1 %v5400_v51  ;;  %2410 = vmatprep.mubr.f32.mxu0 %v1640_v28  ;;  %v3176_v29 = vsel %vm3130_vm8, %v3076_v49, 0.0  ;;  %v5422_v41 = vpop.permute.xlu0 %3046  ;;  %v3170_v10 = vrot.slane %v3169_v7, 4 }
 0x243   : > { %v1784_v8 = vpop.f32.mrf.mxu1  ;;  %v2169_v24 = vpop.f32.mrf.mxu0 }
 0x244   : > { %v3077_v59 = vmul.f32 %v5298_v2, %v2437_v36  ;;  %v2168_v12 = vadd.f32 %v2167_v53, %v1783_v15  ;;  %v3143_v2 = vrot.slane %v3142_v44, 4  ;;  %v5429_v36 = vpop.permute.xlu1 %3050 }
 0x245   : > { %v1787_v45 = vpop.f32.mrf.mxu1  ;;  %2026 = vmatmul.mubr.f32.gmra.mxu1 %v5400_v51  ;;  %v2172_v4 = vpop.f32.mrf.mxu0  ;;  %2411 = vmatmul.mubr.f32.gmra.mxu0 %v5400_v51 }
 0x246   : > { %v3177_v39 = vsel %vm3130_vm8, %v3077_v59, 0.0  ;;  %v2438_v42 = vmax.f32 %v2168_v12, 0.0  ;;  %v1788_v40 = vadd.f32 %v5335_v55, %v1787_v45  ;;  %2030 = vmatprep.mubr.f32.mxu1 %v5400_v51  ;;  %2415 = vmatprep.mubr.f32.mxu0 %v1644_v25  ;;  %v3144_v15 = vadd.f32 %v3143_v2, %v3142_v44 }
 0x247   : > { %v3178_v20 = vadd.f32 %v3177_v39, %v3176_v29  ;;  %v1789_v3 = vpop.f32.mrf.mxu1  ;;  %v2174_v28 = vpop.f32.mrf.mxu0  ;;  %v3153_v25 = vadd.f32 %v3152_v21, %v3151_v22  ;;  %v3135_v59 = vadd.f32 %v3134_v0, %v3133_v14  ;;  %v3162_v12 = vadd.f32 %v3161_v23, %v3160_v35 }
 0x248   : > { %v2173_v50 = vadd.f32 %v2172_v4, %v1788_v40  ;;  %v3078_v53 = vmul.f32 %v5366_v26, %v2438_v42  ;;  %v3171_v45 = vadd.f32 %v3170_v10, %v3169_v7  ;;  %v2893_v22 = vpop.permute.xlu0 %2892  ;;  %v3145_v40 = vrot.slane %v3144_v15, 2  ;;  %v2897_v28 = vpop.permute.xlu1 %2896 }
 0x249   : > { %v1792_v31 = vpop.f32.mrf.mxu1  ;;  %2031 = vmatmul.mubr.f32.gmra.mxu1 %v5400_v51  ;;  %v2177_v58 = vpop.f32.mrf.mxu0  ;;  %2416 = vmatmul.mubr.f32.gmra.mxu0 %v5400_v51  ;;  %v3179_v54 = vrot.slane %v3178_v20, 4  ;;  %v3154_v7 = vrot.slane %v3153_v25, 2  ;;  %v3163_v21 = vrot.slane %v3162_v12, 2 }
 0x24a   : > { %v2439_v62 = vmax.f32 %v2173_v50, 0.0  ;;  %v1793_v49 = vadd.f32 %v5335_v55, %v1792_v31  ;;  %2035 = vmatprep.mubr.f32.mxu1 %v5400_v51  ;;  %2420 = vmatprep.mubr.f32.mxu0 %v1648_v37  ;;  %v3185_v29 = vsel %vm3130_vm8, %v3078_v53, 0.0  ;;  %v3136_v37 = vrot.slane %v3135_v59, 2 }
 0x24b   : > { %v1794_v8 = vpop.f32.mrf.mxu1  ;;  %v2179_v24 = vpop.f32.mrf.mxu0  ;;  %v3172_v23 = vrot.slane %v3171_v45, 2 }
 0x24c   : > { %v3079_v19 = vmul.f32 %v5370_v13, %v2439_v62  ;;  %v2178_v32 = vadd.f32 %v2177_v58, %v1793_v49  ;;  %v3180_v13 = vadd.f32 %v3179_v54, %v3178_v20  ;;  %v3146_v58 = vadd.f32 %v3145_v40, %v3144_v15 }
 0x24d   : > { %v1797_v26 = vpop.f32.mrf.mxu1  ;;  %2036 = vmatmul.mubr.f32.gmra.mxu1 %v5400_v51  ;;  %v2182_v4 = vpop.f32.mrf.mxu0  ;;  %2421 = vmatmul.mubr.f32.gmra.mxu0 %v5400_v51  ;;  %v3155_v54 = vadd.f32 %v3154_v7, %v3153_v25  ;;  %v3137_v24 = vadd.f32 %v3136_v37, %v3135_v59 }
 0x24e   : > { %v3186_v44 = vsel %vm3130_vm8, %v3079_v19, 0.0  ;;  %v2440_v39 = vmax.f32 %v2178_v32, 0.0  ;;  %v1798_v42 = vadd.f32 %v5335_v55, %v1797_v26  ;;  %v3181_v53 = vrot.slane %v3180_v13, 2 }
 0x24f   : > { %v3187_v2 = vadd.f32 %v3186_v44, %v3185_v29  ;;  %v1799_v14 = vpop.f32.mrf.mxu1  ;;  %v2184_v35 = vpop.f32.mrf.mxu0  ;;  %v3164_v19 = vadd.f32 %v3163_v21, %v3162_v12  ;;  %v3173_v29 = vadd.f32 %v3172_v23, %v3171_v45 }
 0x250   : > { %v2183_v3 = vadd.f32 %v2182_v4, %v1798_v42  ;;  %v3080_v31 = vmul.f32 %v2893_v22, %v2440_v39  ;;  %v3147_v39 = vrot.slane %v3146_v58, 1  ;;  %v3182_v15 = vadd.f32 %v3181_v53, %v3180_v13 }
 0x251   : > { %v3188_v50 = vrot.slane %v3187_v2, 4  ;;  %v5437_v51 = vpop.f32.mrf.mxu1  ;;  %v5439_v0 = vpop.f32.mrf.mxu0  ;;  %v3156_v14 = vrot.slane %v3155_v54, 1  ;;  %v3138_v35 = vrot.slane %v3137_v24, 1  ;;  %v3165_v59 = vrot.slane %v3164_v19, 1 }
 0x252   : > { %v2441_v10 = vmax.f32 %v2183_v3, 0.0  ;;  %v3194_v44 = vsel %vm3130_vm8, %v3080_v31, 0.0  ;;  %v3148_v37 = vadd.f32 %v3147_v39, %v3146_v58  ;;  %v3183_v45 = vrot.slane %v3182_v15, 1 }
 0x253   : > { %v3189_v62 = vadd.f32 %v3188_v50, %v3187_v2  ;;  %v1804_v20 = vpop.f32.mrf.mxu1  ;;  %v2189_v49 = vpop.f32.mrf.mxu0  ;;  %v3139_v31 = vadd.f32 %v3138_v35, %v3137_v24  ;;  %v3166_v53 = vadd.f32 %v3165_v59, %v3164_v19 }
 0x254   : > { %v3081_v8 = vmul.f32 %v2897_v28, %v2441_v10  ;;  %v3174_v28 = vrot.slane %v3173_v29, 1  ;;  %v3157_v10 = vadd.f32 %v3156_v14, %v3155_v54 }
 0x255   : > { %v3190_v32 = vrot.slane %v3189_v62, 2  ;;  %v5441_v26 = vpop.f32.mrf.mxu1  ;;  %v5443_v4 = vpop.f32.mrf.mxu0 }
 0x256   : > { %v3195_v42 = vsel %vm3130_vm8, %v3081_v8, 0.0  ;;  %v3175_v8 = vadd.f32 %v3174_v28, %v3173_v29 }
 0x257   : > { %v3196_v22 = vadd.f32 %v3195_v42, %v3194_v44  ;;  %v1809_v40 = vpop.f32.mrf.mxu1  ;;  %v2194_v2 = vpop.f32.mrf.mxu0  ;;  %v3191_v25 = vadd.f32 %v3190_v32, %v3189_v62  ;;  %v3468_v32 = vsel %vm3467_vm9, %v3148_v37, %v3139_v31  ;;  %v3184_v44 = vadd.f32 %v3183_v45, %v3182_v15 }
 0x258   : > { %v3470_v40 = vsel %vm3469_vm10, %v3157_v10, %v3468_v32 }
 0x259   : > { %v3197_v12 = vrot.slane %v3196_v22, 4  ;;  %v1812_v7 = vpop.f32.mrf.mxu1  ;;  %v5447_v3 = vpop.f32.mrf.mxu0  ;;  %v3192_v13 = vrot.slane %v3191_v25, 1  ;;  %v3472_v2 = vsel %vm3471_vm11, %v3166_v53, %v3470_v40 }
 0x25a   : > { %v3474_v29 = vsel %vm3473_vm12, %v3175_v8, %v3472_v2  ;;  %v1803_v2 = vadd.f32 %v5335_v55, %v5437_v51 }
 0x25b   : > { %v3198_v21 = vadd.f32 %v3197_v12, %v3196_v22  ;;  %v1814_v50 = vpop.f32.mrf.mxu1  ;;  %v2199_v23 = vpop.f32.mrf.mxu0  ;;  %v3193_v22 = vadd.f32 %v3192_v13, %v3191_v25  ;;  %v3476_v59 = vsel %vm3475_vm13, %v3184_v44, %v3474_v29 }
 0x25c   : > { %v2188_v51 = vadd.f32 %v5439_v0, %v1803_v2  ;;  %v2942_v2 = vpop.permute.xlu0 %2941 }
 0x25d   : > { %v3199_v20 = vrot.slane %v3198_v21, 2  ;;  %v1817_v49 = vpop.f32.mrf.mxu1  ;;  %v2202_v62 = vpop.f32.mrf.mxu0  ;;  %v3478_v12 = vsel %vm3477_vm14, %v3193_v22, %v3476_v59 }
 0x25f   : > { %v3200_v42 = vadd.f32 %v3199_v20, %v3198_v21  ;;  %v1819_v58 = vpop.f32.mrf.mxu1  ;;  %v2204_v39 = vpop.f32.mrf.mxu0  ;;  %v1818_v20 = vadd.f32 %v5335_v55, %v1817_v49 }
 0x260   : > { %v1813_v58 = vadd.f32 %v5335_v55, %v1812_v7 }
 0x261   : > { %v3201_v54 = vrot.slane %v3200_v42, 1  ;;  %v1822_v24 = vpop.f32.mrf.mxu1  ;;  %v2207_v19 = vpop.f32.mrf.mxu0  ;;  %v2203_v29 = vadd.f32 %v2202_v62, %v1818_v20 }
 0x262   : > { %v1823_v39 = vadd.f32 %v5335_v55, %v1822_v24  ;;  %v2198_v7 = vadd.f32 %v5447_v3, %v1813_v58 }
 0x263   : > { %v1824_v14 = vpop.f32.mrf.mxu1  ;;  %v2209_v35 = vpop.f32.mrf.mxu0  ;;  %v3202_v15 = vadd.f32 %v3201_v54, %v3200_v42  ;;  %v1808_v42 = vadd.f32 %v5335_v55, %v5441_v26  ;;  %v2445_v62 = vmax.f32 %v2203_v29, 0.0 }
 0x264   : > { %v2208_v24 = vadd.f32 %v2207_v19, %v1823_v39 }
 0x265   : > { %v1827_v25 = vpop.f32.mrf.mxu1  ;;  %v2212_v28 = vpop.f32.mrf.mxu0  ;;  %v3480_v37 = vsel %vm3479_vm15, %v3202_v15, %v3478_v12  ;;  %v2193_v26 = vadd.f32 %v5443_v4, %v1808_v42  ;;  %v2442_v42 = vmax.f32 %v2188_v51, 0.0  ;;  %v3085_v58 = vmul.f32 %v5165_v16, %v2445_v62 }
 0x266   : > { %4020 = vmatprep.mubr.msk.f32.mxu0 %vm3130_vm8, %v3480_v37  ;;  %v1828_v44 = vadd.f32 %v5335_v55, %v1827_v25  ;;  %v2446_v4 = vmax.f32 %v2208_v24, 0.0 }
 0x267   : > { %v1829_v45 = vpop.f32.mrf.mxu1  ;;  %v2214_v21 = vpop.f32.mrf.mxu0  ;;  %v2443_v20 = vmax.f32 %v2193_v26, 0.0  ;;  %v3082_v24 = vmul.f32 %v5153_v52, %v2442_v42 }
 0x268   : > { %v2213_v35 = vadd.f32 %v2212_v28, %v1828_v44 }
 0x269   : > { %v1832_v50 = vpop.f32.mrf.mxu1  ;;  %v2217_v23 = vpop.f32.mrf.mxu0  ;;  %v3083_v29 = vmul.f32 %v5158_v60, %v2443_v20 }
 0x26a   : > { %v1833_v15 = vadd.f32 %v5335_v55, %v1832_v50  ;;  %v2447_v28 = vmax.f32 %v2213_v35, 0.0 }
 0x26b   : > { %v1834_v10 = vpop.f32.mrf.mxu1  ;;  %v2219_v13 = vpop.f32.mrf.mxu0 }
 0x26c   : > { %v2218_v13 = vadd.f32 %v2217_v23, %v1833_v15 }
 0x26d   : > { %v1837_v31 = vpop.f32.mrf.mxu1  ;;  %v2222_v53 = vpop.f32.mrf.mxu0 }
 0x26e   : > { %v1838_v22 = vadd.f32 %v5335_v55, %v1837_v31 }
 0x26f   : > { %v1839_v8 = vpop.f32.mrf.mxu1  ;;  %v2224_v32 = vpop.f32.mrf.mxu0 }
 0x270   : > { %v2223_v12 = vadd.f32 %v2222_v53, %v1838_v22  ;;  %v2444_v8 = vmax.f32 %v2198_v7, 0.0  ;;  %v3087_v22 = vmul.f32 %v5212_v18, %v2447_v28  ;;  %v2946_v18 = vpop.permute.xlu1 %2945 }
 0x271   : > { %v1842_v40 = vpop.f32.mrf.mxu1  ;;  %v2227_v54 = vpop.f32.mrf.mxu0 }
 0x272   : > { %v1843_v59 = vadd.f32 %v5335_v55, %v1842_v40  ;;  %v2449_v32 = vmax.f32 %v2223_v12, 0.0  ;;  %v2448_v40 = vmax.f32 %v2218_v13, 0.0  ;;  %v3213_v12 = vsel %vm3130_vm8, %v3085_v58, 0.0 }
 0x273   : > { %v1844_v49 = vpop.f32.mrf.mxu1  ;;  %v2229_v14 = vpop.f32.mrf.mxu0 }
 0x274   : > { %v2228_v50 = vadd.f32 %v2227_v54, %v1843_v59  ;;  %v3084_v49 = vmul.f32 %v5163_v9, %v2444_v8  ;;  %v3086_v14 = vmul.f32 %v5207_v27, %v2446_v4  ;;  %v3089_v35 = vmul.f32 %v5250_v30, %v2449_v32 }
 0x275   : > { %v1847_v25 = vpop.f32.mrf.mxu1  ;;  %v2232_v37 = vpop.f32.mrf.mxu0  ;;  %v3222_v9 = vsel %vm3130_vm8, %v3087_v22, 0.0  ;;  %v3088_v27 = vmul.f32 %v5244_v6, %v2448_v40 }
 0x276   : > { %v1848_v45 = vadd.f32 %v5335_v55, %v1847_v25  ;;  %v2450_v23 = vmax.f32 %v2228_v50, 0.0  ;;  %v3221_v51 = vsel %vm3130_vm8, %v3086_v14, 0.0  ;;  %v3231_v62 = vsel %vm3130_vm8, %v3089_v35, 0.0  ;;  %v5493_v50 = vpop.permute.xlu0 %3004 }
 0x277   : > { %v1849_v21 = vpop.f32.mrf.mxu1  ;;  %v2234_v10 = vpop.f32.mrf.mxu0  ;;  %v3223_v20 = vadd.f32 %v3222_v9, %v3221_v51  ;;  %v3230_v32 = vsel %vm3130_vm8, %v3088_v27, 0.0 }
 0x278   : > { %v2233_v31 = vadd.f32 %v2232_v37, %v1848_v45  ;;  %v3090_v30 = vmul.f32 %v5308_v34, %v2450_v23  ;;  %v3204_v45 = vsel %vm3130_vm8, %v3083_v29, 0.0  ;;  %v3203_v34 = vsel %vm3130_vm8, %v3082_v24, 0.0 }
 0x279   : > { %v1852_v3 = vpop.f32.mrf.mxu1  ;;  %v2237_v19 = vpop.f32.mrf.mxu0  ;;  %v3232_v42 = vadd.f32 %v3231_v62, %v3230_v32 }
 0x27a   : > { %v2451_v53 = vmax.f32 %v2233_v31, 0.0  ;;  %v1853_v44 = vadd.f32 %v5335_v55, %v1852_v3  ;;  %v3239_v3 = vsel %vm3130_vm8, %v3090_v30, 0.0 }
 0x27b   : > { %v1854_v0 = vpop.f32.mrf.mxu1  ;;  %v2239_v39 = vpop.f32.mrf.mxu0 }
 0x27c   : > { %v2238_v54 = vadd.f32 %v2237_v19, %v1853_v44  ;;  %v3091_v16 = vmul.f32 %v5316_v5, %v2451_v53  ;;  %v3212_v5 = vsel %vm3130_vm8, %v3084_v49, 0.0  ;;  %v5499_v44 = vpop.permute.xlu1 %3008 }
 0x27d   : > { %v1857_v15 = vpop.f32.mrf.mxu1  ;;  %v2242_v59 = vpop.f32.mrf.mxu0  ;;  %v3214_v31 = vadd.f32 %v3213_v12, %v3212_v5 }
 0x27e   : > { %v2452_v26 = vmax.f32 %v2238_v54, 0.0  ;;  %v1858_v7 = vadd.f32 %v5335_v55, %v1857_v15  ;;  %v3240_v10 = vsel %vm3130_vm8, %v3091_v16, 0.0 }
 0x27f   : > { %v1859_v25 = vpop.f32.mrf.mxu1  ;;  %v2244_v60 = vpop.f32.mrf.mxu0  ;;  %v3241_v58 = vadd.f32 %v3240_v10, %v3239_v3  ;;  %v3215_v29 = vrot.slane %v3214_v31, 4 }
 0x280   : > { %v2243_v37 = vadd.f32 %v2242_v59, %v1858_v7  ;;  %v3092_v28 = vmul.f32 %v5379_v61, %v2452_v26  ;;  %v3205_v61 = vadd.f32 %v3204_v45, %v3203_v34  ;;  %v5504_v59 = vpop.permute.xlu0 %3053  ;;  %v3233_v26 = vrot.slane %v3232_v42, 4  ;;  %v5507_v27 = vpop.permute.xlu1 %3057 }
 0x281   : > { %v1862_v52 = vpop.f32.mrf.mxu1  ;;  %v2247_v21 = vpop.f32.mrf.mxu0  ;;  %v3242_v7 = vrot.slane %v3241_v58, 4  ;;  %v3216_v30 = vadd.f32 %v3215_v29, %v3214_v31 }
 0x282   : > { %v2453_v13 = vmax.f32 %v2243_v37, 0.0  ;;  %v1863_v6 = vadd.f32 %v5335_v55, %v1862_v52  ;;  %v3248_v22 = vsel %vm3130_vm8, %v3092_v28, 0.0  ;;  %v3206_v16 = vrot.slane %v3205_v61, 4 }
 0x283   : > { %v1864_v8 = vpop.f32.mrf.mxu1  ;;  %v2249_v4 = vpop.f32.mrf.mxu0  ;;  %v3234_v10 = vadd.f32 %v3233_v26, %v3232_v42  ;;  %v3243_v28 = vadd.f32 %v3242_v7, %v3241_v58  ;;  %v3217_v31 = vrot.slane %v3216_v30, 2 }
 0x284   : > { %v3093_v19 = vmul.f32 %v5389_v1, %v2453_v13  ;;  %v2248_v53 = vadd.f32 %v2247_v21, %v1863_v6  ;;  %v3224_v1 = vrot.slane %v3223_v20, 4  ;;  %v3207_v21 = vadd.f32 %v3206_v16, %v3205_v61  ;;  %v2949_v32 = vpop.permute.xlu0 %2948  ;;  %v2953_v61 = vpop.permute.xlu1 %2952 }
 0x285   : > { %v1867_v0 = vpop.f32.mrf.mxu1  ;;  %v2252_v39 = vpop.f32.mrf.mxu0  ;;  %v3235_v58 = vrot.slane %v3234_v10, 2 }
 0x286   : > { %v3249_v40 = vsel %vm3130_vm8, %v3093_v19, 0.0  ;;  %v2454_v23 = vmax.f32 %v2248_v53, 0.0  ;;  %v1868_v54 = vadd.f32 %v5335_v55, %v1867_v0  ;;  %v3225_v51 = vadd.f32 %v3224_v1, %v3223_v20 }
 0x287   : > { %v3250_v49 = vadd.f32 %v3249_v40, %v3248_v22  ;;  %v1869_v14 = vpop.f32.mrf.mxu1  ;;  %v2254_v35 = vpop.f32.mrf.mxu0  ;;  %v3208_v42 = vrot.slane %v3207_v21, 2 }
 0x288   : > { %v2253_v15 = vadd.f32 %v2252_v39, %v1868_v54  ;;  %v3094_v25 = vmul.f32 %v2942_v2, %v2454_v23  ;;  %v3244_v23 = vrot.slane %v3243_v28, 2  ;;  %v3218_v14 = vadd.f32 %v3217_v31, %v3216_v30 }
 0x289   : > { %v1872_v24 = vpop.f32.mrf.mxu1  ;;  %v2257_v12 = vpop.f32.mrf.mxu0  ;;  %v3251_v37 = vrot.slane %v3250_v49, 4  ;;  %v3209_v7 = vadd.f32 %v3208_v42, %v3207_v21 }
 0x28a   : > { %v2455_v60 = vmax.f32 %v2253_v15, 0.0  ;;  %v1873_v9 = vadd.f32 %v5335_v55, %v1872_v24  ;;  %v3257_v34 = vsel %vm3130_vm8, %v3094_v25, 0.0  ;;  %v3236_v24 = vadd.f32 %v3235_v58, %v3234_v10 }
 0x28b   : > { %v1874_v45 = vpop.f32.mrf.mxu1  ;;  %v2259_v5 = vpop.f32.mrf.mxu0  ;;  %v3252_v3 = vadd.f32 %v3251_v37, %v3250_v49 }
 0x28c   : > { %v3095_v62 = vmul.f32 %v2946_v18, %v2455_v60  ;;  %v2258_v52 = vadd.f32 %v2257_v12, %v1873_v9  ;;  %v3226_v18 = vrot.slane %v3225_v51, 2  ;;  %v3245_v9 = vadd.f32 %v3244_v23, %v3243_v28 }
 0x28d   : > { %v1877_v13 = vpop.f32.mrf.mxu1  ;;  %v2262_v6 = vpop.f32.mrf.mxu0  ;;  %v3253_v35 = vrot.slane %v3252_v3, 2  ;;  %v3219_v5 = vrot.slane %v3218_v14, 1  ;;  %v3237_v21 = vrot.slane %v3236_v24, 1 }
 0x28e   : > { %v3258_v2 = vsel %vm3130_vm8, %v3095_v62, 0.0  ;;  %v2456_v8 = vmax.f32 %v2258_v52, 0.0  ;;  %v1878_v4 = vadd.f32 %v5335_v55, %v1877_v13  ;;  %v3227_v16 = vadd.f32 %v3226_v18, %v3225_v51 }
 0x28f   : > { %v3259_v19 = vadd.f32 %v3258_v2, %v3257_v34  ;;  %v1879_v53 = vpop.f32.mrf.mxu1  ;;  %v2264_v20 = vpop.f32.mrf.mxu0  ;;  %v3254_v30 = vadd.f32 %v3253_v35, %v3252_v3  ;;  %v3210_v34 = vrot.slane %v3209_v7, 1  ;;  %v3238_v3 = vadd.f32 %v3237_v21, %v3236_v24 }
 0x290   : > { %v2263_v0 = vadd.f32 %v2262_v6, %v1878_v4  ;;  %v3096_v29 = vmul.f32 %v2949_v32, %v2456_v8  ;;  %v3228_v6 = vrot.slane %v3227_v16, 1  ;;  %v3246_v4 = vrot.slane %v3245_v9, 1 }
 0x291   : > { %v3260_v39 = vrot.slane %v3259_v19, 4  ;;  %v5512_v22 = vpop.f32.mrf.mxu1  ;;  %v5514_v40 = vpop.f32.mrf.mxu0  ;;  %v3220_v32 = vadd.f32 %v3219_v5, %v3218_v14  ;;  %v3255_v31 = vrot.slane %v3254_v30, 1 }
 0x292   : > { %v2457_v54 = vmax.f32 %v2263_v0, 0.0  ;;  %v3266_v37 = vsel %vm3130_vm8, %v3096_v29, 0.0  ;;  %v3229_v20 = vadd.f32 %v3228_v6, %v3227_v16  ;;  %v3211_v0 = vadd.f32 %v3210_v34, %v3209_v7 }
 0x293   : > { %v3261_v1 = vadd.f32 %v3260_v39, %v3259_v19  ;;  %v1884_v49 = vpop.f32.mrf.mxu1  ;;  %v2269_v15 = vpop.f32.mrf.mxu0  ;;  %v3247_v39 = vadd.f32 %v3246_v4, %v3245_v9 }
 0x294   : > { %v3097_v26 = vmul.f32 %v2953_v61, %v2457_v54  ;;  %v3481_v23 = vsel %vm3467_vm9, %v3220_v32, %v3211_v0  ;;  %v3256_v54 = vadd.f32 %v3255_v31, %v3254_v30 }
 0x295   : > { %v3262_v12 = vrot.slane %v3261_v1, 2  ;;  %v5516_v25 = vpop.f32.mrf.mxu1  ;;  %v5518_v60 = vpop.f32.mrf.mxu0  ;;  %v3482_v14 = vsel %vm3469_vm10, %v3229_v20, %v3481_v23  ;;  %v1883_v23 = vadd.f32 %v5335_v55, %v5512_v22 }
 0x296   : > { %v3267_v45 = vsel %vm3130_vm8, %v3097_v26, 0.0  ;;  %v3483_v15 = vsel %vm3471_vm11, %v3238_v3, %v3482_v14  ;;  %v1888_v20 = vadd.f32 %v5335_v55, %v5516_v25 }
 0x297   : > { %v3268_v62 = vadd.f32 %v3267_v45, %v3266_v37  ;;  %v1889_v52 = vpop.f32.mrf.mxu1  ;;  %v2274_v13 = vpop.f32.mrf.mxu0  ;;  %v3263_v51 = vadd.f32 %v3262_v12, %v3261_v1  ;;  %v3484_v7 = vsel %vm3473_vm12, %v3247_v39, %v3483_v15 }
 0x298   : > { %v3485_v9 = vsel %vm3475_vm13, %v3256_v54, %v3484_v7  ;;  %v2273_v25 = vadd.f32 %v5518_v60, %v1888_v20 }
 0x299   : > { %v3269_v10 = vrot.slane %v3268_v62, 4  ;;  %v1892_v2 = vpop.f32.mrf.mxu1  ;;  %v2277_v8 = vpop.f32.mrf.mxu0  ;;  %v3264_v18 = vrot.slane %v3263_v51, 1 }
 0x29b   : > { %v3270_v28 = vadd.f32 %v3269_v10, %v3268_v62  ;;  %v1894_v19 = vpop.f32.mrf.mxu1  ;;  %v2279_v53 = vpop.f32.mrf.mxu0  ;;  %v3265_v49 = vadd.f32 %v3264_v18, %v3263_v51  ;;  %v1893_v18 = vadd.f32 %v5335_v55, %v1892_v2 }
 0x29d   : > { %v3271_v61 = vrot.slane %v3270_v28, 2  ;;  %v1897_v42 = vpop.f32.mrf.mxu1  ;;  %v2282_v58 = vpop.f32.mrf.mxu0  ;;  %v3486_v5 = vsel %vm3477_vm14, %v3265_v49, %v3485_v9  ;;  %v2278_v2 = vadd.f32 %v2277_v8, %v1893_v18 }
 0x29e   : > { %v1898_v31 = vadd.f32 %v5335_v55, %v1897_v42 }
 0x29f   : > { %v3272_v29 = vadd.f32 %v3271_v61, %v3270_v28  ;;  %v1899_v35 = vpop.f32.mrf.mxu1  ;;  %v2284_v1 = vpop.f32.mrf.mxu0 }
 0x2a0   : > { %v2283_v54 = vadd.f32 %v2282_v58, %v1898_v31 }
 0x2a1   : > { %v3273_v26 = vrot.slane %v3272_v29, 1  ;;  %v1902_v16 = vpop.f32.mrf.mxu1  ;;  %v2287_v12 = vpop.f32.mrf.mxu0 }
 0x2a2   : > { %v1903_v0 = vadd.f32 %v5335_v55, %v1902_v16  ;;  %v2461_v22 = vmax.f32 %v2283_v54, 0.0 }
 0x2a3   : > { %v3274_v24 = vadd.f32 %v3273_v26, %v3272_v29  ;;  %v1904_v37 = vpop.f32.mrf.mxu1  ;;  %v2289_v45 = vpop.f32.mrf.mxu0 }
 0x2a4   : > { %v2288_v49 = vadd.f32 %v2287_v12, %v1903_v0 }
 0x2a5   : > { %v1907_v30 = vpop.f32.mrf.mxu1  ;;  %v2292_v62 = vpop.f32.mrf.mxu0  ;;  %v3487_v52 = vsel %vm3479_vm15, %v3274_v24, %v3486_v5  ;;  %v2268_v24 = vadd.f32 %v5514_v40, %v1883_v23 }
 0x2a6   : > { %4021 = vmatmul.mubr.msk.f32.vlgmr.msra.gmra.mxu0 %vm3130_vm8, %v3487_v52  ;;  %v1908_v53 = vadd.f32 %v5335_v55, %v1907_v30  ;;  %v2460_v52 = vmax.f32 %v2278_v2, 0.0 }
 0x2a7   : > { %v1909_v13 = vpop.f32.mrf.mxu1  ;;  %v2294_v6 = vpop.f32.mrf.mxu0 }
 0x2a8   : > { %v2293_v35 = vadd.f32 %v2292_v62, %v1908_v53  ;;  %v2459_v62 = vmax.f32 %v2273_v25, 0.0  ;;  %v2462_v13 = vmax.f32 %v2288_v49, 0.0  ;;  %v3100_v53 = vmul.f32 %v5135_v47, %v2460_v52  ;;  %v5740_v49 = vld [vmem:[#allocation15_spill] sm:$0xff] }
 0x2a9   : > { %v1912_v51 = vpop.f32.mrf.mxu1  ;;  %v2297_v34 = vpop.f32.mrf.mxu0 }
 0x2aa   : > { %v1913_v1 = vadd.f32 %v5335_v55, %v1912_v51  ;;  %v2463_v45 = vmax.f32 %v2293_v35, 0.0  ;;  %v2458_v51 = vmax.f32 %v2268_v24, 0.0  ;;  %v3102_v20 = vmul.f32 %v5173_v11, %v2462_v13  ;;  %v5739_v11 = vld [vmem:[#allocation12_spill] sm:$0xff] }
 0x2ab   : > { %v1914_v21 = vpop.f32.mrf.mxu1  ;;  %v2299_v10 = vpop.f32.mrf.mxu0 }
 0x2ac   : > { %v2298_v9 = vadd.f32 %v2297_v34, %v1913_v1  ;;  %v3101_v21 = vmul.f32 %v5140_v48, %v2461_v22  ;;  %v3293_v1 = vsel %vm3130_vm8, %v3102_v20, 0.0 }
 0x2ad   : > { %v1917_v4 = vpop.f32.mrf.mxu1  ;;  %v2302_v32 = vpop.f32.mrf.mxu0 }
 0x2ae   : > { %v1918_v3 = vadd.f32 %v5335_v55, %v1917_v4  ;;  %v3103_v4 = vmul.f32 %v5178_v57, %v2463_v45  ;;  %v3098_v57 = vmul.f32 %v5128_v38, %v2458_v51  ;;  %v3285_v23 = vsel %vm3130_vm8, %v3101_v21, 0.0 }
 0x2af   : > { %v1919_v28 = vpop.f32.mrf.mxu1  ;;  %v2304_v19 = vpop.f32.mrf.mxu0 }
 0x2b0   : > { %v2303_v15 = vadd.f32 %v2302_v32, %v1918_v3  ;;  %v2464_v32 = vmax.f32 %v2298_v9, 0.0  ;;  %v3099_v19 = vmul.f32 %v5130_v43, %v2459_v62  ;;  %v3294_v43 = vsel %vm3130_vm8, %v3103_v4, 0.0  ;;  %v5741_v9 = vld [vmem:[#allocation16_spill] sm:$0xff] }
 0x2b1   : > { %v1922_v61 = vpop.f32.mrf.mxu1  ;;  %v2307_v39 = vpop.f32.mrf.mxu0  ;;  %v3295_v24 = vadd.f32 %v3294_v43, %v3293_v1 }
 0x2b2   : > { %v1923_v14 = vadd.f32 %v5335_v55, %v1922_v61  ;;  %v2465_v60 = vmax.f32 %v2303_v15, 0.0  ;;  %v3104_v47 = vmul.f32 %v5217_v46, %v2464_v32  ;;  %v3276_v35 = vsel %vm3130_vm8, %v3099_v19, 0.0 }
 0x2b3   : > { %v1924_v42 = vpop.f32.mrf.mxu1  ;;  %v2309_v29 = vpop.f32.mrf.mxu0  ;;  %v3296_v32 = vrot.slane %v3295_v24, 4 }
 0x2b4   : > { %v2308_v5 = vadd.f32 %v2307_v39, %v1923_v14  ;;  %v3105_v18 = vmul.f32 %v5219_v63, %v2465_v60 }
 0x2b5   : > { %v1927_v26 = vpop.f32.mrf.mxu1  ;;  %v2312_v16 = vpop.f32.mrf.mxu0 }
 0x2b6   : > { %v1928_v7 = vadd.f32 %v5335_v55, %v1927_v26  ;;  %v5547_v55 = vld [vmem:[%s5720_s3] ss:$0 sm:$0xff]  ;;  %v2466_v31 = vmax.f32 %v2308_v5, 0.0  ;;  %v3303_v14 = vsel %vm3130_vm8, %v3105_v18, 0.0 }
 0x2b7   : > { %v1929_v58 = vpop.f32.mrf.mxu1  ;;  %v2314_v37 = vpop.f32.mrf.mxu0 }
 0x2b8   : > { %v2313_v30 = vadd.f32 %v2312_v16, %v1928_v7  ;;  %v3106_v29 = vmul.f32 %v5739_v11, %v2466_v31  ;;  %v3275_v16 = vsel %vm3130_vm8, %v3098_v57, 0.0  ;;  %v3302_v37 = vsel %vm3130_vm8, %v3104_v47, 0.0 }
 0x2b9   : > { %v1932_v8 = vpop.f32.mrf.mxu1  ;;  %v2317_v12 = vpop.f32.mrf.mxu0  ;;  %v3277_v62 = vadd.f32 %v3276_v35, %v3275_v16  ;;  %v3304_v52 = vadd.f32 %v3303_v14, %v3302_v37 }
 0x2ba   : > { %v2467_v6 = vmax.f32 %v2313_v30, 0.0  ;;  %v1933_v40 = vadd.f32 %v5547_v55, %v1932_v8  ;;  %v3311_v45 = vsel %vm3130_vm8, %v3106_v29, 0.0 }
 0x2bb   : > { %v1934_v34 = vpop.f32.mrf.mxu1  ;;  %v2319_v10 = vpop.f32.mrf.mxu0  ;;  %v3305_v19 = vrot.slane %v3304_v52, 4 }
 0x2bc   : > { %v2318_v28 = vadd.f32 %v2317_v12, %v1933_v40  ;;  %v3107_v61 = vmul.f32 %v5266_v17, %v2467_v6  ;;  %v3284_v17 = vsel %vm3130_vm8, %v3100_v53, 0.0 }
 0x2bd   : > { %v1937_v0 = vpop.f32.mrf.mxu1  ;;  %v2322_v3 = vpop.f32.mrf.mxu0  ;;  %v3286_v7 = vadd.f32 %v3285_v23, %v3284_v17  ;;  %v3306_v11 = vadd.f32 %v3305_v19, %v3304_v52 }
 0x2be   : > { %v2468_v48 = vmax.f32 %v2318_v28, 0.0  ;;  %v1938_v39 = vadd.f32 %v5547_v55, %v1937_v0  ;;  %v3312_v2 = vsel %vm3130_vm8, %v3107_v61, 0.0  ;;  %v3278_v28 = vrot.slane %v3277_v62, 4 }
 0x2bf   : > { %v1939_v54 = vpop.f32.mrf.mxu1  ;;  %v2324_v42 = vpop.f32.mrf.mxu0  ;;  %v3313_v13 = vadd.f32 %v3312_v2, %v3311_v45  ;;  %v3287_v21 = vrot.slane %v3286_v7, 4  ;;  %v3307_v16 = vrot.slane %v3306_v11, 2 }
 0x2c0   : > { %v2323_v63 = vadd.f32 %v2322_v3, %v1938_v39  ;;  %v3108_v15 = vmul.f32 %v5740_v49, %v2468_v48  ;;  %v3297_v54 = vadd.f32 %v3296_v32, %v3295_v24  ;;  %v3279_v47 = vadd.f32 %v3278_v28, %v3277_v62 }
 0x2c1   : > { %v1942_v38 = vpop.f32.mrf.mxu1  ;;  %v2327_v25 = vpop.f32.mrf.mxu0  ;;  %v3314_v53 = vrot.slane %v3313_v13, 4  ;;  %v3288_v48 = vadd.f32 %v3287_v21, %v3286_v7 }
 0x2c2   : > { %v2469_v26 = vmax.f32 %v2323_v63, 0.0  ;;  %v1943_v46 = vadd.f32 %v5547_v55, %v1942_v38  ;;  %v3320_v12 = vsel %vm3130_vm8, %v3108_v15, 0.0 }
 0x2c3   : > { %v1944_v22 = vpop.f32.mrf.mxu1  ;;  %v2329_v58 = vpop.f32.mrf.mxu0  ;;  %v3315_v29 = vadd.f32 %v3314_v53, %v3313_v13  ;;  %v3289_v38 = vrot.slane %v3288_v48, 2 }
 0x2c4   : > { %v3109_v5 = vmul.f32 %v5741_v9, %v2469_v26  ;;  %v2328_v30 = vadd.f32 %v2327_v25, %v1943_v46  ;;  %v3298_v26 = vrot.slane %v3297_v54, 2  ;;  %v3280_v46 = vrot.slane %v3279_v47, 2 }
 0x2c5   : > { %v1947_v60 = vpop.f32.mrf.mxu1  ;;  %v2332_v8 = vpop.f32.mrf.mxu0  ;;  %v3316_v58 = vrot.slane %v3315_v29, 2  ;;  %v3290_v9 = vadd.f32 %v3289_v38, %v3288_v48 }
 0x2c6   : > { %v3321_v6 = vsel %vm3130_vm8, %v3109_v5, 0.0  ;;  %v2470_v40 = vmax.f32 %v2328_v30, 0.0  ;;  %v1948_v51 = vadd.f32 %v5547_v55, %v1947_v60  ;;  %v3299_v13 = vadd.f32 %v3298_v26, %v3297_v54 }
 0x2c7   : > { %v3322_v34 = vadd.f32 %v3321_v6, %v3320_v12  ;;  %v1949_v10 = vpop.f32.mrf.mxu1  ;;  %v2334_v4 = vpop.f32.mrf.mxu0  ;;  %v3308_v12 = vadd.f32 %v3307_v16, %v3306_v11  ;;  %v3317_v21 = vadd.f32 %v3316_v58, %v3315_v29 }
 0x2c8   : > { %v2333_v31 = vadd.f32 %v2332_v8, %v1948_v51  ;;  %v3110_v0 = vmul.f32 %v5408_v33, %v2470_v40  ;;  %v3281_v8 = vadd.f32 %v3280_v46, %v3279_v47  ;;  %v3291_v10 = vrot.slane %v3290_v9, 1 }
 0x2c9   : > { %v1952_v20 = vpop.f32.mrf.mxu1  ;;  %v2337_v18 = vpop.f32.mrf.mxu0  ;;  %v3323_v39 = vrot.slane %v3322_v34, 4  ;;  %v3300_v19 = vrot.slane %v3299_v13, 1 }
 0x2ca   : > { %v2471_v3 = vmax.f32 %v2333_v31, 0.0  ;;  %v1953_v61 = vadd.f32 %v5547_v55, %v1952_v20  ;;  %v3329_v17 = vsel %vm3130_vm8, %v3110_v0, 0.0  ;;  %v3309_v20 = vrot.slane %v3308_v12, 1 }
 0x2cb   : > { %v1954_v57 = vpop.f32.mrf.mxu1  ;;  %v2339_v23 = vpop.f32.mrf.mxu0  ;;  %v3324_v25 = vadd.f32 %v3323_v39, %v3322_v34  ;;  %v3292_v48 = vadd.f32 %v3291_v10, %v3290_v9 }
 0x2cc   : > { %v3111_v42 = vmul.f32 %v5414_v56, %v2471_v3  ;;  %v2338_v43 = vadd.f32 %v2337_v18, %v1953_v61  ;;  %v3318_v61 = vrot.slane %v3317_v21, 1  ;;  %v3310_v11 = vadd.f32 %v3309_v20, %v3308_v12 }
 0x2cd   : > { %v1957_v63 = vpop.f32.mrf.mxu1  ;;  %v2342_v35 = vpop.f32.mrf.mxu0  ;;  %v3325_v5 = vrot.slane %v3324_v25, 2 }
 0x2ce   : > { %v3330_v33 = vsel %vm3130_vm8, %v3111_v42, 0.0  ;;  %v2472_v1 = vmax.f32 %v2338_v43, 0.0  ;;  %v1958_v14 = vadd.f32 %v5547_v55, %v1957_v63  ;;  %v3301_v42 = vadd.f32 %v3300_v19, %v3299_v13 }
 0x2cf   : > { %v3331_v2 = vadd.f32 %v3330_v33, %v3329_v17  ;;  %v1959_v49 = vpop.f32.mrf.mxu1  ;;  %v2344_v15 = vpop.f32.mrf.mxu0  ;;  %v3326_v4 = vadd.f32 %v3325_v5, %v3324_v25  ;;  %v3319_v17 = vadd.f32 %v3318_v61, %v3317_v21 }
 0x2d0   : > { %v2343_v56 = vadd.f32 %v2342_v35, %v1958_v14  ;;  %v3112_v37 = vmul.f32 %v5493_v50, %v2472_v1 }
 0x2d1   : > { %v3332_v7 = vrot.slane %v3331_v2, 4  ;;  %v5583_v24 = vpop.f32.mrf.mxu1  ;;  %v5585_v22 = vpop.f32.mrf.mxu0  ;;  %v3327_v39 = vrot.slane %v3326_v4, 1 }
 0x2d2   : > { %v2473_v45 = vmax.f32 %v2343_v56, 0.0  ;;  %v3338_v34 = vsel %vm3130_vm8, %v3112_v37, 0.0 }
 0x2d3   : > { %v3333_v30 = vadd.f32 %v3332_v7, %v3331_v2  ;;  %v1964_v62 = vpop.f32.mrf.mxu1  ;;  %v2349_v52 = vpop.f32.mrf.mxu0  ;;  %v3328_v1 = vadd.f32 %v3327_v39, %v3326_v4 }
 0x2d4   : > { %v3113_v60 = vmul.f32 %v5499_v44, %v2473_v45  ;;  %v3282_v44 = vrot.slane %v3281_v8, 1 }
 0x2d5   : > { %v3334_v6 = vrot.slane %v3333_v30, 2  ;;  %v5589_v40 = vpop.f32.mrf.mxu1  ;;  %v5591_v51 = vpop.f32.mrf.mxu0 }
 0x2d6   : > { %v3339_v50 = vsel %vm3130_vm8, %v3113_v60, 0.0  ;;  %v3283_v47 = vadd.f32 %v3282_v44, %v3281_v8 }
 0x2d7   : > { %v3340_v32 = vadd.f32 %v3339_v50, %v3338_v34  ;;  %v1969_v31 = vpop.f32.mrf.mxu1  ;;  %v2354_v28 = vpop.f32.mrf.mxu0  ;;  %v3335_v53 = vadd.f32 %v3334_v6, %v3333_v30 }
 0x2d8   : > { %v3488_v33 = vsel %vm3467_vm9, %v3292_v48, %v3283_v47  ;;  %v1968_v31 = vadd.f32 %v5547_v55, %v5589_v40 }
 0x2d9   : > { %v3341_v18 = vrot.slane %v3340_v32, 4  ;;  %v1972_v0 = vpop.f32.mrf.mxu1  ;;  %v2357_v3 = vpop.f32.mrf.mxu0  ;;  %v3336_v43 = vrot.slane %v3335_v53, 1  ;;  %v3489_v49 = vsel %vm3469_vm10, %v3301_v42, %v3488_v33 }
 0x2da   : > { %v3490_v46 = vsel %vm3471_vm11, %v3310_v11, %v3489_v49  ;;  %v1973_v28 = vadd.f32 %v5547_v55, %v1972_v0  ;;  %v2353_v40 = vadd.f32 %v5591_v51, %v1968_v31 }
 0x2db   : > { %v3342_v57 = vadd.f32 %v3341_v18, %v3340_v32  ;;  %v1974_v23 = vpop.f32.mrf.mxu1  ;;  %v2359_v54 = vpop.f32.mrf.mxu0  ;;  %v3337_v2 = vadd.f32 %v3336_v43, %v3335_v53  ;;  %v3491_v16 = vsel %vm3473_vm12, %v3319_v17, %v3490_v46  ;;  %v1963_v18 = vadd.f32 %v5547_v55, %v5583_v24 }
 0x2dc   : > { %v3492_v45 = vsel %vm3475_vm13, %v3328_v1, %v3491_v16  ;;  %v2358_v0 = vadd.f32 %v2357_v3, %v1973_v28  ;;  %v5742_v16 = vld [vmem:[#allocation9_spill] sm:$0xff]  ;;  %v5749_v28 = vld [vmem:[#allocation6_spill] sm:$0xff] }
 0x2dd   : > { %v3343_v29 = vrot.slane %v3342_v57, 2  ;;  %v1977_v63 = vpop.f32.mrf.mxu1  ;;  %v2362_v35 = vpop.f32.mrf.mxu0  ;;  %v3493_v9 = vsel %vm3477_vm14, %v3337_v2, %v3492_v45 }
 0x2de   : > { %v1978_v50 = vadd.f32 %v5547_v55, %v1977_v63  ;;  %v2348_v63 = vadd.f32 %v5585_v22, %v1963_v18  ;;  %v2476_v2 = vmax.f32 %v2358_v0, 0.0 }
 0x2df   : > { %v1979_v14 = vpop.f32.mrf.mxu1  ;;  %v2364_v38 = vpop.f32.mrf.mxu0  ;;  %v3344_v25 = vadd.f32 %v3343_v29, %v3342_v57 }
 0x2e0   : > { %v2363_v61 = vadd.f32 %v2362_v35, %v1978_v50  ;;  %v2474_v46 = vmax.f32 %v2348_v63, 0.0 }
 0x2e1   : > { %v1982_v15 = vpop.f32.mrf.mxu1  ;;  %v2367_v26 = vpop.f32.mrf.mxu0  ;;  %v3345_v56 = vrot.slane %v3344_v25, 1 }
 0x2e2   : > { %v1983_v19 = vadd.f32 %v5547_v55, %v1982_v15  ;;  %v2477_v24 = vmax.f32 %v2363_v61, 0.0  ;;  %v5750_v61 = vld [vmem:[#allocation13_spill] sm:$0xff] }
 0x2e3   : > { %v1984_v7 = vpop.f32.mrf.mxu1  ;;  %v2369_v58 = vpop.f32.mrf.mxu0  ;;  %v3346_v37 = vadd.f32 %v3345_v56, %v3344_v25  ;;  %v2475_v25 = vmax.f32 %v2353_v40, 0.0 }
 0x2e4   : > { %v2368_v42 = vadd.f32 %v2367_v26, %v1983_v19  ;;  %v3117_v7 = vmul.f32 %v5742_v16, %v2477_v24  ;;  %v3114_v19 = vmul.f32 %v5749_v28, %v2474_v46 }
 0x2e5   : > { %v1987_v5 = vpop.f32.mrf.mxu1  ;;  %v2372_v30 = vpop.f32.mrf.mxu0  ;;  %v3494_v62 = vsel %vm3479_vm15, %v3346_v37, %v3493_v9  ;;  %v5743_v37 = vld [vmem:[#allocation11_spill] sm:$0xff] }
 0x2e6   : > { %4023 = vmatprep.mubr.msk.f32.mxu1 %vm3130_vm8, %v3494_v62  ;;  %v1988_v32 = vadd.f32 %v5547_v55, %v1987_v5  ;;  %v2478_v49 = vmax.f32 %v2368_v42, 0.0  ;;  %v5744_v62 = vld [vmem:[#allocation7_spill] sm:$0xff] }
 0x2e7   : > { %v1989_v52 = vpop.f32.mrf.mxu1  ;;  %v2374_v13 = vpop.f32.mrf.mxu0 }
 0x2e8   : > { %v2373_v57 = vadd.f32 %v2372_v30, %v1988_v32  ;;  %v3115_v52 = vmul.f32 %v5744_v62, %v2475_v25  ;;  %v5745_v13 = vld [vmem:[#allocation8_spill] sm:$0xff] }
 0x2e9   : > { %v1992_v60 = vpop.f32.mrf.mxu1  ;;  %v2377_v8 = vpop.f32.mrf.mxu0 }
 0x2ea   : > { %v1993_v23 = vadd.f32 %v5547_v55, %v1992_v60  ;;  %v2479_v33 = vmax.f32 %v2373_v57, 0.0  ;;  %v3116_v60 = vmul.f32 %v5745_v13, %v2476_v2 }
 0x2eb   : > { %v1994_v12 = vpop.f32.mrf.mxu1  ;;  %v2379_v6 = vpop.f32.mrf.mxu0 }
 0x2ec   : > { %v2378_v1 = vadd.f32 %v2377_v8, %v1993_v23  ;;  %v3119_v45 = vmul.f32 %v5743_v37, %v2479_v33  ;;  %v5746_v8 = vld [vmem:[#allocation10_spill] sm:$0xff]  ;;  %v3356_v40 = vsel %vm3130_vm8, %v3116_v60, 0.0 }
 0x2ed   : > { %v1997_v21 = vpop.f32.mrf.mxu1  ;;  %v2382_v34 = vpop.f32.mrf.mxu0  ;;  %v3118_v12 = vmul.f32 %v5746_v8, %v2478_v49  ;;  %v5747_v6 = vld [vmem:[#allocation14_spill] sm:$0xff] }
 0x2ee   : > { %v1998_v53 = vadd.f32 %v5547_v55, %v1997_v21  ;;  %v2480_v9 = vmax.f32 %v2378_v1, 0.0  ;;  %v3366_v18 = vsel %vm3130_vm8, %v3119_v45, 0.0 }
 0x2ef   : > { %v1999_v10 = vpop.f32.mrf.mxu1  ;;  %v2384_v4 = vpop.f32.mrf.mxu0  ;;  %v3365_v0 = vsel %vm3130_vm8, %v3118_v12, 0.0 }
 0x2f0   : > { %v2383_v43 = vadd.f32 %v2382_v34, %v1998_v53  ;;  %v5748_v10 = vld [vmem:[#allocation18_spill] sm:$0xff]  ;;  %v3357_v53 = vsel %vm3130_vm8, %v3117_v7, 0.0  ;;  %v3367_v33 = vadd.f32 %v3366_v18, %v3365_v0 }
 0x2f1   : > { %v2002_v44 = vpop.f32.mrf.mxu1  ;;  %v2387_v20 = vpop.f32.mrf.mxu0 }
 0x2f2   : > { %v2003_v54 = vadd.f32 %v5547_v55, %v2002_v44  ;;  %v2481_v51 = vmax.f32 %v2383_v43, 0.0 }
 0x2f3   : > { %v2004_v48 = vpop.f32.mrf.mxu1  ;;  %v2389_v39 = vpop.f32.mrf.mxu0 }
 0x2f4   : > { %v2388_v14 = vadd.f32 %v2387_v20, %v2003_v54  ;;  %v3121_v21 = vmul.f32 %v5747_v6, %v2481_v51  ;;  %v3120_v48 = vmul.f32 %v5750_v61, %v2480_v9  ;;  %v5751_v39 = vld [vmem:[#allocation17_spill] sm:$0xff]  ;;  %v3348_v54 = vsel %vm3130_vm8, %v3115_v52, 0.0 }
 0x2f5   : > { %v2007_v47 = vpop.f32.mrf.mxu1  ;;  %v2392_v11 = vpop.f32.mrf.mxu0  ;;  %v3368_v9 = vrot.slane %v3367_v33, 4 }
 0x2f6   : > { %v2008_v29 = vadd.f32 %v5547_v55, %v2007_v47  ;;  %v2482_v5 = vmax.f32 %v2388_v14, 0.0  ;;  %v3375_v42 = vsel %vm3130_vm8, %v3121_v21, 0.0 }
 0x2f7   : > { %v2009_v35 = vpop.f32.mrf.mxu1  ;;  %v2394_v17 = vpop.f32.mrf.mxu0 }
 0x2f8   : > { %v2393_v38 = vadd.f32 %v2392_v11, %v2008_v29  ;;  %v3122_v57 = vmul.f32 %v5751_v39, %v2482_v5  ;;  %v3347_v35 = vsel %vm3130_vm8, %v3114_v19, 0.0  ;;  %v3358_v17 = vadd.f32 %v3357_v53, %v3356_v40 }
 0x2f9   : > { %v2012_v3 = vpop.f32.mrf.mxu1  ;;  %v2397_v15 = vpop.f32.mrf.mxu0  ;;  %v3349_v51 = vadd.f32 %v3348_v54, %v3347_v35 }
 0x2fa   : > { %v2483_v26 = vmax.f32 %v2393_v38, 0.0  ;;  %v2013_v56 = vadd.f32 %v5547_v55, %v2012_v3  ;;  %v3374_v38 = vsel %vm3130_vm8, %v3120_v48, 0.0  ;;  %v3383_v25 = vsel %vm3130_vm8, %v3122_v57, 0.0  ;;  %v3061_v48 = vpop.permute.xlu0 %3060 }
 0x2fb   : > { %v2014_v22 = vpop.f32.mrf.mxu1  ;;  %v2399_v58 = vpop.f32.mrf.mxu0  ;;  %v3376_v3 = vadd.f32 %v3375_v42, %v3374_v38 }
 0x2fc   : > { %v2398_v30 = vadd.f32 %v2397_v15, %v2013_v56  ;;  %v3123_v4 = vmul.f32 %v5748_v10, %v2483_v26  ;;  %v3359_v22 = vrot.slane %v3358_v17, 4  ;;  %v3369_v10 = vadd.f32 %v3368_v9, %v3367_v33 }
 0x2fd   : > { %v2017_v34 = vpop.f32.mrf.mxu1  ;;  %v2402_v50 = vpop.f32.mrf.mxu0 }
 0x2fe   : > { %v2484_v32 = vmax.f32 %v2398_v30, 0.0  ;;  %v2018_v31 = vadd.f32 %v5547_v55, %v2017_v34  ;;  %v3384_v11 = vsel %vm3130_vm8, %v3123_v4, 0.0  ;;  %v3377_v30 = vrot.slane %v3376_v3, 4 }
 0x2ff   : > { %v2019_v44 = vpop.f32.mrf.mxu1  ;;  %v2404_v20 = vpop.f32.mrf.mxu0  ;;  %v3385_v15 = vadd.f32 %v3384_v11, %v3383_v25  ;;  %v3360_v6 = vadd.f32 %v3359_v22, %v3358_v17 }
 0x300   : > { %v2403_v23 = vadd.f32 %v2402_v50, %v2018_v31  ;;  %v3124_v29 = vmul.f32 %v5422_v41, %v2484_v32  ;;  %v3378_v28 = vadd.f32 %v3377_v30, %v3376_v3  ;;  %v3065_v11 = vpop.permute.xlu1 %3064 }
 0x301   : > { %v2022_v43 = vpop.f32.mrf.mxu1  ;;  %v2407_v47 = vpop.f32.mrf.mxu0  ;;  %v3386_v62 = vrot.slane %v3385_v15, 4  ;;  %v3361_v39 = vrot.slane %v3360_v6, 2 }
 0x302   : > { %v2485_v63 = vmax.f32 %v2403_v23, 0.0  ;;  %v2023_v24 = vadd.f32 %v5547_v55, %v2022_v43  ;;  %v3392_v56 = vsel %vm3130_vm8, %v3124_v29, 0.0  ;;  %v3379_v43 = vrot.slane %v3378_v28, 2 }
 0x303   : > { %v2024_v1 = vpop.f32.mrf.mxu1  ;;  %v2409_v14 = vpop.f32.mrf.mxu0  ;;  %v3387_v19 = vadd.f32 %v3386_v62, %v3385_v15  ;;  %v3362_v35 = vadd.f32 %v3361_v39, %v3360_v6 }
 0x304   : > { %v3125_v2 = vmul.f32 %v5429_v36, %v2485_v63  ;;  %v2408_v49 = vadd.f32 %v2407_v47, %v2023_v24  ;;  %v3350_v36 = vrot.slane %v3349_v51, 4  ;;  %v3380_v38 = vadd.f32 %v3379_v43, %v3378_v28 }
 0x305   : > { %v2027_v41 = vpop.f32.mrf.mxu1  ;;  %v2412_v26 = vpop.f32.mrf.mxu0  ;;  %v3388_v29 = vrot.slane %v3387_v19, 2  ;;  %v3363_v3 = vrot.slane %v3362_v35, 1  ;;  %v3430_v28 = vlaneseq }
 0x306   : > { %v3393_v46 = vsel %vm3130_vm8, %v3125_v2, 0.0  ;;  %v2486_v16 = vmax.f32 %v2408_v49, 0.0  ;;  %v2028_v7 = vadd.f32 %v5547_v55, %v2027_v41  ;;  %v3351_v31 = vadd.f32 %v3350_v36, %v3349_v51 }
 0x307   : > { %v3394_v58 = vadd.f32 %v3393_v46, %v3392_v56  ;;  %v2029_v37 = vpop.f32.mrf.mxu1  ;;  %v2414_v45 = vpop.f32.mrf.mxu0  ;;  %v3389_v2 = vadd.f32 %v3388_v29, %v3387_v19  ;;  %v3431_v19 = vshrl.u32 %v3430_v28, 7 }
 0x308   : > { %v2413_v5 = vadd.f32 %v2412_v26, %v2028_v7  ;;  %v3126_v60 = vmul.f32 %v5504_v59, %v2486_v16  ;;  %v3352_v42 = vrot.slane %v3351_v31, 2  ;;  %v3381_v16 = vrot.slane %v3380_v38, 1 }
 0x309   : > { %v2032_v52 = vpop.f32.mrf.mxu1  ;;  %v2417_v13 = vpop.f32.mrf.mxu0  ;;  %v3395_v21 = vrot.slane %v3394_v58, 4  ;;  %v3390_v22 = vrot.slane %v3389_v2, 1 }
 0x30a   : > { %v2487_v8 = vmax.f32 %v2413_v5, 0.0  ;;  %v2033_v12 = vadd.f32 %v5547_v55, %v2032_v52  ;;  %v3401_v20 = vsel %vm3130_vm8, %v3126_v60, 0.0  ;;  %v3353_v14 = vadd.f32 %v3352_v42, %v3351_v31 }
 0x30b   : > { %v2034_v34 = vpop.f32.mrf.mxu1  ;;  %v2419_v50 = vpop.f32.mrf.mxu0  ;;  %v3396_v57 = vadd.f32 %v3395_v21, %v3394_v58  ;;  %v3364_v58 = vadd.f32 %v3363_v3, %v3362_v35  ;;  %v3382_v30 = vadd.f32 %v3381_v16, %v3380_v38  ;;  %v3391_v52 = vadd.f32 %v3390_v22, %v3389_v2 }
 0x30c   : > { %v3127_v4 = vmul.f32 %v5507_v27, %v2487_v8  ;;  %v2418_v32 = vadd.f32 %v2417_v13, %v2033_v12  ;;  %v3370_v27 = vrot.slane %v3369_v10, 2  ;;  %v3354_v46 = vrot.slane %v3353_v14, 1 }
 0x30d   : > { %v2037_v53 = vpop.f32.mrf.mxu1  ;;  %v2422_v44 = vpop.f32.mrf.mxu0  ;;  %v3397_v17 = vrot.slane %v3396_v57, 2 }
 0x30e   : > { %v3402_v59 = vsel %vm3130_vm8, %v3127_v4, 0.0  ;;  %v2488_v18 = vmax.f32 %v2418_v32, 0.0  ;;  %v2038_v61 = vadd.f32 %v5547_v55, %v2037_v53  ;;  %v3371_v1 = vadd.f32 %v3370_v27, %v3369_v10  ;;  %v3427_v53 = vld [vmem:[%s5722_s5] sm:$0x1] }
 0x30f   : > { %v3403_v23 = vadd.f32 %v3402_v59, %v3401_v20  ;;  %v2039_v54 = vpop.f32.mrf.mxu1  ;;  %v2424_v40 = vpop.f32.mrf.mxu0  ;;  %v3398_v15 = vadd.f32 %v3397_v17, %v3396_v57  ;;  %v3355_v36 = vadd.f32 %v3354_v46, %v3353_v14  ;;  %v3432_v20 = vsub.s32 0, %v3431_v19 }
 0x310   : > { %v2423_v0 = vadd.f32 %v2422_v44, %v2038_v61  ;;  %v3128_v24 = vmul.f32 %v3061_v48, %v2488_v18  ;;  %v3372_v26 = vrot.slane %v3371_v1, 1  ;;  %v3428_v44 = vmul.f32 16.0, %v3427_v53 }
 0x311   : > { %v3404_v47 = vrot.slane %v3403_v23, 4  ;;  %v3399_v37 = vrot.slane %v3398_v15, 1  ;;  %v3495_v13 = vsel %vm3467_vm9, %v3364_v58, %v3355_v36  ;;  %v3596_v57 = vand.u32 127, %v3430_v28 }
 0x312   : > { %v2489_v63 = vmax.f32 %v2423_v0, 0.0  ;;  %v3410_v49 = vsel %vm3130_vm8, %v3128_v24, 0.0  ;;  %v3373_v9 = vadd.f32 %v3372_v26, %v3371_v1  ;;  %v3433_v59 = vrot.slane %v3428_v44, %v3432_v20 }
 0x313   : > { %v3405_v33 = vadd.f32 %v3404_v47, %v3403_v23  ;;  %v3400_v60 = vadd.f32 %v3399_v37, %v3398_v15  ;;  %vm3597_vm0 = vcmp.ge.s32.totalorder %v3596_v57, 64 }
 0x314   : > { %v3129_v55 = vmul.f32 %v3065_v11, %v2489_v63  ;;  %v3496_v12 = vsel %vm3469_vm10, %v3373_v9, %v3495_v13 }
 0x315   : > { %v3406_v25 = vrot.slane %v3405_v33, 2  ;;  %v3497_v21 = vsel %vm3471_vm11, %v3382_v30, %v3496_v12 }
 0x316   : > { %v3411_v51 = vsel %vm3130_vm8, %v3129_v55, 0.0  ;;  %v3498_v50 = vsel %vm3473_vm12, %v3391_v52, %v3497_v21 }
 0x317   : > { %v3412_v41 = vadd.f32 %v3411_v51, %v3410_v49  ;;  %v3407_v56 = vadd.f32 %v3406_v25, %v3405_v33  ;;  %v3499_v4 = vsel %vm3475_vm13, %v3400_v60, %v3498_v50 }
 0x319   : > { %v3413_v7 = vrot.slane %v3412_v41, 4  ;;  %v3408_v5 = vrot.slane %v3407_v56, 1 }
 0x31b   : > { %v3414_v45 = vadd.f32 %v3413_v7, %v3412_v41  ;;  %v3409_v6 = vadd.f32 %v3408_v5, %v3407_v56 }
 0x31d   : > { %v3415_v62 = vrot.slane %v3414_v45, 2  ;;  %v3500_v32 = vsel %vm3477_vm14, %v3409_v6, %v3499_v4 }
 0x31f   : > { %v3416_v8 = vadd.f32 %v3415_v62, %v3414_v45 }
 0x321   : > { %v3417_v34 = vrot.slane %v3416_v8, 1 }
 0x323   : > { %v3418_v10 = vadd.f32 %v3417_v34, %v3416_v8 }
 0x325   : > { %v3501_v31 = vsel %vm3479_vm15, %v3418_v10, %v3500_v32 }
 0x326   : > { %4024 = vmatmul.mubr.msk.f32.vlgmr.msra.gmra.mxu1 %vm3130_vm8, %v3501_v31 }
 0x366   : > { %v4022_v18 = vpop.f32.mrf.mxu0 }
 0x367   : > { %v3582_v61 = vadd.f32 %v4022_v18, %v3433_v59 }
 0x368   : > { %v3576_v48 = vpop.f32.mrf.mxu0 }
 0x369   : > { %4123 = vtanh.f32 %v3582_v61  ;;  %v3577_v39 = vadd.f32 %v3576_v48, %v3433_v59 }
 0x36b   : > { %4125 = vtanh.f32 %v3577_v39 }
 0x376   : > { %v4124_v23 = vpop.eup %4123 }
 0x377   : > { %v3603_v54 = vsel %vm3597_vm0, %v4124_v23, %v3582_v61 }
 0x378   : > { %v4126_v40 = vpop.eup %4125  ;;  %3607 = vst [vmem:[%s265_s20 + $0x8] sm:$0xff] %v3603_v54 }
 0x379   : > { %v3602_v27 = vsel %vm3597_vm0, %v4126_v40, %v3577_v39 }
 0x37a   : > { %3606 = vst [vmem:[%s265_s20] sm:$0xff] %v3602_v27 }
 0x3e6   : > { %v4025_v0 = vpop.f32.mrf.mxu1 }
 0x3e7   : > { %v3592_v42 = vadd.f32 %v4025_v0, %v3433_v59 }
 0x3e8   : > { %v3586_v43 = vpop.f32.mrf.mxu1 }
 0x3e9   : > { %4127 = vtanh.f32 %v3592_v42  ;;  %v3587_v47 = vadd.f32 %v3586_v43, %v3433_v59 }
 0x3eb   : > { %4129 = vtanh.f32 %v3587_v47 }
 0x3f6   : > { %v4128_v11 = vpop.eup %4127 }
 0x3f7   : > { %v3605_v29 = vsel %vm3597_vm0, %v4128_v11, %v3592_v42 }
 0x3f8   : > { %v4130_v63 = vpop.eup %4129  ;;  %3609 = vst [vmem:[%s265_s20 + $0x18] sm:$0xff] %v3605_v29 }
 0x3f9   : > { %v3604_v24 = vsel %vm3597_vm0, %v4130_v63, %v3587_v47 }
 0x3fa   : > { %3608 = vst [vmem:[%s265_s20 + $0x10] sm:$0xff] %v3604_v24 }
 0x3fb   : > { %4148 = shalt.err (!%p4145_p3)
}
 0x3fc   : > { %s4149_s15 = scalar_lea.hbm %s5674_s11, 512  ;;  %s4153_s18 = scalar_lea.hbm %s5723_s6, 1024 }
 0x3fd   : > { %p4150_p4 = scmp.ne.s32.totalorder %s5674_s11, %s4149_s15  ;;  %p4154_p9 = scmp.lt.s32.totalorder %s5674_s11, %s5723_s6 }
 0x3fe   : > { %p4155_p10 = scmp.lt.s32.totalorder %s4153_s18, %s4149_s15 }
 0x3ff   : > { %p4151_p7 = pnand %p4150_p4, %p4281_p5 }
 0x400   : > { %p4156_p11 = por %p4155_p10, %p4154_p9 }
 0x401   : > { %p4152_p8 = pneg %p4151_p7 }
 0x403   : > { %p4157_p12 = pnand %p4156_p11, %p4152_p8 }
 0x405   : > { %4160 = shalt.err (!%p4157_p12)
}
 0x406   : > { %s4206_s28 = smov 128   ;;  %s4207_s29 = smov 8  }
 0x407   : > { %4074 = dma.vmem_to_hbm [thread:$0]  (%p4281_p5), %s5668_s26, 512, %s5674_s11, %s5677_s12, %s4206_s28, %s4206_s28, %s4207_s29  }
 0x408 PF: > { %p4080_p13 = scmp.ge.s32.totalorder %s4195_s24, 2  ;;  %s3639_s9 = sand.u32 1, %s4183_s21  }
 0x409   : > { %s3640_s25 = scalar_lea.sflag [#allocation4], %s3639_s9 }
 0x40a   : > { %p4077_p0 = pnand %p4080_p13, %p4285_p6 }
 0x40c   : > { %p4078_p1 = pneg %p4077_p0 }
 0x40e   : > { %4178 = dma.done.wait (%p4078_p1), %s3640_s25, 512  }
 0x40f   : > { %4180 = vsyncadd (%p4078_p1), %s3640_s25, 4294966784  ;;  %p16_p2 = scmp.ge.s32.totalorder %s4268_s27, 4   ;;  %s5752_s21 = smov %s4187_s22 }
 0x410   : > { %s5753_s22 = smov %s4191_s23  ;;  %s5754_s23 = smov %s4279_s30 }
 0x411   : > { %s5755_s24 = smov %s4268_s27  ;;  %18 = sbr.rel (!%p16_p2) target bundleno = 3 (0x3), region = 113 }
 0x416   :  { %3645 = vsyncpa [#allocation4], 1 }
 0x417   :  { %3647 = vsyncpa [#allocation4 + $0x1], 1 }

</bundles_post_ra>
